<compile_context>
chip_gen: v7x
topology: tpu7x:2x2x1
jax: 0.10.0
libtpu: 0.0.40
codegen_flags: <defaults>
</compile_context>

<pallas_src>
import functools

import jax
import jax.numpy as jnp
from jax.experimental import pallas as pl
from jax.experimental.pallas import tpu as pltpu

_VMEM_LIMIT = 48 * 1024 * 1024
_NEG_INF = -1e30


# ------------------------------ spec helpers --------------------------------
def _stacked_spec(arr):
    """Per-layer block of an (L, ...) stacked parameter, indexed by grid axis."""
    block = (1,) + tuple(arr.shape[1:])
    nz = arr.ndim - 1
    return pl.BlockSpec(block, lambda l, _nz=nz: (l,) + (0,) * _nz)


def _full_spec(arr):
    """Whole array resident in VMEM, identical block for every grid step."""
    nd = arr.ndim
    return pl.BlockSpec(tuple(arr.shape), lambda l, _nd=nd: (0,) * _nd)


# --------------------------- in-kernel building blocks -----------------------
def _batch_bias(q_ids, k_ids):
    """Additive mask built in-kernel from tiny batch-id vectors (no N^2 DMA)."""
    return jnp.where(q_ids == k_ids, 0.0, _NEG_INF).astype(jnp.float32)


def _attention(q, k, v, out_w, out_b, heads, bias, ctx_scr):
    """Multi-head attention on flattened (tokens, E) activations.

    * per-head scores / softmax / context (K=dh contraction is inherent there),
    * per-head context staged into its contiguous lane slice of a VMEM scratch,
    * ONE fused (N,E)@(E,E) output projection (K=E, fills the MXU),
    * K transposed once per call (not once per head),
    * MXU operands bf16, accumulation + softmax strictly f32.
    """
    E = q.shape[-1]
    dh = E // heads
    qb = q.astype(jnp.bfloat16)
    kT = k.T.astype(jnp.bfloat16)            # single transpose per layer
    vb = v.astype(jnp.bfloat16)
    for h in range(heads):
        sl = slice(h * dh, (h + 1) * dh)
        s = jnp.dot(qb[:, sl], kT[sl, :], preferred_element_type=jnp.float32)
        s = s + bias                                   # batch separation
        s = s - jnp.max(s, axis=-1, keepdims=True)
        p = jnp.exp(s)
        p = p * pl.reciprocal(jnp.sum(p, axis=-1, keepdims=True), approx=True)
        ctx_scr[:, sl] = jnp.dot(p.astype(jnp.bfloat16), vb[:, sl],
                                 preferred_element_type=jnp.float32)
    return (jnp.dot(ctx_scr[...].astype(jnp.bfloat16), out_w,
                    preferred_element_type=jnp.float32) + out_b)


def _add_layernorm(x, r, g, b, eps=1e-5):
    y = x + r
    mu = jnp.mean(y, axis=-1, keepdims=True)
    d = y - mu
    var = jnp.mean(d * d, axis=-1, keepdims=True)
    return d * jax.lax.rsqrt(var + eps) * g + b


def _ffn_add_ln_rows(x, w1, b1, w2, b2, g, beta, x_scr, row_block):
    """Row-tiled FFN + residual + LayerNorm, written block-wise into x_scr.

    Bounds the (rows, dff) transient to (row_block, dff) instead of (N, dff).
    """
    n = x.shape[0]
    start = 0
    while start < n:
        blk = min(row_block, n - start)
        xb = x[start:start + blk, :]
        h = jnp.dot(xb.astype(jnp.bfloat16), w1,
                    preferred_element_type=jnp.float32) + b1
        h = jnp.maximum(h, 0.0)                        # ReLU (PyTorch default)
        y = jnp.dot(h.astype(jnp.bfloat16), w2,
                    preferred_element_type=jnp.float32) + b2
        x_scr[start:start + blk, :] = _add_layernorm(xb, y, g, beta)
        start += blk


# ------------------------------ fused stack kernels --------------------------
def _encoder_stack_kernel(x0_ref, qid_ref, kid_ref,
                          wq, bq, wk, bk, wv, bv, ow, ob, ln1g, ln1b,
                          w1, b1, w2, b2, ln2g, ln2b,
                          mem_ref, x_scr, ctx_scr, *, heads, ffn_rows):
    l = pl.program_id(0)

    @pl.when(l == 0)
    def _():
        x_scr[...] = x0_ref[...]

    x = x_scr[...]
    bias = _batch_bias(qid_ref[...], kid_ref[...])

    # self-attention + add & norm (post-norm)
    xb = x.astype(jnp.bfloat16)
    q = jnp.dot(xb, wq[0], preferred_element_type=jnp.float32) + bq[0]
    k = jnp.dot(xb, wk[0], preferred_element_type=jnp.float32) + bk[0]
    v = jnp.dot(xb, wv[0], preferred_element_type=jnp.float32) + bv[0]
    a = _attention(q, k, v, ow[0], ob[0], heads, bias, ctx_scr)
    x = _add_layernorm(x, a, ln1g[0], ln1b[0])

    # feed-forward + add & norm (row-tiled, writes x_scr)
    _ffn_add_ln_rows(x, w1[0], b1[0], w2[0], b2[0], ln2g[0], ln2b[0],
                     x_scr, ffn_rows)

    @pl.when(l == pl.num_programs(0) - 1)
    def _():
        mem_ref[...] = x_scr[...]


def _decoder_stack_kernel(x0_ref, mem_ref, qidt_ref, kidt_ref, kids_ref,
                          sa_wq, sa_bq, sa_wk, sa_bk, sa_wv, sa_bv,
                          sa_ow, sa_ob, ln1g, ln1b,
                          ca_wq, ca_bq, ca_wk, ca_bk, ca_wv, ca_bv,
                          ca_ow, ca_ob, ln2g, ln2b,
                          w1, b1, w2, b2, ln3g, ln3b,
                          out_ref, x_scr, ctx_scr, *, heads, ffn_rows):
    l = pl.program_id(0)

    @pl.when(l == 0)
    def _():
        x_scr[...] = x0_ref[...]

    x = x_scr[...]
    self_bias = _batch_bias(qidt_ref[...], kidt_ref[...])
    cross_bias = _batch_bias(qidt_ref[...], kids_ref[...])

    # self-attention + add & norm (no tgt_mask: spec module passes none)
    xb = x.astype(jnp.bfloat16)
    q = jnp.dot(xb, sa_wq[0], preferred_element_type=jnp.float32) + sa_bq[0]
    k = jnp.dot(xb, sa_wk[0], preferred_element_type=jnp.float32) + sa_bk[0]
    v = jnp.dot(xb, sa_wv[0], preferred_element_type=jnp.float32) + sa_bv[0]
    a = _attention(q, k, v, sa_ow[0], sa_ob[0], heads, self_bias, ctx_scr)
    x = _add_layernorm(x, a, ln1g[0], ln1b[0])

    # cross-attention (queries from x, keys/values from encoder memory)
    xb = x.astype(jnp.bfloat16)
    memb = mem_ref[...].astype(jnp.bfloat16)
    q = jnp.dot(xb, ca_wq[0], preferred_element_type=jnp.float32) + ca_bq[0]
    k = jnp.dot(memb, ca_wk[0], preferred_element_type=jnp.float32) + ca_bk[0]
    v = jnp.dot(memb, ca_wv[0], preferred_element_type=jnp.float32) + ca_bv[0]
    c = _attention(q, k, v, ca_ow[0], ca_ob[0], heads, cross_bias, ctx_scr)
    x = _add_layernorm(x, c, ln2g[0], ln2b[0])

    # feed-forward + add & norm (row-tiled, writes x_scr)
    _ffn_add_ln_rows(x, w1[0], b1[0], w2[0], b2[0], ln3g[0], ln3b[0],
                     x_scr, ffn_rows)

    @pl.when(l == pl.num_programs(0) - 1)
    def _():
        out_ref[...] = x_scr[...]


# ----------------------------- small linear kernel ---------------------------
def _linear_kernel(x_ref, w_ref, b_ref, o_ref):
    o_ref[...] = (jnp.dot(x_ref[...].astype(jnp.bfloat16), w_ref[...],
                          preferred_element_type=jnp.float32) + b_ref[...])


def _linear(x, w, b):
    n, dout = x.shape[0], w.shape[1]
    return pl.pallas_call(
        _linear_kernel,
        out_shape=jax.ShapeDtypeStruct((n, dout), jnp.float32),
        in_specs=[pl.BlockSpec(memory_space=pltpu.MemorySpace.VMEM)] * 3,
        out_specs=pl.BlockSpec(memory_space=pltpu.MemorySpace.VMEM),
        compiler_params=pltpu.CompilerParams(vmem_limit_bytes=_VMEM_LIMIT),
    )(x, w, b)


# ------------------------------- model forward -------------------------------
ENC_STACKED = ["wq", "bq", "wk", "bk", "wv", "bv", "ow", "ob",
               "ln1_g", "ln1_b", "ff_w1", "ff_b1", "ff_w2", "ff_b2",
               "ln2_g", "ln2_b"]
DEC_STACKED = ["sa_wq", "sa_bq", "sa_wk", "sa_bk", "sa_wv", "sa_bv",
               "sa_ow", "sa_ob", "ln1_g", "ln1_b",
               "ca_wq", "ca_bq", "ca_wk", "ca_bk", "ca_wv", "ca_bv",
               "ca_ow", "ca_ob", "ln2_g", "ln2_b",
               "ff_w1", "ff_b1", "ff_w2", "ff_b2", "ln3_g", "ln3_b"]


def transformer_forward(params, src, trg, *, heads, ffn_rows=256):
    Ss, B, Din = src.shape
    St, _, Dtrg = trg.shape
    E = params["embed_w"].shape[1]
    L = params["enc"]["wq"].shape[0]
    out_dim = params["fc_w"].shape[1]
    Ns, Nt = Ss * B, St * B

    src2d = src.reshape(Ns, Din)
    trg2d = trg.reshape(Nt, Dtrg)

    # tiny batch-id vectors; the O(N^2) additive mask is built in-kernel
    sid = jnp.arange(Ns, dtype=jnp.int32) % B
    tid = jnp.arange(Nt, dtype=jnp.int32) % B
    s_row, s_col = sid.reshape(Ns, 1), sid.reshape(1, Ns)
    t_row, t_col = tid.reshape(Nt, 1), tid.reshape(1, Nt)

    # embeddings in dedicated tiny kernels (keeps the embedding weights out of
    # the per-layer-resident VMEM budget of the stacked calls)
    src_emb = _linear(src2d, params["embed_w"], params["embed_b"])
    trg_emb = _linear(trg2d, params["tgt_embed_w"], params["tgt_embed_b"])

    # ---------------- encoder: single pallas_call over all layers ------------
    enc_full = [src_emb, s_row, s_col]
    enc_stacked = [params["enc"][k] for k in ENC_STACKED]
    memory = pl.pallas_call(
        functools.partial(_encoder_stack_kernel, heads=heads, ffn_rows=ffn_rows),
        out_shape=jax.ShapeDtypeStruct((Ns, E), jnp.float32),
        grid_spec=pltpu.PrefetchScalarGridSpec(
            num_scalar_prefetch=0, grid=(L,),
            in_specs=[_full_spec(a) for a in enc_full]
                     + [_stacked_spec(a) for a in enc_stacked],
            out_specs=pl.BlockSpec((Ns, E), lambda l: (0, 0)),
            scratch_shapes=[pltpu.VMEM((Ns, E), jnp.float32),
                            pltpu.VMEM((Ns, E), jnp.float32)]),
        compiler_params=pltpu.CompilerParams(
            dimension_semantics=("arbitrary",),
            vmem_limit_bytes=_VMEM_LIMIT),
    )(*enc_full, *enc_stacked)

    # ---------------- decoder: single pallas_call over all layers ------------
    dec_full = [trg_emb, memory, t_row, t_col, s_col]
    dec_stacked = [params["dec"][k] for k in DEC_STACKED]
    dec_act = pl.pallas_call(
        functools.partial(_decoder_stack_kernel, heads=heads, ffn_rows=ffn_rows),
        out_shape=jax.ShapeDtypeStruct((Nt, E), jnp.float32),
        grid_spec=pltpu.PrefetchScalarGridSpec(
            num_scalar_prefetch=0, grid=(L,),
            in_specs=[_full_spec(a) for a in dec_full]
                     + [_stacked_spec(a) for a in dec_stacked],
            out_specs=pl.BlockSpec((Nt, E), lambda l: (0, 0)),
            scratch_shapes=[pltpu.VMEM((Nt, E), jnp.float32),
                            pltpu.VMEM((Nt, E), jnp.float32)]),
        compiler_params=pltpu.CompilerParams(
            dimension_semantics=("arbitrary",),
            vmem_limit_bytes=_VMEM_LIMIT),
    )(*dec_full, *dec_stacked)

    # final projection: lane-dense (128-padded) output, sliced on the host
    out_pad = ((out_dim + 127) // 128) * 128
    fc_w = jnp.zeros((E, out_pad), jnp.bfloat16).at[:, :out_dim].set(params["fc_w"])
    fc_b = jnp.zeros((1, out_pad), jnp.float32).at[:, :out_dim].set(params["fc_b"])
    out2d = _linear(dec_act, fc_w, fc_b)[:, :out_dim]
    return out2d.reshape(St, B, out_dim)


# ------------------------------- parameter init -------------------------------
def init_params(key, input_dim, output_dim, E, heads, num_layers, dff):
    dh = E // heads
    qscale = 1.0 / (dh ** 0.5)
    kiter = iter(jax.random.split(key, 1024))

    def w_(din, dout, scale=1.0, std=0.05):
        w = (std * scale) * jax.random.normal(next(kiter), (din, dout), jnp.float32)
        return w.astype(jnp.bfloat16)          # MXU operands in bf16

    def b_(dout, scale=1.0, std=0.05):
        return (std * scale) * jax.random.normal(next(kiter), (1, dout), jnp.float32)

    def ln_():
        return jnp.ones((1, E), jnp.float32), jnp.zeros((1, E), jnp.float32)

    def attn(prefix):
        # fold 1/sqrt(Dh) into the Q projection so the kernel never rescales q
        return {
            prefix + "wq": w_(E, E, scale=qscale), prefix + "bq": b_(E, scale=qscale),
            prefix + "wk": w_(E, E), prefix + "bk": b_(E),
            prefix + "wv": w_(E, E), prefix + "bv": b_(E),
            prefix + "ow": w_(E, E), prefix + "ob": b_(E),
        }

    def enc_layer():
        p = attn("")
        p["ln1_g"], p["ln1_b"] = ln_()
        p["ff_w1"], p["ff_b1"] = w_(E, dff), b_(dff)
        p["ff_w2"], p["ff_b2"] = w_(dff, E), b_(E)
        p["ln2_g"], p["ln2_b"] = ln_()
        return p

    def dec_layer():
        p = attn("sa_")
        p["ln1_g"], p["ln1_b"] = ln_()
        p.update(attn("ca_"))
        p["ln2_g"], p["ln2_b"] = ln_()
        p["ff_w1"], p["ff_b1"] = w_(E, dff), b_(dff)
        p["ff_w2"], p["ff_b2"] = w_(dff, E), b_(E)
        p["ln3_g"], p["ln3_b"] = ln_()
        return p

    def stack(layers):
        return {k: jnp.stack([lp[k] for lp in layers]) for k in layers[0]}

    params = {}
    params["embed_w"], params["embed_b"] = w_(input_dim, E), b_(E)
    params["tgt_embed_w"], params["tgt_embed_b"] = w_(output_dim, E), b_(E)
    params["enc"] = stack([enc_layer() for _ in range(num_layers)])
    params["dec"] = stack([dec_layer() for _ in range(num_layers)])
    params["fc_w"], params["fc_b"] = w_(E, output_dim), b_(output_dim)
    return params


# ------------------------------------ main ------------------------------------
if __name__ == "__main__":
    # TransformerModel(input_dim, output_dim, embed_size, heads, num_layers,
    #                  forward_expansion, dropout)
    input_dim, output_dim = 16, 6
    embed_size, heads, num_layers = 32, 4, 2
    forward_expansion = 64   # dim_feedforward in the PyTorch module

    S_src, S_trg, B = 8, 8, 2

    pkey, skey, tkey = jax.random.split(jax.random.PRNGKey(0), 3)
    params = init_params(pkey, input_dim, output_dim, embed_size, heads,
                         num_layers, forward_expansion)
    src = jax.random.normal(skey, (S_src, B, input_dim), jnp.float32)
    trg = jax.random.normal(tkey, (S_trg, B, output_dim), jnp.float32)

    fwd = jax.jit(functools.partial(transformer_forward, heads=heads))
    out = fwd(params, src, trg)
    jax.block_until_ready(out)
    assert out.shape == (S_trg, B, output_dim) and out.dtype == jnp.float32
    print("KERNEL_OK")
</pallas_src>

<mosaic_0001>
module attributes {stable_mosaic.version = 11 : i64} {
  func.func @_encoder_stack_kernel(%arg0: i32, %arg1: memref<16x32xf32, #tpu.memory_space<vmem>>, %arg2: memref<16x1xi32, #tpu.memory_space<vmem>>, %arg3: memref<1x16xi32, #tpu.memory_space<vmem>>, %arg4: memref<1x32x32xbf16, #tpu.memory_space<vmem>>, %arg5: memref<1x1x32xf32, #tpu.memory_space<vmem>>, %arg6: memref<1x32x32xbf16, #tpu.memory_space<vmem>>, %arg7: memref<1x1x32xf32, #tpu.memory_space<vmem>>, %arg8: memref<1x32x32xbf16, #tpu.memory_space<vmem>>, %arg9: memref<1x1x32xf32, #tpu.memory_space<vmem>>, %arg10: memref<1x32x32xbf16, #tpu.memory_space<vmem>>, %arg11: memref<1x1x32xf32, #tpu.memory_space<vmem>>, %arg12: memref<1x1x32xf32, #tpu.memory_space<vmem>>, %arg13: memref<1x1x32xf32, #tpu.memory_space<vmem>>, %arg14: memref<1x32x64xbf16, #tpu.memory_space<vmem>>, %arg15: memref<1x1x64xf32, #tpu.memory_space<vmem>>, %arg16: memref<1x64x32xbf16, #tpu.memory_space<vmem>>, %arg17: memref<1x1x32xf32, #tpu.memory_space<vmem>>, %arg18: memref<1x1x32xf32, #tpu.memory_space<vmem>>, %arg19: memref<1x1x32xf32, #tpu.memory_space<vmem>>, %arg20: memref<16x32xf32, #tpu.memory_space<vmem>>, %arg21: memref<16x32xf32, #tpu.memory_space<vmem>>, %arg22: memref<16x32xf32, #tpu.memory_space<vmem>>) attributes {dimension_semantics = [#tpu.dimension_semantics<arbitrary>], iteration_bounds = array<i64: 2>, scalar_prefetch = 0 : i64, scratch_operands = 2 : i64, tpu.core_type = #tpu.core_type<tc>, window_params = [{pipeline_mode = #tpu.pipeline_mode<synchronous>, transform_indices = @transform_0, window_bounds = array<i64: 16, 32>}, {pipeline_mode = #tpu.pipeline_mode<synchronous>, transform_indices = @transform_1, window_bounds = array<i64: 16, 1>}, {pipeline_mode = #tpu.pipeline_mode<synchronous>, transform_indices = @transform_2, window_bounds = array<i64: 1, 16>}, {transform_indices = @transform_3, window_bounds = array<i64: 1, 32, 32>}, {transform_indices = @transform_4, window_bounds = array<i64: 1, 1, 32>}, {transform_indices = @transform_5, window_bounds = array<i64: 1, 32, 32>}, {transform_indices = @transform_6, window_bounds = array<i64: 1, 1, 32>}, {transform_indices = @transform_7, window_bounds = array<i64: 1, 32, 32>}, {transform_indices = @transform_8, window_bounds = array<i64: 1, 1, 32>}, {transform_indices = @transform_9, window_bounds = array<i64: 1, 32, 32>}, {transform_indices = @transform_10, window_bounds = array<i64: 1, 1, 32>}, {transform_indices = @transform_11, window_bounds = array<i64: 1, 1, 32>}, {transform_indices = @transform_12, window_bounds = array<i64: 1, 1, 32>}, {transform_indices = @transform_13, window_bounds = array<i64: 1, 32, 64>}, {transform_indices = @transform_14, window_bounds = array<i64: 1, 1, 64>}, {transform_indices = @transform_15, window_bounds = array<i64: 1, 64, 32>}, {transform_indices = @transform_16, window_bounds = array<i64: 1, 1, 32>}, {transform_indices = @transform_17, window_bounds = array<i64: 1, 1, 32>}, {transform_indices = @transform_18, window_bounds = array<i64: 1, 1, 32>}, {pipeline_mode = #tpu.pipeline_mode<synchronous>, transform_indices = @transform_19, window_bounds = array<i64: 16, 32>}]} {
    %c0_i32 = arith.constant 0 : i32
    %0 = arith.cmpi eq, %arg0, %c0_i32 : i32
    %1 = arith.extui %0 : i1 to i32
    %c0_i32_0 = arith.constant 0 : i32
    %2 = arith.cmpi ne, %1, %c0_i32_0 : i32
    scf.if %2 {
      %c0_98 = arith.constant 0 : index
      %c0_99 = arith.constant 0 : index
      %191 = vector.load %arg1[%c0_98, %c0_99] : memref<16x32xf32, #tpu.memory_space<vmem>>, vector<16x32xf32>
      %c0_100 = arith.constant 0 : index
      %c0_101 = arith.constant 0 : index
      %192 = vector.load %arg21[%c0_100, %c0_101] : memref<16x32xf32, #tpu.memory_space<vmem>>, vector<16x32xf32>
      tpu.vector_store %arg21[%c0_100, %c0_101], %191 {strides = array<i32>} : memref<16x32xf32, #tpu.memory_space<vmem>>, vector<16x32xf32>,
    } else {
    }
    %c0 = arith.constant 0 : index
    %c0_1 = arith.constant 0 : index
    %3 = vector.load %arg21[%c0, %c0_1] : memref<16x32xf32, #tpu.memory_space<vmem>>, vector<16x32xf32>
    %c0_2 = arith.constant 0 : index
    %c0_3 = arith.constant 0 : index
    %4 = vector.load %arg2[%c0_2, %c0_3] : memref<16x1xi32, #tpu.memory_space<vmem>>, vector<16x1xi32>
    %c0_4 = arith.constant 0 : index
    %c0_5 = arith.constant 0 : index
    %5 = vector.load %arg3[%c0_4, %c0_5] : memref<1x16xi32, #tpu.memory_space<vmem>>, vector<1x16xi32>
    %6 = vector.broadcast %4 : vector<16x1xi32> to vector<16x16xi32>
    %7 = vector.broadcast %5 : vector<1x16xi32> to vector<16x16xi32>
    %8 = arith.cmpi eq, %6, %7 : vector<16x16xi32>
    %cst = arith.constant 0.000000e+00 : f32
    %cst_6 = arith.constant -1.000000e+30 : f32
    %9 = vector.broadcast %cst : f32 to vector<16x16xf32>
    %10 = vector.broadcast %cst_6 : f32 to vector<16x16xf32>
    %11 = arith.select %8, %9, %10 : vector<16x16xi1>, vector<16x16xf32>
    %12 = arith.truncf %3 : vector<16x32xf32> to vector<16x32xbf16>
    %c0_7 = arith.constant 0 : index
    %c0_8 = arith.constant 0 : index
    %c0_9 = arith.constant 0 : index
    %13 = vector.load %arg4[%c0_7, %c0_8, %c0_9] : memref<1x32x32xbf16, #tpu.memory_space<vmem>>, vector<1x32x32xbf16>
    %14 = vector.shape_cast %13 : vector<1x32x32xbf16> to vector<32x32xbf16>
    %cst_10 = arith.constant dense<0.000000e+00> : vector<16x32xf32>
    %15 = tpu.matmul %12, %14, %cst_10 {dimension_numbers = #tpu.dot_dimension_numbers<[1], [0], [0], [1], [0, 0, 1, 1], [], []>} : vector<16x32xbf16>, vector<32x32xbf16>, vector<16x32xf32> -> vector<16x32xf32>
    %c0_11 = arith.constant 0 : index
    %c0_12 = arith.constant 0 : index
    %c0_13 = arith.constant 0 : index
    %16 = vector.load %arg5[%c0_11, %c0_12, %c0_13] : memref<1x1x32xf32, #tpu.memory_space<vmem>>, vector<1x1x32xf32>
    %17 = vector.shape_cast %16 : vector<1x1x32xf32> to vector<1x32xf32>
    %18 = vector.broadcast %17 : vector<1x32xf32> to vector<16x32xf32>
    %19 = arith.addf %15, %18 : vector<16x32xf32>
    %c0_14 = arith.constant 0 : index
    %c0_15 = arith.constant 0 : index
    %c0_16 = arith.constant 0 : index
    %20 = vector.load %arg6[%c0_14, %c0_15, %c0_16] : memref<1x32x32xbf16, #tpu.memory_space<vmem>>, vector<1x32x32xbf16>
    %21 = vector.shape_cast %20 : vector<1x32x32xbf16> to vector<32x32xbf16>
    %cst_17 = arith.constant dense<0.000000e+00> : vector<16x32xf32>
    %22 = tpu.matmul %12, %21, %cst_17 {dimension_numbers = #tpu.dot_dimension_numbers<[1], [0], [0], [1], [0, 0, 1, 1], [], []>} : vector<16x32xbf16>, vector<32x32xbf16>, vector<16x32xf32> -> vector<16x32xf32>
    %c0_18 = arith.constant 0 : index
    %c0_19 = arith.constant 0 : index
    %c0_20 = arith.constant 0 : index
    %23 = vector.load %arg7[%c0_18, %c0_19, %c0_20] : memref<1x1x32xf32, #tpu.memory_space<vmem>>, vector<1x1x32xf32>
    %24 = vector.shape_cast %23 : vector<1x1x32xf32> to vector<1x32xf32>
    %25 = vector.broadcast %24 : vector<1x32xf32> to vector<16x32xf32>
    %26 = arith.addf %22, %25 : vector<16x32xf32>
    %c0_21 = arith.constant 0 : index
    %c0_22 = arith.constant 0 : index
    %c0_23 = arith.constant 0 : index
    %27 = vector.load %arg8[%c0_21, %c0_22, %c0_23] : memref<1x32x32xbf16, #tpu.memory_space<vmem>>, vector<1x32x32xbf16>
    %28 = vector.shape_cast %27 : vector<1x32x32xbf16> to vector<32x32xbf16>
    %cst_24 = arith.constant dense<0.000000e+00> : vector<16x32xf32>
    %29 = tpu.matmul %12, %28, %cst_24 {dimension_numbers = #tpu.dot_dimension_numbers<[1], [0], [0], [1], [0, 0, 1, 1], [], []>} : vector<16x32xbf16>, vector<32x32xbf16>, vector<16x32xf32> -> vector<16x32xf32>
    %c0_25 = arith.constant 0 : index
    %c0_26 = arith.constant 0 : index
    %c0_27 = arith.constant 0 : index
    %30 = vector.load %arg9[%c0_25, %c0_26, %c0_27] : memref<1x1x32xf32, #tpu.memory_space<vmem>>, vector<1x1x32xf32>
    %31 = vector.shape_cast %30 : vector<1x1x32xf32> to vector<1x32xf32>
    %32 = vector.broadcast %31 : vector<1x32xf32> to vector<16x32xf32>
    %33 = arith.addf %29, %32 : vector<16x32xf32>
    %c0_28 = arith.constant 0 : index
    %c0_29 = arith.constant 0 : index
    %c0_30 = arith.constant 0 : index
    %34 = vector.load %arg10[%c0_28, %c0_29, %c0_30] : memref<1x32x32xbf16, #tpu.memory_space<vmem>>, vector<1x32x32xbf16>
    %35 = vector.shape_cast %34 : vector<1x32x32xbf16> to vector<32x32xbf16>
    %c0_31 = arith.constant 0 : index
    %c0_32 = arith.constant 0 : index
    %c0_33 = arith.constant 0 : index
    %36 = vector.load %arg11[%c0_31, %c0_32, %c0_33] : memref<1x1x32xf32, #tpu.memory_space<vmem>>, vector<1x1x32xf32>
    %37 = vector.shape_cast %36 : vector<1x1x32xf32> to vector<1x32xf32>
    %38 = arith.truncf %19 : vector<16x32xf32> to vector<16x32xbf16>
    %39 = tpu.transpose %26, [1, 0] : vector<16x32xf32> -> vector<32x16xf32>
    %40 = arith.truncf %39 : vector<32x16xf32> to vector<32x16xbf16>
    %41 = arith.truncf %33 : vector<16x32xf32> to vector<16x32xbf16>
    %42 = vector.extract_strided_slice %38 {offsets = [0, 0], sizes = [16, 8], strides = [1, 1]} : vector<16x32xbf16> to vector<16x8xbf16>
    %43 = vector.extract_strided_slice %40 {offsets = [0, 0], sizes = [8, 16], strides = [1, 1]} : vector<32x16xbf16> to vector<8x16xbf16>
    %cst_34 = arith.constant dense<0.000000e+00> : vector<16x16xf32>
    %44 = tpu.matmul %42, %43, %cst_34 {dimension_numbers = #tpu.dot_dimension_numbers<[1], [0], [0], [1], [0, 0, 1, 1], [], []>} : vector<16x8xbf16>, vector<8x16xbf16>, vector<16x16xf32> -> vector<16x16xf32>
    %45 = arith.addf %44, %11 : vector<16x16xf32>
    %cst_35 = arith.constant dense<0xFF800000> : vector<16xf32>
    %46 = vector.multi_reduction <maximumf>, %45, %cst_35 [1] : vector<16x16xf32> to vector<16xf32>
    %47 = vector.shape_cast %46 : vector<16xf32> to vector<16x1xf32>
    %48 = vector.broadcast %47 : vector<16x1xf32> to vector<16x16xf32>
    %49 = arith.subf %45, %48 : vector<16x16xf32>
    %50 = math.exp %49 : vector<16x16xf32>
    %cst_36 = arith.constant dense<0.000000e+00> : vector<16xf32>
    %51 = vector.multi_reduction <add>, %50, %cst_36 [1] : vector<16x16xf32> to vector<16xf32>
    %52 = vector.shape_cast %51 : vector<16xf32> to vector<16x1xf32>
    %53 = tpu.reciprocal %52 {approx = true} : vector<16x1xf32> -> vector<16x1xf32>
    %54 = vector.broadcast %53 : vector<16x1xf32> to vector<16x16xf32>
    %55 = arith.mulf %50, %54 : vector<16x16xf32>
    %56 = arith.truncf %55 : vector<16x16xf32> to vector<16x16xbf16>
    %57 = vector.extract_strided_slice %41 {offsets = [0, 0], sizes = [16, 8], strides = [1, 1]} : vector<16x32xbf16> to vector<16x8xbf16>
    %cst_37 = arith.constant dense<0.000000e+00> : vector<16x8xf32>
    %58 = tpu.matmul %56, %57, %cst_37 {dimension_numbers = #tpu.dot_dimension_numbers<[1], [0], [0], [1], [0, 0, 1, 1], [], []>} : vector<16x16xbf16>, vector<16x8xbf16>, vector<16x8xf32> -> vector<16x8xf32>
    %c0_38 = arith.constant 0 : index
    %c0_39 = arith.constant 0 : index
    %59 = vector.load %arg22[%c0_38, %c0_39] : memref<16x32xf32, #tpu.memory_space<vmem>>, vector<16x8xf32>
    tpu.vector_store %arg22[%c0_38, %c0_39], %58 {strides = array<i32>} : memref<16x32xf32, #tpu.memory_space<vmem>>, vector<16x8xf32>,
    %60 = vector.extract_strided_slice %38 {offsets = [0, 8], sizes = [16, 8], strides = [1, 1]} : vector<16x32xbf16> to vector<16x8xbf16>
    %61 = vector.extract_strided_slice %40 {offsets = [8, 0], sizes = [8, 16], strides = [1, 1]} : vector<32x16xbf16> to vector<8x16xbf16>
    %cst_40 = arith.constant dense<0.000000e+00> : vector<16x16xf32>
    %62 = tpu.matmul %60, %61, %cst_40 {dimension_numbers = #tpu.dot_dimension_numbers<[1], [0], [0], [1], [0, 0, 1, 1], [], []>} : vector<16x8xbf16>, vector<8x16xbf16>, vector<16x16xf32> -> vector<16x16xf32>
    %63 = arith.addf %62, %11 : vector<16x16xf32>
    %cst_41 = arith.constant dense<0xFF800000> : vector<16xf32>
    %64 = vector.multi_reduction <maximumf>, %63, %cst_41 [1] : vector<16x16xf32> to vector<16xf32>
    %65 = vector.shape_cast %64 : vector<16xf32> to vector<16x1xf32>
    %66 = vector.broadcast %65 : vector<16x1xf32> to vector<16x16xf32>
    %67 = arith.subf %63, %66 : vector<16x16xf32>
    %68 = math.exp %67 : vector<16x16xf32>
    %cst_42 = arith.constant dense<0.000000e+00> : vector<16xf32>
    %69 = vector.multi_reduction <add>, %68, %cst_42 [1] : vector<16x16xf32> to vector<16xf32>
    %70 = vector.shape_cast %69 : vector<16xf32> to vector<16x1xf32>
    %71 = tpu.reciprocal %70 {approx = true} : vector<16x1xf32> -> vector<16x1xf32>
    %72 = vector.broadcast %71 : vector<16x1xf32> to vector<16x16xf32>
    %73 = arith.mulf %68, %72 : vector<16x16xf32>
    %74 = arith.truncf %73 : vector<16x16xf32> to vector<16x16xbf16>
    %75 = vector.extract_strided_slice %41 {offsets = [0, 8], sizes = [16, 8], strides = [1, 1]} : vector<16x32xbf16> to vector<16x8xbf16>
    %cst_43 = arith.constant dense<0.000000e+00> : vector<16x8xf32>
    %76 = tpu.matmul %74, %75, %cst_43 {dimension_numbers = #tpu.dot_dimension_numbers<[1], [0], [0], [1], [0, 0, 1, 1], [], []>} : vector<16x16xbf16>, vector<16x8xbf16>, vector<16x8xf32> -> vector<16x8xf32>
    %c0_44 = arith.constant 0 : index
    %c8 = arith.constant 8 : index
    %77 = vector.load %arg22[%c0_44, %c8] : memref<16x32xf32, #tpu.memory_space<vmem>>, vector<16x8xf32>
    tpu.vector_store %arg22[%c0_44, %c8], %76 {strides = array<i32>} : memref<16x32xf32, #tpu.memory_space<vmem>>, vector<16x8xf32>,
    %78 = vector.extract_strided_slice %38 {offsets = [0, 16], sizes = [16, 8], strides = [1, 1]} : vector<16x32xbf16> to vector<16x8xbf16>
    %79 = vector.extract_strided_slice %40 {offsets = [16, 0], sizes = [8, 16], strides = [1, 1]} : vector<32x16xbf16> to vector<8x16xbf16>
    %cst_45 = arith.constant dense<0.000000e+00> : vector<16x16xf32>
    %80 = tpu.matmul %78, %79, %cst_45 {dimension_numbers = #tpu.dot_dimension_numbers<[1], [0], [0], [1], [0, 0, 1, 1], [], []>} : vector<16x8xbf16>, vector<8x16xbf16>, vector<16x16xf32> -> vector<16x16xf32>
    %81 = arith.addf %80, %11 : vector<16x16xf32>
    %cst_46 = arith.constant dense<0xFF800000> : vector<16xf32>
    %82 = vector.multi_reduction <maximumf>, %81, %cst_46 [1] : vector<16x16xf32> to vector<16xf32>
    %83 = vector.shape_cast %82 : vector<16xf32> to vector<16x1xf32>
    %84 = vector.broadcast %83 : vector<16x1xf32> to vector<16x16xf32>
    %85 = arith.subf %81, %84 : vector<16x16xf32>
    %86 = math.exp %85 : vector<16x16xf32>
    %cst_47 = arith.constant dense<0.000000e+00> : vector<16xf32>
    %87 = vector.multi_reduction <add>, %86, %cst_47 [1] : vector<16x16xf32> to vector<16xf32>
    %88 = vector.shape_cast %87 : vector<16xf32> to vector<16x1xf32>
    %89 = tpu.reciprocal %88 {approx = true} : vector<16x1xf32> -> vector<16x1xf32>
    %90 = vector.broadcast %89 : vector<16x1xf32> to vector<16x16xf32>
    %91 = arith.mulf %86, %90 : vector<16x16xf32>
    %92 = arith.truncf %91 : vector<16x16xf32> to vector<16x16xbf16>
    %93 = vector.extract_strided_slice %41 {offsets = [0, 16], sizes = [16, 8], strides = [1, 1]} : vector<16x32xbf16> to vector<16x8xbf16>
    %cst_48 = arith.constant dense<0.000000e+00> : vector<16x8xf32>
    %94 = tpu.matmul %92, %93, %cst_48 {dimension_numbers = #tpu.dot_dimension_numbers<[1], [0], [0], [1], [0, 0, 1, 1], [], []>} : vector<16x16xbf16>, vector<16x8xbf16>, vector<16x8xf32> -> vector<16x8xf32>
    %c0_49 = arith.constant 0 : index
    %c16 = arith.constant 16 : index
    %95 = vector.load %arg22[%c0_49, %c16] : memref<16x32xf32, #tpu.memory_space<vmem>>, vector<16x8xf32>
    tpu.vector_store %arg22[%c0_49, %c16], %94 {strides = array<i32>} : memref<16x32xf32, #tpu.memory_space<vmem>>, vector<16x8xf32>,
    %96 = vector.extract_strided_slice %38 {offsets = [0, 24], sizes = [16, 8], strides = [1, 1]} : vector<16x32xbf16> to vector<16x8xbf16>
    %97 = vector.extract_strided_slice %40 {offsets = [24, 0], sizes = [8, 16], strides = [1, 1]} : vector<32x16xbf16> to vector<8x16xbf16>
    %cst_50 = arith.constant dense<0.000000e+00> : vector<16x16xf32>
    %98 = tpu.matmul %96, %97, %cst_50 {dimension_numbers = #tpu.dot_dimension_numbers<[1], [0], [0], [1], [0, 0, 1, 1], [], []>} : vector<16x8xbf16>, vector<8x16xbf16>, vector<16x16xf32> -> vector<16x16xf32>
    %99 = arith.addf %98, %11 : vector<16x16xf32>
    %cst_51 = arith.constant dense<0xFF800000> : vector<16xf32>
    %100 = vector.multi_reduction <maximumf>, %99, %cst_51 [1] : vector<16x16xf32> to vector<16xf32>
    %101 = vector.shape_cast %100 : vector<16xf32> to vector<16x1xf32>
    %102 = vector.broadcast %101 : vector<16x1xf32> to vector<16x16xf32>
    %103 = arith.subf %99, %102 : vector<16x16xf32>
    %104 = math.exp %103 : vector<16x16xf32>
    %cst_52 = arith.constant dense<0.000000e+00> : vector<16xf32>
    %105 = vector.multi_reduction <add>, %104, %cst_52 [1] : vector<16x16xf32> to vector<16xf32>
    %106 = vector.shape_cast %105 : vector<16xf32> to vector<16x1xf32>
    %107 = tpu.reciprocal %106 {approx = true} : vector<16x1xf32> -> vector<16x1xf32>
    %108 = vector.broadcast %107 : vector<16x1xf32> to vector<16x16xf32>
    %109 = arith.mulf %104, %108 : vector<16x16xf32>
    %110 = arith.truncf %109 : vector<16x16xf32> to vector<16x16xbf16>
    %111 = vector.extract_strided_slice %41 {offsets = [0, 24], sizes = [16, 8], strides = [1, 1]} : vector<16x32xbf16> to vector<16x8xbf16>
    %cst_53 = arith.constant dense<0.000000e+00> : vector<16x8xf32>
    %112 = tpu.matmul %110, %111, %cst_53 {dimension_numbers = #tpu.dot_dimension_numbers<[1], [0], [0], [1], [0, 0, 1, 1], [], []>} : vector<16x16xbf16>, vector<16x8xbf16>, vector<16x8xf32> -> vector<16x8xf32>
    %c0_54 = arith.constant 0 : index
    %c24 = arith.constant 24 : index
    %113 = vector.load %arg22[%c0_54, %c24] : memref<16x32xf32, #tpu.memory_space<vmem>>, vector<16x8xf32>
    tpu.vector_store %arg22[%c0_54, %c24], %112 {strides = array<i32>} : memref<16x32xf32, #tpu.memory_space<vmem>>, vector<16x8xf32>,
    %c0_55 = arith.constant 0 : index
    %c0_56 = arith.constant 0 : index
    %114 = vector.load %arg22[%c0_55, %c0_56] : memref<16x32xf32, #tpu.memory_space<vmem>>, vector<16x32xf32>
    %115 = arith.truncf %114 : vector<16x32xf32> to vector<16x32xbf16>
    %cst_57 = arith.constant dense<0.000000e+00> : vector<16x32xf32>
    %116 = tpu.matmul %115, %35, %cst_57 {dimension_numbers = #tpu.dot_dimension_numbers<[1], [0], [0], [1], [0, 0, 1, 1], [], []>} : vector<16x32xbf16>, vector<32x32xbf16>, vector<16x32xf32> -> vector<16x32xf32>
    %117 = vector.broadcast %37 : vector<1x32xf32> to vector<16x32xf32>
    %118 = arith.addf %116, %117 : vector<16x32xf32>
    %c0_58 = arith.constant 0 : index
    %c0_59 = arith.constant 0 : index
    %c0_60 = arith.constant 0 : index
    %119 = vector.load %arg12[%c0_58, %c0_59, %c0_60] : memref<1x1x32xf32, #tpu.memory_space<vmem>>, vector<1x1x32xf32>
    %120 = vector.shape_cast %119 : vector<1x1x32xf32> to vector<1x32xf32>
    %c0_61 = arith.constant 0 : index
    %c0_62 = arith.constant 0 : index
    %c0_63 = arith.constant 0 : index
    %121 = vector.load %arg13[%c0_61, %c0_62, %c0_63] : memref<1x1x32xf32, #tpu.memory_space<vmem>>, vector<1x1x32xf32>
    %122 = vector.shape_cast %121 : vector<1x1x32xf32> to vector<1x32xf32>
    %123 = arith.addf %3, %118 : vector<16x32xf32>
    %cst_64 = arith.constant dense<0.000000e+00> : vector<16xf32>
    %124 = vector.multi_reduction <add>, %123, %cst_64 [1] : vector<16x32xf32> to vector<16xf32>
    %125 = vector.shape_cast %124 : vector<16xf32> to vector<16x1xf32>
    %cst_65 = arith.constant 3.200000e+01 : f32
    %126 = vector.broadcast %cst_65 : f32 to vector<16x1xf32>
    %127 = arith.divf %125, %126 : vector<16x1xf32>
    %128 = vector.broadcast %127 : vector<16x1xf32> to vector<16x32xf32>
    %129 = arith.subf %123, %128 : vector<16x32xf32>
    %130 = arith.mulf %129, %129 : vector<16x32xf32>
    %cst_66 = arith.constant dense<0.000000e+00> : vector<16xf32>
    %131 = vector.multi_reduction <add>, %130, %cst_66 [1] : vector<16x32xf32> to vector<16xf32>
    %132 = vector.shape_cast %131 : vector<16xf32> to vector<16x1xf32>
    %cst_67 = arith.constant 3.200000e+01 : f32
    %133 = vector.broadcast %cst_67 : f32 to vector<16x1xf32>
    %134 = arith.divf %132, %133 : vector<16x1xf32>
    %cst_68 = arith.constant 9.99999974E-6 : f32
    %135 = vector.broadcast %cst_68 : f32 to vector<16x1xf32>
    %136 = arith.addf %134, %135 : vector<16x1xf32>
    %137 = math.rsqrt %136 : vector<16x1xf32>
    %138 = vector.broadcast %137 : vector<16x1xf32> to vector<16x32xf32>
    %139 = arith.mulf %129, %138 : vector<16x32xf32>
    %140 = vector.broadcast %120 : vector<1x32xf32> to vector<16x32xf32>
    %141 = arith.mulf %139, %140 : vector<16x32xf32>
    %142 = vector.broadcast %122 : vector<1x32xf32> to vector<16x32xf32>
    %143 = arith.addf %141, %142 : vector<16x32xf32>
    %c0_69 = arith.constant 0 : index
    %c0_70 = arith.constant 0 : index
    %c0_71 = arith.constant 0 : index
    %144 = vector.load %arg14[%c0_69, %c0_70, %c0_71] : memref<1x32x64xbf16, #tpu.memory_space<vmem>>, vector<1x32x64xbf16>
    %145 = vector.shape_cast %144 : vector<1x32x64xbf16> to vector<32x64xbf16>
    %c0_72 = arith.constant 0 : index
    %c0_73 = arith.constant 0 : index
    %c0_74 = arith.constant 0 : index
    %146 = vector.load %arg15[%c0_72, %c0_73, %c0_74] : memref<1x1x64xf32, #tpu.memory_space<vmem>>, vector<1x1x64xf32>
    %147 = vector.shape_cast %146 : vector<1x1x64xf32> to vector<1x64xf32>
    %c0_75 = arith.constant 0 : index
    %c0_76 = arith.constant 0 : index
    %c0_77 = arith.constant 0 : index
    %148 = vector.load %arg16[%c0_75, %c0_76, %c0_77] : memref<1x64x32xbf16, #tpu.memory_space<vmem>>, vector<1x64x32xbf16>
    %149 = vector.shape_cast %148 : vector<1x64x32xbf16> to vector<64x32xbf16>
    %c0_78 = arith.constant 0 : index
    %c0_79 = arith.constant 0 : index
    %c0_80 = arith.constant 0 : index
    %150 = vector.load %arg17[%c0_78, %c0_79, %c0_80] : memref<1x1x32xf32, #tpu.memory_space<vmem>>, vector<1x1x32xf32>
    %151 = vector.shape_cast %150 : vector<1x1x32xf32> to vector<1x32xf32>
    %c0_81 = arith.constant 0 : index
    %c0_82 = arith.constant 0 : index
    %c0_83 = arith.constant 0 : index
    %152 = vector.load %arg18[%c0_81, %c0_82, %c0_83] : memref<1x1x32xf32, #tpu.memory_space<vmem>>, vector<1x1x32xf32>
    %153 = vector.shape_cast %152 : vector<1x1x32xf32> to vector<1x32xf32>
    %c0_84 = arith.constant 0 : index
    %c0_85 = arith.constant 0 : index
    %c0_86 = arith.constant 0 : index
    %154 = vector.load %arg19[%c0_84, %c0_85, %c0_86] : memref<1x1x32xf32, #tpu.memory_space<vmem>>, vector<1x1x32xf32>
    %155 = vector.shape_cast %154 : vector<1x1x32xf32> to vector<1x32xf32>
    %156 = arith.truncf %143 : vector<16x32xf32> to vector<16x32xbf16>
    %cst_87 = arith.constant dense<0.000000e+00> : vector<16x64xf32>
    %157 = tpu.matmul %156, %145, %cst_87 {dimension_numbers = #tpu.dot_dimension_numbers<[1], [0], [0], [1], [0, 0, 1, 1], [], []>} : vector<16x32xbf16>, vector<32x64xbf16>, vector<16x64xf32> -> vector<16x64xf32>
    %158 = vector.broadcast %147 : vector<1x64xf32> to vector<16x64xf32>
    %159 = arith.addf %157, %158 : vector<16x64xf32>
    %cst_88 = arith.constant 0.000000e+00 : f32
    %160 = vector.broadcast %cst_88 : f32 to vector<16x64xf32>
    %161 = arith.maximumf %159, %160 : vector<16x64xf32>
    %162 = arith.truncf %161 : vector<16x64xf32> to vector<16x64xbf16>
    %cst_89 = arith.constant dense<0.000000e+00> : vector<16x32xf32>
    %163 = tpu.matmul %162, %149, %cst_89 {dimension_numbers = #tpu.dot_dimension_numbers<[1], [0], [0], [1], [0, 0, 1, 1], [], []>} : vector<16x64xbf16>, vector<64x32xbf16>, vector<16x32xf32> -> vector<16x32xf32>
    %164 = vector.broadcast %151 : vector<1x32xf32> to vector<16x32xf32>
    %165 = arith.addf %163, %164 : vector<16x32xf32>
    %166 = arith.addf %143, %165 : vector<16x32xf32>
    %cst_90 = arith.constant dense<0.000000e+00> : vector<16xf32>
    %167 = vector.multi_reduction <add>, %166, %cst_90 [1] : vector<16x32xf32> to vector<16xf32>
    %168 = vector.shape_cast %167 : vector<16xf32> to vector<16x1xf32>
    %cst_91 = arith.constant 3.200000e+01 : f32
    %169 = vector.broadcast %cst_91 : f32 to vector<16x1xf32>
    %170 = arith.divf %168, %169 : vector<16x1xf32>
    %171 = vector.broadcast %170 : vector<16x1xf32> to vector<16x32xf32>
    %172 = arith.subf %166, %171 : vector<16x32xf32>
    %173 = arith.mulf %172, %172 : vector<16x32xf32>
    %cst_92 = arith.constant dense<0.000000e+00> : vector<16xf32>
    %174 = vector.multi_reduction <add>, %173, %cst_92 [1] : vector<16x32xf32> to vector<16xf32>
    %175 = vector.shape_cast %174 : vector<16xf32> to vector<16x1xf32>
    %cst_93 = arith.constant 3.200000e+01 : f32
    %176 = vector.broadcast %cst_93 : f32 to vector<16x1xf32>
    %177 = arith.divf %175, %176 : vector<16x1xf32>
    %cst_94 = arith.constant 9.99999974E-6 : f32
    %178 = vector.broadcast %cst_94 : f32 to vector<16x1xf32>
    %179 = arith.addf %177, %178 : vector<16x1xf32>
    %180 = math.rsqrt %179 : vector<16x1xf32>
    %181 = vector.broadcast %180 : vector<16x1xf32> to vector<16x32xf32>
    %182 = arith.mulf %172, %181 : vector<16x32xf32>
    %183 = vector.broadcast %153 : vector<1x32xf32> to vector<16x32xf32>
    %184 = arith.mulf %182, %183 : vector<16x32xf32>
    %185 = vector.broadcast %155 : vector<1x32xf32> to vector<16x32xf32>
    %186 = arith.addf %184, %185 : vector<16x32xf32>
    %c0_95 = arith.constant 0 : index
    %c0_96 = arith.constant 0 : index
    %187 = vector.load %arg21[%c0_95, %c0_96] : memref<16x32xf32, #tpu.memory_space<vmem>>, vector<16x32xf32>
    tpu.vector_store %arg21[%c0_95, %c0_96], %186 {strides = array<i32>} : memref<16x32xf32, #tpu.memory_space<vmem>>, vector<16x32xf32>,
    %c1_i32 = arith.constant 1 : i32
    %188 = arith.cmpi eq, %arg0, %c1_i32 : i32
    %189 = arith.extui %188 : i1 to i32
    %c0_i32_97 = arith.constant 0 : i32
    %190 = arith.cmpi ne, %189, %c0_i32_97 : i32
    scf.if %190 {
      %c0_98 = arith.constant 0 : index
      %c0_99 = arith.constant 0 : index
      %191 = vector.load %arg21[%c0_98, %c0_99] : memref<16x32xf32, #tpu.memory_space<vmem>>, vector<16x32xf32>
      %c0_100 = arith.constant 0 : index
      %c0_101 = arith.constant 0 : index
      %192 = vector.load %arg20[%c0_100, %c0_101] : memref<16x32xf32, #tpu.memory_space<vmem>>, vector<16x32xf32>
      tpu.vector_store %arg20[%c0_100, %c0_101], %191 {strides = array<i32>} : memref<16x32xf32, #tpu.memory_space<vmem>>, vector<16x32xf32>,
    } else {
    }
    return
  }
  func.func @transform_0(%arg0: i32) -> (i32, i32) {
    %c0_i32 = arith.constant 0 : i32
    %c0_i32_0 = arith.constant 0 : i32
    %c0_i32_1 = arith.constant 0 : i32
    return %c0_i32, %c0_i32_0 : i32, i32
  }
  func.func @transform_1(%arg0: i32) -> (i32, i32) {
    %c0_i32 = arith.constant 0 : i32
    %c0_i32_0 = arith.constant 0 : i32
    %c0_i32_1 = arith.constant 0 : i32
    return %c0_i32, %c0_i32_0 : i32, i32
  }
  func.func @transform_2(%arg0: i32) -> (i32, i32) {
    %c0_i32 = arith.constant 0 : i32
    %c0_i32_0 = arith.constant 0 : i32
    %c0_i32_1 = arith.constant 0 : i32
    return %c0_i32, %c0_i32_0 : i32, i32
  }
  func.func @transform_3(%arg0: i32) -> (i32, i32, i32) {
    %c0_i32 = arith.constant 0 : i32
    %c0_i32_0 = arith.constant 0 : i32
    %c0_i32_1 = arith.constant 0 : i32
    return %arg0, %c0_i32, %c0_i32_0 : i32, i32, i32
  }
  func.func @transform_4(%arg0: i32) -> (i32, i32, i32) {
    %c0_i32 = arith.constant 0 : i32
    %c0_i32_0 = arith.constant 0 : i32
    %c0_i32_1 = arith.constant 0 : i32
    return %arg0, %c0_i32, %c0_i32_0 : i32, i32, i32
  }
  func.func @transform_5(%arg0: i32) -> (i32, i32, i32) {
    %c0_i32 = arith.constant 0 : i32
    %c0_i32_0 = arith.constant 0 : i32
    %c0_i32_1 = arith.constant 0 : i32
    return %arg0, %c0_i32, %c0_i32_0 : i32, i32, i32
  }
  func.func @transform_6(%arg0: i32) -> (i32, i32, i32) {
    %c0_i32 = arith.constant 0 : i32
    %c0_i32_0 = arith.constant 0 : i32
    %c0_i32_1 = arith.constant 0 : i32
    return %arg0, %c0_i32, %c0_i32_0 : i32, i32, i32
  }
  func.func @transform_7(%arg0: i32) -> (i32, i32, i32) {
    %c0_i32 = arith.constant 0 : i32
    %c0_i32_0 = arith.constant 0 : i32
    %c0_i32_1 = arith.constant 0 : i32
    return %arg0, %c0_i32, %c0_i32_0 : i32, i32, i32
  }
  func.func @transform_8(%arg0: i32) -> (i32, i32, i32) {
    %c0_i32 = arith.constant 0 : i32
    %c0_i32_0 = arith.constant 0 : i32
    %c0_i32_1 = arith.constant 0 : i32
    return %arg0, %c0_i32, %c0_i32_0 : i32, i32, i32
  }
  func.func @transform_9(%arg0: i32) -> (i32, i32, i32) {
    %c0_i32 = arith.constant 0 : i32
    %c0_i32_0 = arith.constant 0 : i32
    %c0_i32_1 = arith.constant 0 : i32
    return %arg0, %c0_i32, %c0_i32_0 : i32, i32, i32
  }
  func.func @transform_10(%arg0: i32) -> (i32, i32, i32) {
    %c0_i32 = arith.constant 0 : i32
    %c0_i32_0 = arith.constant 0 : i32
    %c0_i32_1 = arith.constant 0 : i32
    return %arg0, %c0_i32, %c0_i32_0 : i32, i32, i32
  }
  func.func @transform_11(%arg0: i32) -> (i32, i32, i32) {
    %c0_i32 = arith.constant 0 : i32
    %c0_i32_0 = arith.constant 0 : i32
    %c0_i32_1 = arith.constant 0 : i32
    return %arg0, %c0_i32, %c0_i32_0 : i32, i32, i32
  }
  func.func @transform_12(%arg0: i32) -> (i32, i32, i32) {
    %c0_i32 = arith.constant 0 : i32
    %c0_i32_0 = arith.constant 0 : i32
    %c0_i32_1 = arith.constant 0 : i32
    return %arg0, %c0_i32, %c0_i32_0 : i32, i32, i32
  }
  func.func @transform_13(%arg0: i32) -> (i32, i32, i32) {
    %c0_i32 = arith.constant 0 : i32
    %c0_i32_0 = arith.constant 0 : i32
    %c0_i32_1 = arith.constant 0 : i32
    return %arg0, %c0_i32, %c0_i32_0 : i32, i32, i32
  }
  func.func @transform_14(%arg0: i32) -> (i32, i32, i32) {
    %c0_i32 = arith.constant 0 : i32
    %c0_i32_0 = arith.constant 0 : i32
    %c0_i32_1 = arith.constant 0 : i32
    return %arg0, %c0_i32, %c0_i32_0 : i32, i32, i32
  }
  func.func @transform_15(%arg0: i32) -> (i32, i32, i32) {
    %c0_i32 = arith.constant 0 : i32
    %c0_i32_0 = arith.constant 0 : i32
    %c0_i32_1 = arith.constant 0 : i32
    return %arg0, %c0_i32, %c0_i32_0 : i32, i32, i32
  }
  func.func @transform_16(%arg0: i32) -> (i32, i32, i32) {
    %c0_i32 = arith.constant 0 : i32
    %c0_i32_0 = arith.constant 0 : i32
    %c0_i32_1 = arith.constant 0 : i32
    return %arg0, %c0_i32, %c0_i32_0 : i32, i32, i32
  }
  func.func @transform_17(%arg0: i32) -> (i32, i32, i32) {
    %c0_i32 = arith.constant 0 : i32
    %c0_i32_0 = arith.constant 0 : i32
    %c0_i32_1 = arith.constant 0 : i32
    return %arg0, %c0_i32, %c0_i32_0 : i32, i32, i32
  }
  func.func @transform_18(%arg0: i32) -> (i32, i32, i32) {
    %c0_i32 = arith.constant 0 : i32
    %c0_i32_0 = arith.constant 0 : i32
    %c0_i32_1 = arith.constant 0 : i32
    return %arg0, %c0_i32, %c0_i32_0 : i32, i32, i32
  }
  func.func @transform_19(%arg0: i32) -> (i32, i32) {
    %c0_i32 = arith.constant 0 : i32
    %c0_i32_0 = arith.constant 0 : i32
    %c0_i32_1 = arith.constant 0 : i32
    return %c0_i32, %c0_i32_0 : i32, i32
  }
}

module attributes {stable_mosaic.version = 11 : i64} {
  func.func @_linear_kernel(%arg0: memref<16x16xf32, #tpu.memory_space<vmem>>, %arg1: memref<16x32xbf16, #tpu.memory_space<vmem>>, %arg2: memref<1x32xf32, #tpu.memory_space<vmem>>, %arg3: memref<16x32xf32, #tpu.memory_space<vmem>>) attributes {dimension_semantics = [], scalar_prefetch = 0 : i64, scratch_operands = 0 : i64, tpu.core_type = #tpu.core_type<tc>} {
    %c0 = arith.constant 0 : index
    %c0_0 = arith.constant 0 : index
    %0 = vector.load %arg0[%c0, %c0_0] : memref<16x16xf32, #tpu.memory_space<vmem>>, vector<16x16xf32>
    %1 = arith.truncf %0 : vector<16x16xf32> to vector<16x16xbf16>
    %c0_1 = arith.constant 0 : index
    %c0_2 = arith.constant 0 : index
    %2 = vector.load %arg1[%c0_1, %c0_2] : memref<16x32xbf16, #tpu.memory_space<vmem>>, vector<16x32xbf16>
    %cst = arith.constant dense<0.000000e+00> : vector<16x32xf32>
    %3 = tpu.matmul %1, %2, %cst {dimension_numbers = #tpu.dot_dimension_numbers<[1], [0], [0], [1], [0, 0, 1, 1], [], []>} : vector<16x16xbf16>, vector<16x32xbf16>, vector<16x32xf32> -> vector<16x32xf32>
    %c0_3 = arith.constant 0 : index
    %c0_4 = arith.constant 0 : index
    %4 = vector.load %arg2[%c0_3, %c0_4] : memref<1x32xf32, #tpu.memory_space<vmem>>, vector<1x32xf32>
    %5 = vector.broadcast %4 : vector<1x32xf32> to vector<16x32xf32>
    %6 = arith.addf %3, %5 : vector<16x32xf32>
    %c0_5 = arith.constant 0 : index
    %c0_6 = arith.constant 0 : index
    %7 = vector.load %arg3[%c0_5, %c0_6] : memref<16x32xf32, #tpu.memory_space<vmem>>, vector<16x32xf32>
    tpu.vector_store %arg3[%c0_5, %c0_6], %6 {strides = array<i32>} : memref<16x32xf32, #tpu.memory_space<vmem>>, vector<16x32xf32>,
    return
  }
}

module attributes {stable_mosaic.version = 11 : i64} {
  func.func @_linear_kernel(%arg0: memref<16x6xf32, #tpu.memory_space<vmem>>, %arg1: memref<6x32xbf16, #tpu.memory_space<vmem>>, %arg2: memref<1x32xf32, #tpu.memory_space<vmem>>, %arg3: memref<16x32xf32, #tpu.memory_space<vmem>>) attributes {dimension_semantics = [], scalar_prefetch = 0 : i64, scratch_operands = 0 : i64, tpu.core_type = #tpu.core_type<tc>} {
    %c0 = arith.constant 0 : index
    %c0_0 = arith.constant 0 : index
    %0 = vector.load %arg0[%c0, %c0_0] : memref<16x6xf32, #tpu.memory_space<vmem>>, vector<16x6xf32>
    %1 = arith.truncf %0 : vector<16x6xf32> to vector<16x6xbf16>
    %c0_1 = arith.constant 0 : index
    %c0_2 = arith.constant 0 : index
    %2 = vector.load %arg1[%c0_1, %c0_2] : memref<6x32xbf16, #tpu.memory_space<vmem>>, vector<6x32xbf16>
    %cst = arith.constant dense<0.000000e+00> : vector<16x32xf32>
    %3 = tpu.matmul %1, %2, %cst {dimension_numbers = #tpu.dot_dimension_numbers<[1], [0], [0], [1], [0, 0, 1, 1], [], []>} : vector<16x6xbf16>, vector<6x32xbf16>, vector<16x32xf32> -> vector<16x32xf32>
    %c0_3 = arith.constant 0 : index
    %c0_4 = arith.constant 0 : index
    %4 = vector.load %arg2[%c0_3, %c0_4] : memref<1x32xf32, #tpu.memory_space<vmem>>, vector<1x32xf32>
    %5 = vector.broadcast %4 : vector<1x32xf32> to vector<16x32xf32>
    %6 = arith.addf %3, %5 : vector<16x32xf32>
    %c0_5 = arith.constant 0 : index
    %c0_6 = arith.constant 0 : index
    %7 = vector.load %arg3[%c0_5, %c0_6] : memref<16x32xf32, #tpu.memory_space<vmem>>, vector<16x32xf32>
    tpu.vector_store %arg3[%c0_5, %c0_6], %6 {strides = array<i32>} : memref<16x32xf32, #tpu.memory_space<vmem>>, vector<16x32xf32>,
    return
  }
}

module attributes {stable_mosaic.version = 11 : i64} {
  func.func @_decoder_stack_kernel(%arg0: i32, %arg1: memref<16x32xf32, #tpu.memory_space<vmem>>, %arg2: memref<16x32xf32, #tpu.memory_space<vmem>>, %arg3: memref<16x1xi32, #tpu.memory_space<vmem>>, %arg4: memref<1x16xi32, #tpu.memory_space<vmem>>, %arg5: memref<1x16xi32, #tpu.memory_space<vmem>>, %arg6: memref<1x32x32xbf16, #tpu.memory_space<vmem>>, %arg7: memref<1x1x32xf32, #tpu.memory_space<vmem>>, %arg8: memref<1x32x32xbf16, #tpu.memory_space<vmem>>, %arg9: memref<1x1x32xf32, #tpu.memory_space<vmem>>, %arg10: memref<1x32x32xbf16, #tpu.memory_space<vmem>>, %arg11: memref<1x1x32xf32, #tpu.memory_space<vmem>>, %arg12: memref<1x32x32xbf16, #tpu.memory_space<vmem>>, %arg13: memref<1x1x32xf32, #tpu.memory_space<vmem>>, %arg14: memref<1x1x32xf32, #tpu.memory_space<vmem>>, %arg15: memref<1x1x32xf32, #tpu.memory_space<vmem>>, %arg16: memref<1x32x32xbf16, #tpu.memory_space<vmem>>, %arg17: memref<1x1x32xf32, #tpu.memory_space<vmem>>, %arg18: memref<1x32x32xbf16, #tpu.memory_space<vmem>>, %arg19: memref<1x1x32xf32, #tpu.memory_space<vmem>>, %arg20: memref<1x32x32xbf16, #tpu.memory_space<vmem>>, %arg21: memref<1x1x32xf32, #tpu.memory_space<vmem>>, %arg22: memref<1x32x32xbf16, #tpu.memory_space<vmem>>, %arg23: memref<1x1x32xf32, #tpu.memory_space<vmem>>, %arg24: memref<1x1x32xf32, #tpu.memory_space<vmem>>, %arg25: memref<1x1x32xf32, #tpu.memory_space<vmem>>, %arg26: memref<1x32x64xbf16, #tpu.memory_space<vmem>>, %arg27: memref<1x1x64xf32, #tpu.memory_space<vmem>>, %arg28: memref<1x64x32xbf16, #tpu.memory_space<vmem>>, %arg29: memref<1x1x32xf32, #tpu.memory_space<vmem>>, %arg30: memref<1x1x32xf32, #tpu.memory_space<vmem>>, %arg31: memref<1x1x32xf32, #tpu.memory_space<vmem>>, %arg32: memref<16x32xf32, #tpu.memory_space<vmem>>, %arg33: memref<16x32xf32, #tpu.memory_space<vmem>>, %arg34: memref<16x32xf32, #tpu.memory_space<vmem>>) attributes {dimension_semantics = [#tpu.dimension_semantics<arbitrary>], iteration_bounds = array<i64: 2>, scalar_prefetch = 0 : i64, scratch_operands = 2 : i64, tpu.core_type = #tpu.core_type<tc>, window_params = [{pipeline_mode = #tpu.pipeline_mode<synchronous>, transform_indices = @transform_0, window_bounds = array<i64: 16, 32>}, {pipeline_mode = #tpu.pipeline_mode<synchronous>, transform_indices = @transform_1, window_bounds = array<i64: 16, 32>}, {pipeline_mode = #tpu.pipeline_mode<synchronous>, transform_indices = @transform_2, window_bounds = array<i64: 16, 1>}, {pipeline_mode = #tpu.pipeline_mode<synchronous>, transform_indices = @transform_3, window_bounds = array<i64: 1, 16>}, {pipeline_mode = #tpu.pipeline_mode<synchronous>, transform_indices = @transform_4, window_bounds = array<i64: 1, 16>}, {transform_indices = @transform_5, window_bounds = array<i64: 1, 32, 32>}, {transform_indices = @transform_6, window_bounds = array<i64: 1, 1, 32>}, {transform_indices = @transform_7, window_bounds = array<i64: 1, 32, 32>}, {transform_indices = @transform_8, window_bounds = array<i64: 1, 1, 32>}, {transform_indices = @transform_9, window_bounds = array<i64: 1, 32, 32>}, {transform_indices = @transform_10, window_bounds = array<i64: 1, 1, 32>}, {transform_indices = @transform_11, window_bounds = array<i64: 1, 32, 32>}, {transform_indices = @transform_12, window_bounds = array<i64: 1, 1, 32>}, {transform_indices = @transform_13, window_bounds = array<i64: 1, 1, 32>}, {transform_indices = @transform_14, window_bounds = array<i64: 1, 1, 32>}, {transform_indices = @transform_15, window_bounds = array<i64: 1, 32, 32>}, {transform_indices = @transform_16, window_bounds = array<i64: 1, 1, 32>}, {transform_indices = @transform_17, window_bounds = array<i64: 1, 32, 32>}, {transform_indices = @transform_18, window_bounds = array<i64: 1, 1, 32>}, {transform_indices = @transform_19, window_bounds = array<i64: 1, 32, 32>}, {transform_indices = @transform_20, window_bounds = array<i64: 1, 1, 32>}, {transform_indices = @transform_21, window_bounds = array<i64: 1, 32, 32>}, {transform_indices = @transform_22, window_bounds = array<i64: 1, 1, 32>}, {transform_indices = @transform_23, window_bounds = array<i64: 1, 1, 32>}, {transform_indices = @transform_24, window_bounds = array<i64: 1, 1, 32>}, {transform_indices = @transform_25, window_bounds = array<i64: 1, 32, 64>}, {transform_indices = @transform_26, window_bounds = array<i64: 1, 1, 64>}, {transform_indices = @transform_27, window_bounds = array<i64: 1, 64, 32>}, {transform_indices = @transform_28, window_bounds = array<i64: 1, 1, 32>}, {transform_indices = @transform_29, window_bounds = array<i64: 1, 1, 32>}, {transform_indices = @transform_30, window_bounds = array<i64: 1, 1, 32>}, {pipeline_mode = #tpu.pipeline_mode<synchronous>, transform_indices = @transform_31, window_bounds = array<i64: 16, 32>}]} {
    %c0_i32 = arith.constant 0 : i32
    %0 = arith.cmpi eq, %arg0, %c0_i32 : i32
    %1 = arith.extui %0 : i1 to i32
    %c0_i32_0 = arith.constant 0 : i32
    %2 = arith.cmpi ne, %1, %c0_i32_0 : i32
    scf.if %2 {
      %c0_171 = arith.constant 0 : index
      %c0_172 = arith.constant 0 : index
      %333 = vector.load %arg1[%c0_171, %c0_172] : memref<16x32xf32, #tpu.memory_space<vmem>>, vector<16x32xf32>
      %c0_173 = arith.constant 0 : index
      %c0_174 = arith.constant 0 : index
      %334 = vector.load %arg33[%c0_173, %c0_174] : memref<16x32xf32, #tpu.memory_space<vmem>>, vector<16x32xf32>
      tpu.vector_store %arg33[%c0_173, %c0_174], %333 {strides = array<i32>} : memref<16x32xf32, #tpu.memory_space<vmem>>, vector<16x32xf32>,
    } else {
    }
    %c0 = arith.constant 0 : index
    %c0_1 = arith.constant 0 : index
    %3 = vector.load %arg33[%c0, %c0_1] : memref<16x32xf32, #tpu.memory_space<vmem>>, vector<16x32xf32>
    %c0_2 = arith.constant 0 : index
    %c0_3 = arith.constant 0 : index
    %4 = vector.load %arg3[%c0_2, %c0_3] : memref<16x1xi32, #tpu.memory_space<vmem>>, vector<16x1xi32>
    %c0_4 = arith.constant 0 : index
    %c0_5 = arith.constant 0 : index
    %5 = vector.load %arg4[%c0_4, %c0_5] : memref<1x16xi32, #tpu.memory_space<vmem>>, vector<1x16xi32>
    %6 = vector.broadcast %4 : vector<16x1xi32> to vector<16x16xi32>
    %7 = vector.broadcast %5 : vector<1x16xi32> to vector<16x16xi32>
    %8 = arith.cmpi eq, %6, %7 : vector<16x16xi32>
    %cst = arith.constant 0.000000e+00 : f32
    %cst_6 = arith.constant -1.000000e+30 : f32
    %9 = vector.broadcast %cst : f32 to vector<16x16xf32>
    %10 = vector.broadcast %cst_6 : f32 to vector<16x16xf32>
    %11 = arith.select %8, %9, %10 : vector<16x16xi1>, vector<16x16xf32>
    %c0_7 = arith.constant 0 : index
    %c0_8 = arith.constant 0 : index
    %12 = vector.load %arg3[%c0_7, %c0_8] : memref<16x1xi32, #tpu.memory_space<vmem>>, vector<16x1xi32>
    %c0_9 = arith.constant 0 : index
    %c0_10 = arith.constant 0 : index
    %13 = vector.load %arg5[%c0_9, %c0_10] : memref<1x16xi32, #tpu.memory_space<vmem>>, vector<1x16xi32>
    %14 = vector.broadcast %12 : vector<16x1xi32> to vector<16x16xi32>
    %15 = vector.broadcast %13 : vector<1x16xi32> to vector<16x16xi32>
    %16 = arith.cmpi eq, %14, %15 : vector<16x16xi32>
    %cst_11 = arith.constant 0.000000e+00 : f32
    %cst_12 = arith.constant -1.000000e+30 : f32
    %17 = vector.broadcast %cst_11 : f32 to vector<16x16xf32>
    %18 = vector.broadcast %cst_12 : f32 to vector<16x16xf32>
    %19 = arith.select %16, %17, %18 : vector<16x16xi1>, vector<16x16xf32>
    %20 = arith.truncf %3 : vector<16x32xf32> to vector<16x32xbf16>
    %c0_13 = arith.constant 0 : index
    %c0_14 = arith.constant 0 : index
    %c0_15 = arith.constant 0 : index
    %21 = vector.load %arg6[%c0_13, %c0_14, %c0_15] : memref<1x32x32xbf16, #tpu.memory_space<vmem>>, vector<1x32x32xbf16>
    %22 = vector.shape_cast %21 : vector<1x32x32xbf16> to vector<32x32xbf16>
    %cst_16 = arith.constant dense<0.000000e+00> : vector<16x32xf32>
    %23 = tpu.matmul %20, %22, %cst_16 {dimension_numbers = #tpu.dot_dimension_numbers<[1], [0], [0], [1], [0, 0, 1, 1], [], []>} : vector<16x32xbf16>, vector<32x32xbf16>, vector<16x32xf32> -> vector<16x32xf32>
    %c0_17 = arith.constant 0 : index
    %c0_18 = arith.constant 0 : index
    %c0_19 = arith.constant 0 : index
    %24 = vector.load %arg7[%c0_17, %c0_18, %c0_19] : memref<1x1x32xf32, #tpu.memory_space<vmem>>, vector<1x1x32xf32>
    %25 = vector.shape_cast %24 : vector<1x1x32xf32> to vector<1x32xf32>
    %26 = vector.broadcast %25 : vector<1x32xf32> to vector<16x32xf32>
    %27 = arith.addf %23, %26 : vector<16x32xf32>
    %c0_20 = arith.constant 0 : index
    %c0_21 = arith.constant 0 : index
    %c0_22 = arith.constant 0 : index
    %28 = vector.load %arg8[%c0_20, %c0_21, %c0_22] : memref<1x32x32xbf16, #tpu.memory_space<vmem>>, vector<1x32x32xbf16>
    %29 = vector.shape_cast %28 : vector<1x32x32xbf16> to vector<32x32xbf16>
    %cst_23 = arith.constant dense<0.000000e+00> : vector<16x32xf32>
    %30 = tpu.matmul %20, %29, %cst_23 {dimension_numbers = #tpu.dot_dimension_numbers<[1], [0], [0], [1], [0, 0, 1, 1], [], []>} : vector<16x32xbf16>, vector<32x32xbf16>, vector<16x32xf32> -> vector<16x32xf32>
    %c0_24 = arith.constant 0 : index
    %c0_25 = arith.constant 0 : index
    %c0_26 = arith.constant 0 : index
    %31 = vector.load %arg9[%c0_24, %c0_25, %c0_26] : memref<1x1x32xf32, #tpu.memory_space<vmem>>, vector<1x1x32xf32>
    %32 = vector.shape_cast %31 : vector<1x1x32xf32> to vector<1x32xf32>
    %33 = vector.broadcast %32 : vector<1x32xf32> to vector<16x32xf32>
    %34 = arith.addf %30, %33 : vector<16x32xf32>
    %c0_27 = arith.constant 0 : index
    %c0_28 = arith.constant 0 : index
    %c0_29 = arith.constant 0 : index
    %35 = vector.load %arg10[%c0_27, %c0_28, %c0_29] : memref<1x32x32xbf16, #tpu.memory_space<vmem>>, vector<1x32x32xbf16>
    %36 = vector.shape_cast %35 : vector<1x32x32xbf16> to vector<32x32xbf16>
    %cst_30 = arith.constant dense<0.000000e+00> : vector<16x32xf32>
    %37 = tpu.matmul %20, %36, %cst_30 {dimension_numbers = #tpu.dot_dimension_numbers<[1], [0], [0], [1], [0, 0, 1, 1], [], []>} : vector<16x32xbf16>, vector<32x32xbf16>, vector<16x32xf32> -> vector<16x32xf32>
    %c0_31 = arith.constant 0 : index
    %c0_32 = arith.constant 0 : index
    %c0_33 = arith.constant 0 : index
    %38 = vector.load %arg11[%c0_31, %c0_32, %c0_33] : memref<1x1x32xf32, #tpu.memory_space<vmem>>, vector<1x1x32xf32>
    %39 = vector.shape_cast %38 : vector<1x1x32xf32> to vector<1x32xf32>
    %40 = vector.broadcast %39 : vector<1x32xf32> to vector<16x32xf32>
    %41 = arith.addf %37, %40 : vector<16x32xf32>
    %c0_34 = arith.constant 0 : index
    %c0_35 = arith.constant 0 : index
    %c0_36 = arith.constant 0 : index
    %42 = vector.load %arg12[%c0_34, %c0_35, %c0_36] : memref<1x32x32xbf16, #tpu.memory_space<vmem>>, vector<1x32x32xbf16>
    %43 = vector.shape_cast %42 : vector<1x32x32xbf16> to vector<32x32xbf16>
    %c0_37 = arith.constant 0 : index
    %c0_38 = arith.constant 0 : index
    %c0_39 = arith.constant 0 : index
    %44 = vector.load %arg13[%c0_37, %c0_38, %c0_39] : memref<1x1x32xf32, #tpu.memory_space<vmem>>, vector<1x1x32xf32>
    %45 = vector.shape_cast %44 : vector<1x1x32xf32> to vector<1x32xf32>
    %46 = arith.truncf %27 : vector<16x32xf32> to vector<16x32xbf16>
    %47 = tpu.transpose %34, [1, 0] : vector<16x32xf32> -> vector<32x16xf32>
    %48 = arith.truncf %47 : vector<32x16xf32> to vector<32x16xbf16>
    %49 = arith.truncf %41 : vector<16x32xf32> to vector<16x32xbf16>
    %50 = vector.extract_strided_slice %46 {offsets = [0, 0], sizes = [16, 8], strides = [1, 1]} : vector<16x32xbf16> to vector<16x8xbf16>
    %51 = vector.extract_strided_slice %48 {offsets = [0, 0], sizes = [8, 16], strides = [1, 1]} : vector<32x16xbf16> to vector<8x16xbf16>
    %cst_40 = arith.constant dense<0.000000e+00> : vector<16x16xf32>
    %52 = tpu.matmul %50, %51, %cst_40 {dimension_numbers = #tpu.dot_dimension_numbers<[1], [0], [0], [1], [0, 0, 1, 1], [], []>} : vector<16x8xbf16>, vector<8x16xbf16>, vector<16x16xf32> -> vector<16x16xf32>
    %53 = arith.addf %52, %11 : vector<16x16xf32>
    %cst_41 = arith.constant dense<0xFF800000> : vector<16xf32>
    %54 = vector.multi_reduction <maximumf>, %53, %cst_41 [1] : vector<16x16xf32> to vector<16xf32>
    %55 = vector.shape_cast %54 : vector<16xf32> to vector<16x1xf32>
    %56 = vector.broadcast %55 : vector<16x1xf32> to vector<16x16xf32>
    %57 = arith.subf %53, %56 : vector<16x16xf32>
    %58 = math.exp %57 : vector<16x16xf32>
    %cst_42 = arith.constant dense<0.000000e+00> : vector<16xf32>
    %59 = vector.multi_reduction <add>, %58, %cst_42 [1] : vector<16x16xf32> to vector<16xf32>
    %60 = vector.shape_cast %59 : vector<16xf32> to vector<16x1xf32>
    %61 = tpu.reciprocal %60 {approx = true} : vector<16x1xf32> -> vector<16x1xf32>
    %62 = vector.broadcast %61 : vector<16x1xf32> to vector<16x16xf32>
    %63 = arith.mulf %58, %62 : vector<16x16xf32>
    %64 = arith.truncf %63 : vector<16x16xf32> to vector<16x16xbf16>
    %65 = vector.extract_strided_slice %49 {offsets = [0, 0], sizes = [16, 8], strides = [1, 1]} : vector<16x32xbf16> to vector<16x8xbf16>
    %cst_43 = arith.constant dense<0.000000e+00> : vector<16x8xf32>
    %66 = tpu.matmul %64, %65, %cst_43 {dimension_numbers = #tpu.dot_dimension_numbers<[1], [0], [0], [1], [0, 0, 1, 1], [], []>} : vector<16x16xbf16>, vector<16x8xbf16>, vector<16x8xf32> -> vector<16x8xf32>
    %c0_44 = arith.constant 0 : index
    %c0_45 = arith.constant 0 : index
    %67 = vector.load %arg34[%c0_44, %c0_45] : memref<16x32xf32, #tpu.memory_space<vmem>>, vector<16x8xf32>
    tpu.vector_store %arg34[%c0_44, %c0_45], %66 {strides = array<i32>} : memref<16x32xf32, #tpu.memory_space<vmem>>, vector<16x8xf32>,
    %68 = vector.extract_strided_slice %46 {offsets = [0, 8], sizes = [16, 8], strides = [1, 1]} : vector<16x32xbf16> to vector<16x8xbf16>
    %69 = vector.extract_strided_slice %48 {offsets = [8, 0], sizes = [8, 16], strides = [1, 1]} : vector<32x16xbf16> to vector<8x16xbf16>
    %cst_46 = arith.constant dense<0.000000e+00> : vector<16x16xf32>
    %70 = tpu.matmul %68, %69, %cst_46 {dimension_numbers = #tpu.dot_dimension_numbers<[1], [0], [0], [1], [0, 0, 1, 1], [], []>} : vector<16x8xbf16>, vector<8x16xbf16>, vector<16x16xf32> -> vector<16x16xf32>
    %71 = arith.addf %70, %11 : vector<16x16xf32>
    %cst_47 = arith.constant dense<0xFF800000> : vector<16xf32>
    %72 = vector.multi_reduction <maximumf>, %71, %cst_47 [1] : vector<16x16xf32> to vector<16xf32>
    %73 = vector.shape_cast %72 : vector<16xf32> to vector<16x1xf32>
    %74 = vector.broadcast %73 : vector<16x1xf32> to vector<16x16xf32>
    %75 = arith.subf %71, %74 : vector<16x16xf32>
    %76 = math.exp %75 : vector<16x16xf32>
    %cst_48 = arith.constant dense<0.000000e+00> : vector<16xf32>
    %77 = vector.multi_reduction <add>, %76, %cst_48 [1] : vector<16x16xf32> to vector<16xf32>
    %78 = vector.shape_cast %77 : vector<16xf32> to vector<16x1xf32>
    %79 = tpu.reciprocal %78 {approx = true} : vector<16x1xf32> -> vector<16x1xf32>
    %80 = vector.broadcast %79 : vector<16x1xf32> to vector<16x16xf32>
    %81 = arith.mulf %76, %80 : vector<16x16xf32>
    %82 = arith.truncf %81 : vector<16x16xf32> to vector<16x16xbf16>
    %83 = vector.extract_strided_slice %49 {offsets = [0, 8], sizes = [16, 8], strides = [1, 1]} : vector<16x32xbf16> to vector<16x8xbf16>
    %cst_49 = arith.constant dense<0.000000e+00> : vector<16x8xf32>
    %84 = tpu.matmul %82, %83, %cst_49 {dimension_numbers = #tpu.dot_dimension_numbers<[1], [0], [0], [1], [0, 0, 1, 1], [], []>} : vector<16x16xbf16>, vector<16x8xbf16>, vector<16x8xf32> -> vector<16x8xf32>
    %c0_50 = arith.constant 0 : index
    %c8 = arith.constant 8 : index
    %85 = vector.load %arg34[%c0_50, %c8] : memref<16x32xf32, #tpu.memory_space<vmem>>, vector<16x8xf32>
    tpu.vector_store %arg34[%c0_50, %c8], %84 {strides = array<i32>} : memref<16x32xf32, #tpu.memory_space<vmem>>, vector<16x8xf32>,
    %86 = vector.extract_strided_slice %46 {offsets = [0, 16], sizes = [16, 8], strides = [1, 1]} : vector<16x32xbf16> to vector<16x8xbf16>
    %87 = vector.extract_strided_slice %48 {offsets = [16, 0], sizes = [8, 16], strides = [1, 1]} : vector<32x16xbf16> to vector<8x16xbf16>
    %cst_51 = arith.constant dense<0.000000e+00> : vector<16x16xf32>
    %88 = tpu.matmul %86, %87, %cst_51 {dimension_numbers = #tpu.dot_dimension_numbers<[1], [0], [0], [1], [0, 0, 1, 1], [], []>} : vector<16x8xbf16>, vector<8x16xbf16>, vector<16x16xf32> -> vector<16x16xf32>
    %89 = arith.addf %88, %11 : vector<16x16xf32>
    %cst_52 = arith.constant dense<0xFF800000> : vector<16xf32>
    %90 = vector.multi_reduction <maximumf>, %89, %cst_52 [1] : vector<16x16xf32> to vector<16xf32>
    %91 = vector.shape_cast %90 : vector<16xf32> to vector<16x1xf32>
    %92 = vector.broadcast %91 : vector<16x1xf32> to vector<16x16xf32>
    %93 = arith.subf %89, %92 : vector<16x16xf32>
    %94 = math.exp %93 : vector<16x16xf32>
    %cst_53 = arith.constant dense<0.000000e+00> : vector<16xf32>
    %95 = vector.multi_reduction <add>, %94, %cst_53 [1] : vector<16x16xf32> to vector<16xf32>
    %96 = vector.shape_cast %95 : vector<16xf32> to vector<16x1xf32>
    %97 = tpu.reciprocal %96 {approx = true} : vector<16x1xf32> -> vector<16x1xf32>
    %98 = vector.broadcast %97 : vector<16x1xf32> to vector<16x16xf32>
    %99 = arith.mulf %94, %98 : vector<16x16xf32>
    %100 = arith.truncf %99 : vector<16x16xf32> to vector<16x16xbf16>
    %101 = vector.extract_strided_slice %49 {offsets = [0, 16], sizes = [16, 8], strides = [1, 1]} : vector<16x32xbf16> to vector<16x8xbf16>
    %cst_54 = arith.constant dense<0.000000e+00> : vector<16x8xf32>
    %102 = tpu.matmul %100, %101, %cst_54 {dimension_numbers = #tpu.dot_dimension_numbers<[1], [0], [0], [1], [0, 0, 1, 1], [], []>} : vector<16x16xbf16>, vector<16x8xbf16>, vector<16x8xf32> -> vector<16x8xf32>
    %c0_55 = arith.constant 0 : index
    %c16 = arith.constant 16 : index
    %103 = vector.load %arg34[%c0_55, %c16] : memref<16x32xf32, #tpu.memory_space<vmem>>, vector<16x8xf32>
    tpu.vector_store %arg34[%c0_55, %c16], %102 {strides = array<i32>} : memref<16x32xf32, #tpu.memory_space<vmem>>, vector<16x8xf32>,
    %104 = vector.extract_strided_slice %46 {offsets = [0, 24], sizes = [16, 8], strides = [1, 1]} : vector<16x32xbf16> to vector<16x8xbf16>
    %105 = vector.extract_strided_slice %48 {offsets = [24, 0], sizes = [8, 16], strides = [1, 1]} : vector<32x16xbf16> to vector<8x16xbf16>
    %cst_56 = arith.constant dense<0.000000e+00> : vector<16x16xf32>
    %106 = tpu.matmul %104, %105, %cst_56 {dimension_numbers = #tpu.dot_dimension_numbers<[1], [0], [0], [1], [0, 0, 1, 1], [], []>} : vector<16x8xbf16>, vector<8x16xbf16>, vector<16x16xf32> -> vector<16x16xf32>
    %107 = arith.addf %106, %11 : vector<16x16xf32>
    %cst_57 = arith.constant dense<0xFF800000> : vector<16xf32>
    %108 = vector.multi_reduction <maximumf>, %107, %cst_57 [1] : vector<16x16xf32> to vector<16xf32>
    %109 = vector.shape_cast %108 : vector<16xf32> to vector<16x1xf32>
    %110 = vector.broadcast %109 : vector<16x1xf32> to vector<16x16xf32>
    %111 = arith.subf %107, %110 : vector<16x16xf32>
    %112 = math.exp %111 : vector<16x16xf32>
    %cst_58 = arith.constant dense<0.000000e+00> : vector<16xf32>
    %113 = vector.multi_reduction <add>, %112, %cst_58 [1] : vector<16x16xf32> to vector<16xf32>
    %114 = vector.shape_cast %113 : vector<16xf32> to vector<16x1xf32>
    %115 = tpu.reciprocal %114 {approx = true} : vector<16x1xf32> -> vector<16x1xf32>
    %116 = vector.broadcast %115 : vector<16x1xf32> to vector<16x16xf32>
    %117 = arith.mulf %112, %116 : vector<16x16xf32>
    %118 = arith.truncf %117 : vector<16x16xf32> to vector<16x16xbf16>
    %119 = vector.extract_strided_slice %49 {offsets = [0, 24], sizes = [16, 8], strides = [1, 1]} : vector<16x32xbf16> to vector<16x8xbf16>
    %cst_59 = arith.constant dense<0.000000e+00> : vector<16x8xf32>
    %120 = tpu.matmul %118, %119, %cst_59 {dimension_numbers = #tpu.dot_dimension_numbers<[1], [0], [0], [1], [0, 0, 1, 1], [], []>} : vector<16x16xbf16>, vector<16x8xbf16>, vector<16x8xf32> -> vector<16x8xf32>
    %c0_60 = arith.constant 0 : index
    %c24 = arith.constant 24 : index
    %121 = vector.load %arg34[%c0_60, %c24] : memref<16x32xf32, #tpu.memory_space<vmem>>, vector<16x8xf32>
    tpu.vector_store %arg34[%c0_60, %c24], %120 {strides = array<i32>} : memref<16x32xf32, #tpu.memory_space<vmem>>, vector<16x8xf32>,
    %c0_61 = arith.constant 0 : index
    %c0_62 = arith.constant 0 : index
    %122 = vector.load %arg34[%c0_61, %c0_62] : memref<16x32xf32, #tpu.memory_space<vmem>>, vector<16x32xf32>
    %123 = arith.truncf %122 : vector<16x32xf32> to vector<16x32xbf16>
    %cst_63 = arith.constant dense<0.000000e+00> : vector<16x32xf32>
    %124 = tpu.matmul %123, %43, %cst_63 {dimension_numbers = #tpu.dot_dimension_numbers<[1], [0], [0], [1], [0, 0, 1, 1], [], []>} : vector<16x32xbf16>, vector<32x32xbf16>, vector<16x32xf32> -> vector<16x32xf32>
    %125 = vector.broadcast %45 : vector<1x32xf32> to vector<16x32xf32>
    %126 = arith.addf %124, %125 : vector<16x32xf32>
    %c0_64 = arith.constant 0 : index
    %c0_65 = arith.constant 0 : index
    %c0_66 = arith.constant 0 : index
    %127 = vector.load %arg14[%c0_64, %c0_65, %c0_66] : memref<1x1x32xf32, #tpu.memory_space<vmem>>, vector<1x1x32xf32>
    %128 = vector.shape_cast %127 : vector<1x1x32xf32> to vector<1x32xf32>
    %c0_67 = arith.constant 0 : index
    %c0_68 = arith.constant 0 : index
    %c0_69 = arith.constant 0 : index
    %129 = vector.load %arg15[%c0_67, %c0_68, %c0_69] : memref<1x1x32xf32, #tpu.memory_space<vmem>>, vector<1x1x32xf32>
    %130 = vector.shape_cast %129 : vector<1x1x32xf32> to vector<1x32xf32>
    %131 = arith.addf %3, %126 : vector<16x32xf32>
    %cst_70 = arith.constant dense<0.000000e+00> : vector<16xf32>
    %132 = vector.multi_reduction <add>, %131, %cst_70 [1] : vector<16x32xf32> to vector<16xf32>
    %133 = vector.shape_cast %132 : vector<16xf32> to vector<16x1xf32>
    %cst_71 = arith.constant 3.200000e+01 : f32
    %134 = vector.broadcast %cst_71 : f32 to vector<16x1xf32>
    %135 = arith.divf %133, %134 : vector<16x1xf32>
    %136 = vector.broadcast %135 : vector<16x1xf32> to vector<16x32xf32>
    %137 = arith.subf %131, %136 : vector<16x32xf32>
    %138 = arith.mulf %137, %137 : vector<16x32xf32>
    %cst_72 = arith.constant dense<0.000000e+00> : vector<16xf32>
    %139 = vector.multi_reduction <add>, %138, %cst_72 [1] : vector<16x32xf32> to vector<16xf32>
    %140 = vector.shape_cast %139 : vector<16xf32> to vector<16x1xf32>
    %cst_73 = arith.constant 3.200000e+01 : f32
    %141 = vector.broadcast %cst_73 : f32 to vector<16x1xf32>
    %142 = arith.divf %140, %141 : vector<16x1xf32>
    %cst_74 = arith.constant 9.99999974E-6 : f32
    %143 = vector.broadcast %cst_74 : f32 to vector<16x1xf32>
    %144 = arith.addf %142, %143 : vector<16x1xf32>
    %145 = math.rsqrt %144 : vector<16x1xf32>
    %146 = vector.broadcast %145 : vector<16x1xf32> to vector<16x32xf32>
    %147 = arith.mulf %137, %146 : vector<16x32xf32>
    %148 = vector.broadcast %128 : vector<1x32xf32> to vector<16x32xf32>
    %149 = arith.mulf %147, %148 : vector<16x32xf32>
    %150 = vector.broadcast %130 : vector<1x32xf32> to vector<16x32xf32>
    %151 = arith.addf %149, %150 : vector<16x32xf32>
    %152 = arith.truncf %151 : vector<16x32xf32> to vector<16x32xbf16>
    %c0_75 = arith.constant 0 : index
    %c0_76 = arith.constant 0 : index
    %153 = vector.load %arg2[%c0_75, %c0_76] : memref<16x32xf32, #tpu.memory_space<vmem>>, vector<16x32xf32>
    %154 = arith.truncf %153 : vector<16x32xf32> to vector<16x32xbf16>
    %c0_77 = arith.constant 0 : index
    %c0_78 = arith.constant 0 : index
    %c0_79 = arith.constant 0 : index
    %155 = vector.load %arg16[%c0_77, %c0_78, %c0_79] : memref<1x32x32xbf16, #tpu.memory_space<vmem>>, vector<1x32x32xbf16>
    %156 = vector.shape_cast %155 : vector<1x32x32xbf16> to vector<32x32xbf16>
    %cst_80 = arith.constant dense<0.000000e+00> : vector<16x32xf32>
    %157 = tpu.matmul %152, %156, %cst_80 {dimension_numbers = #tpu.dot_dimension_numbers<[1], [0], [0], [1], [0, 0, 1, 1], [], []>} : vector<16x32xbf16>, vector<32x32xbf16>, vector<16x32xf32> -> vector<16x32xf32>
    %c0_81 = arith.constant 0 : index
    %c0_82 = arith.constant 0 : index
    %c0_83 = arith.constant 0 : index
    %158 = vector.load %arg17[%c0_81, %c0_82, %c0_83] : memref<1x1x32xf32, #tpu.memory_space<vmem>>, vector<1x1x32xf32>
    %159 = vector.shape_cast %158 : vector<1x1x32xf32> to vector<1x32xf32>
    %160 = vector.broadcast %159 : vector<1x32xf32> to vector<16x32xf32>
    %161 = arith.addf %157, %160 : vector<16x32xf32>
    %c0_84 = arith.constant 0 : index
    %c0_85 = arith.constant 0 : index
    %c0_86 = arith.constant 0 : index
    %162 = vector.load %arg18[%c0_84, %c0_85, %c0_86] : memref<1x32x32xbf16, #tpu.memory_space<vmem>>, vector<1x32x32xbf16>
    %163 = vector.shape_cast %162 : vector<1x32x32xbf16> to vector<32x32xbf16>
    %cst_87 = arith.constant dense<0.000000e+00> : vector<16x32xf32>
    %164 = tpu.matmul %154, %163, %cst_87 {dimension_numbers = #tpu.dot_dimension_numbers<[1], [0], [0], [1], [0, 0, 1, 1], [], []>} : vector<16x32xbf16>, vector<32x32xbf16>, vector<16x32xf32> -> vector<16x32xf32>
    %c0_88 = arith.constant 0 : index
    %c0_89 = arith.constant 0 : index
    %c0_90 = arith.constant 0 : index
    %165 = vector.load %arg19[%c0_88, %c0_89, %c0_90] : memref<1x1x32xf32, #tpu.memory_space<vmem>>, vector<1x1x32xf32>
    %166 = vector.shape_cast %165 : vector<1x1x32xf32> to vector<1x32xf32>
    %167 = vector.broadcast %166 : vector<1x32xf32> to vector<16x32xf32>
    %168 = arith.addf %164, %167 : vector<16x32xf32>
    %c0_91 = arith.constant 0 : index
    %c0_92 = arith.constant 0 : index
    %c0_93 = arith.constant 0 : index
    %169 = vector.load %arg20[%c0_91, %c0_92, %c0_93] : memref<1x32x32xbf16, #tpu.memory_space<vmem>>, vector<1x32x32xbf16>
    %170 = vector.shape_cast %169 : vector<1x32x32xbf16> to vector<32x32xbf16>
    %cst_94 = arith.constant dense<0.000000e+00> : vector<16x32xf32>
    %171 = tpu.matmul %154, %170, %cst_94 {dimension_numbers = #tpu.dot_dimension_numbers<[1], [0], [0], [1], [0, 0, 1, 1], [], []>} : vector<16x32xbf16>, vector<32x32xbf16>, vector<16x32xf32> -> vector<16x32xf32>
    %c0_95 = arith.constant 0 : index
    %c0_96 = arith.constant 0 : index
    %c0_97 = arith.constant 0 : index
    %172 = vector.load %arg21[%c0_95, %c0_96, %c0_97] : memref<1x1x32xf32, #tpu.memory_space<vmem>>, vector<1x1x32xf32>
    %173 = vector.shape_cast %172 : vector<1x1x32xf32> to vector<1x32xf32>
    %174 = vector.broadcast %173 : vector<1x32xf32> to vector<16x32xf32>
    %175 = arith.addf %171, %174 : vector<16x32xf32>
    %c0_98 = arith.constant 0 : index
    %c0_99 = arith.constant 0 : index
    %c0_100 = arith.constant 0 : index
    %176 = vector.load %arg22[%c0_98, %c0_99, %c0_100] : memref<1x32x32xbf16, #tpu.memory_space<vmem>>, vector<1x32x32xbf16>
    %177 = vector.shape_cast %176 : vector<1x32x32xbf16> to vector<32x32xbf16>
    %c0_101 = arith.constant 0 : index
    %c0_102 = arith.constant 0 : index
    %c0_103 = arith.constant 0 : index
    %178 = vector.load %arg23[%c0_101, %c0_102, %c0_103] : memref<1x1x32xf32, #tpu.memory_space<vmem>>, vector<1x1x32xf32>
    %179 = vector.shape_cast %178 : vector<1x1x32xf32> to vector<1x32xf32>
    %180 = arith.truncf %161 : vector<16x32xf32> to vector<16x32xbf16>
    %181 = tpu.transpose %168, [1, 0] : vector<16x32xf32> -> vector<32x16xf32>
    %182 = arith.truncf %181 : vector<32x16xf32> to vector<32x16xbf16>
    %183 = arith.truncf %175 : vector<16x32xf32> to vector<16x32xbf16>
    %184 = vector.extract_strided_slice %180 {offsets = [0, 0], sizes = [16, 8], strides = [1, 1]} : vector<16x32xbf16> to vector<16x8xbf16>
    %185 = vector.extract_strided_slice %182 {offsets = [0, 0], sizes = [8, 16], strides = [1, 1]} : vector<32x16xbf16> to vector<8x16xbf16>
    %cst_104 = arith.constant dense<0.000000e+00> : vector<16x16xf32>
    %186 = tpu.matmul %184, %185, %cst_104 {dimension_numbers = #tpu.dot_dimension_numbers<[1], [0], [0], [1], [0, 0, 1, 1], [], []>} : vector<16x8xbf16>, vector<8x16xbf16>, vector<16x16xf32> -> vector<16x16xf32>
    %187 = arith.addf %186, %19 : vector<16x16xf32>
    %cst_105 = arith.constant dense<0xFF800000> : vector<16xf32>
    %188 = vector.multi_reduction <maximumf>, %187, %cst_105 [1] : vector<16x16xf32> to vector<16xf32>
    %189 = vector.shape_cast %188 : vector<16xf32> to vector<16x1xf32>
    %190 = vector.broadcast %189 : vector<16x1xf32> to vector<16x16xf32>
    %191 = arith.subf %187, %190 : vector<16x16xf32>
    %192 = math.exp %191 : vector<16x16xf32>
    %cst_106 = arith.constant dense<0.000000e+00> : vector<16xf32>
    %193 = vector.multi_reduction <add>, %192, %cst_106 [1] : vector<16x16xf32> to vector<16xf32>
    %194 = vector.shape_cast %193 : vector<16xf32> to vector<16x1xf32>
    %195 = tpu.reciprocal %194 {approx = true} : vector<16x1xf32> -> vector<16x1xf32>
    %196 = vector.broadcast %195 : vector<16x1xf32> to vector<16x16xf32>
    %197 = arith.mulf %192, %196 : vector<16x16xf32>
    %198 = arith.truncf %197 : vector<16x16xf32> to vector<16x16xbf16>
    %199 = vector.extract_strided_slice %183 {offsets = [0, 0], sizes = [16, 8], strides = [1, 1]} : vector<16x32xbf16> to vector<16x8xbf16>
    %cst_107 = arith.constant dense<0.000000e+00> : vector<16x8xf32>
    %200 = tpu.matmul %198, %199, %cst_107 {dimension_numbers = #tpu.dot_dimension_numbers<[1], [0], [0], [1], [0, 0, 1, 1], [], []>} : vector<16x16xbf16>, vector<16x8xbf16>, vector<16x8xf32> -> vector<16x8xf32>
    %c0_108 = arith.constant 0 : index
    %c0_109 = arith.constant 0 : index
    %201 = vector.load %arg34[%c0_108, %c0_109] : memref<16x32xf32, #tpu.memory_space<vmem>>, vector<16x8xf32>
    tpu.vector_store %arg34[%c0_108, %c0_109], %200 {strides = array<i32>} : memref<16x32xf32, #tpu.memory_space<vmem>>, vector<16x8xf32>,
    %202 = vector.extract_strided_slice %180 {offsets = [0, 8], sizes = [16, 8], strides = [1, 1]} : vector<16x32xbf16> to vector<16x8xbf16>
    %203 = vector.extract_strided_slice %182 {offsets = [8, 0], sizes = [8, 16], strides = [1, 1]} : vector<32x16xbf16> to vector<8x16xbf16>
    %cst_110 = arith.constant dense<0.000000e+00> : vector<16x16xf32>
    %204 = tpu.matmul %202, %203, %cst_110 {dimension_numbers = #tpu.dot_dimension_numbers<[1], [0], [0], [1], [0, 0, 1, 1], [], []>} : vector<16x8xbf16>, vector<8x16xbf16>, vector<16x16xf32> -> vector<16x16xf32>
    %205 = arith.addf %204, %19 : vector<16x16xf32>
    %cst_111 = arith.constant dense<0xFF800000> : vector<16xf32>
    %206 = vector.multi_reduction <maximumf>, %205, %cst_111 [1] : vector<16x16xf32> to vector<16xf32>
    %207 = vector.shape_cast %206 : vector<16xf32> to vector<16x1xf32>
    %208 = vector.broadcast %207 : vector<16x1xf32> to vector<16x16xf32>
    %209 = arith.subf %205, %208 : vector<16x16xf32>
    %210 = math.exp %209 : vector<16x16xf32>
    %cst_112 = arith.constant dense<0.000000e+00> : vector<16xf32>
    %211 = vector.multi_reduction <add>, %210, %cst_112 [1] : vector<16x16xf32> to vector<16xf32>
    %212 = vector.shape_cast %211 : vector<16xf32> to vector<16x1xf32>
    %213 = tpu.reciprocal %212 {approx = true} : vector<16x1xf32> -> vector<16x1xf32>
    %214 = vector.broadcast %213 : vector<16x1xf32> to vector<16x16xf32>
    %215 = arith.mulf %210, %214 : vector<16x16xf32>
    %216 = arith.truncf %215 : vector<16x16xf32> to vector<16x16xbf16>
    %217 = vector.extract_strided_slice %183 {offsets = [0, 8], sizes = [16, 8], strides = [1, 1]} : vector<16x32xbf16> to vector<16x8xbf16>
    %cst_113 = arith.constant dense<0.000000e+00> : vector<16x8xf32>
    %218 = tpu.matmul %216, %217, %cst_113 {dimension_numbers = #tpu.dot_dimension_numbers<[1], [0], [0], [1], [0, 0, 1, 1], [], []>} : vector<16x16xbf16>, vector<16x8xbf16>, vector<16x8xf32> -> vector<16x8xf32>
    %c0_114 = arith.constant 0 : index
    %c8_115 = arith.constant 8 : index
    %219 = vector.load %arg34[%c0_114, %c8_115] : memref<16x32xf32, #tpu.memory_space<vmem>>, vector<16x8xf32>
    tpu.vector_store %arg34[%c0_114, %c8_115], %218 {strides = array<i32>} : memref<16x32xf32, #tpu.memory_space<vmem>>, vector<16x8xf32>,
    %220 = vector.extract_strided_slice %180 {offsets = [0, 16], sizes = [16, 8], strides = [1, 1]} : vector<16x32xbf16> to vector<16x8xbf16>
    %221 = vector.extract_strided_slice %182 {offsets = [16, 0], sizes = [8, 16], strides = [1, 1]} : vector<32x16xbf16> to vector<8x16xbf16>
    %cst_116 = arith.constant dense<0.000000e+00> : vector<16x16xf32>
    %222 = tpu.matmul %220, %221, %cst_116 {dimension_numbers = #tpu.dot_dimension_numbers<[1], [0], [0], [1], [0, 0, 1, 1], [], []>} : vector<16x8xbf16>, vector<8x16xbf16>, vector<16x16xf32> -> vector<16x16xf32>
    %223 = arith.addf %222, %19 : vector<16x16xf32>
    %cst_117 = arith.constant dense<0xFF800000> : vector<16xf32>
    %224 = vector.multi_reduction <maximumf>, %223, %cst_117 [1] : vector<16x16xf32> to vector<16xf32>
    %225 = vector.shape_cast %224 : vector<16xf32> to vector<16x1xf32>
    %226 = vector.broadcast %225 : vector<16x1xf32> to vector<16x16xf32>
    %227 = arith.subf %223, %226 : vector<16x16xf32>
    %228 = math.exp %227 : vector<16x16xf32>
    %cst_118 = arith.constant dense<0.000000e+00> : vector<16xf32>
    %229 = vector.multi_reduction <add>, %228, %cst_118 [1] : vector<16x16xf32> to vector<16xf32>
    %230 = vector.shape_cast %229 : vector<16xf32> to vector<16x1xf32>
    %231 = tpu.reciprocal %230 {approx = true} : vector<16x1xf32> -> vector<16x1xf32>
    %232 = vector.broadcast %231 : vector<16x1xf32> to vector<16x16xf32>
    %233 = arith.mulf %228, %232 : vector<16x16xf32>
    %234 = arith.truncf %233 : vector<16x16xf32> to vector<16x16xbf16>
    %235 = vector.extract_strided_slice %183 {offsets = [0, 16], sizes = [16, 8], strides = [1, 1]} : vector<16x32xbf16> to vector<16x8xbf16>
    %cst_119 = arith.constant dense<0.000000e+00> : vector<16x8xf32>
    %236 = tpu.matmul %234, %235, %cst_119 {dimension_numbers = #tpu.dot_dimension_numbers<[1], [0], [0], [1], [0, 0, 1, 1], [], []>} : vector<16x16xbf16>, vector<16x8xbf16>, vector<16x8xf32> -> vector<16x8xf32>
    %c0_120 = arith.constant 0 : index
    %c16_121 = arith.constant 16 : index
    %237 = vector.load %arg34[%c0_120, %c16_121] : memref<16x32xf32, #tpu.memory_space<vmem>>, vector<16x8xf32>
    tpu.vector_store %arg34[%c0_120, %c16_121], %236 {strides = array<i32>} : memref<16x32xf32, #tpu.memory_space<vmem>>, vector<16x8xf32>,
    %238 = vector.extract_strided_slice %180 {offsets = [0, 24], sizes = [16, 8], strides = [1, 1]} : vector<16x32xbf16> to vector<16x8xbf16>
    %239 = vector.extract_strided_slice %182 {offsets = [24, 0], sizes = [8, 16], strides = [1, 1]} : vector<32x16xbf16> to vector<8x16xbf16>
    %cst_122 = arith.constant dense<0.000000e+00> : vector<16x16xf32>
    %240 = tpu.matmul %238, %239, %cst_122 {dimension_numbers = #tpu.dot_dimension_numbers<[1], [0], [0], [1], [0, 0, 1, 1], [], []>} : vector<16x8xbf16>, vector<8x16xbf16>, vector<16x16xf32> -> vector<16x16xf32>
    %241 = arith.addf %240, %19 : vector<16x16xf32>
    %cst_123 = arith.constant dense<0xFF800000> : vector<16xf32>
    %242 = vector.multi_reduction <maximumf>, %241, %cst_123 [1] : vector<16x16xf32> to vector<16xf32>
    %243 = vector.shape_cast %242 : vector<16xf32> to vector<16x1xf32>
    %244 = vector.broadcast %243 : vector<16x1xf32> to vector<16x16xf32>
    %245 = arith.subf %241, %244 : vector<16x16xf32>
    %246 = math.exp %245 : vector<16x16xf32>
    %cst_124 = arith.constant dense<0.000000e+00> : vector<16xf32>
    %247 = vector.multi_reduction <add>, %246, %cst_124 [1] : vector<16x16xf32> to vector<16xf32>
    %248 = vector.shape_cast %247 : vector<16xf32> to vector<16x1xf32>
    %249 = tpu.reciprocal %248 {approx = true} : vector<16x1xf32> -> vector<16x1xf32>
    %250 = vector.broadcast %249 : vector<16x1xf32> to vector<16x16xf32>
    %251 = arith.mulf %246, %250 : vector<16x16xf32>
    %252 = arith.truncf %251 : vector<16x16xf32> to vector<16x16xbf16>
    %253 = vector.extract_strided_slice %183 {offsets = [0, 24], sizes = [16, 8], strides = [1, 1]} : vector<16x32xbf16> to vector<16x8xbf16>
    %cst_125 = arith.constant dense<0.000000e+00> : vector<16x8xf32>
    %254 = tpu.matmul %252, %253, %cst_125 {dimension_numbers = #tpu.dot_dimension_numbers<[1], [0], [0], [1], [0, 0, 1, 1], [], []>} : vector<16x16xbf16>, vector<16x8xbf16>, vector<16x8xf32> -> vector<16x8xf32>
    %c0_126 = arith.constant 0 : index
    %c24_127 = arith.constant 24 : index
    %255 = vector.load %arg34[%c0_126, %c24_127] : memref<16x32xf32, #tpu.memory_space<vmem>>, vector<16x8xf32>
    tpu.vector_store %arg34[%c0_126, %c24_127], %254 {strides = array<i32>} : memref<16x32xf32, #tpu.memory_space<vmem>>, vector<16x8xf32>,
    %c0_128 = arith.constant 0 : index
    %c0_129 = arith.constant 0 : index
    %256 = vector.load %arg34[%c0_128, %c0_129] : memref<16x32xf32, #tpu.memory_space<vmem>>, vector<16x32xf32>
    %257 = arith.truncf %256 : vector<16x32xf32> to vector<16x32xbf16>
    %cst_130 = arith.constant dense<0.000000e+00> : vector<16x32xf32>
    %258 = tpu.matmul %257, %177, %cst_130 {dimension_numbers = #tpu.dot_dimension_numbers<[1], [0], [0], [1], [0, 0, 1, 1], [], []>} : vector<16x32xbf16>, vector<32x32xbf16>, vector<16x32xf32> -> vector<16x32xf32>
    %259 = vector.broadcast %179 : vector<1x32xf32> to vector<16x32xf32>
    %260 = arith.addf %258, %259 : vector<16x32xf32>
    %c0_131 = arith.constant 0 : index
    %c0_132 = arith.constant 0 : index
    %c0_133 = arith.constant 0 : index
    %261 = vector.load %arg24[%c0_131, %c0_132, %c0_133] : memref<1x1x32xf32, #tpu.memory_space<vmem>>, vector<1x1x32xf32>
    %262 = vector.shape_cast %261 : vector<1x1x32xf32> to vector<1x32xf32>
    %c0_134 = arith.constant 0 : index
    %c0_135 = arith.constant 0 : index
    %c0_136 = arith.constant 0 : index
    %263 = vector.load %arg25[%c0_134, %c0_135, %c0_136] : memref<1x1x32xf32, #tpu.memory_space<vmem>>, vector<1x1x32xf32>
    %264 = vector.shape_cast %263 : vector<1x1x32xf32> to vector<1x32xf32>
    %265 = arith.addf %151, %260 : vector<16x32xf32>
    %cst_137 = arith.constant dense<0.000000e+00> : vector<16xf32>
    %266 = vector.multi_reduction <add>, %265, %cst_137 [1] : vector<16x32xf32> to vector<16xf32>
    %267 = vector.shape_cast %266 : vector<16xf32> to vector<16x1xf32>
    %cst_138 = arith.constant 3.200000e+01 : f32
    %268 = vector.broadcast %cst_138 : f32 to vector<16x1xf32>
    %269 = arith.divf %267, %268 : vector<16x1xf32>
    %270 = vector.broadcast %269 : vector<16x1xf32> to vector<16x32xf32>
    %271 = arith.subf %265, %270 : vector<16x32xf32>
    %272 = arith.mulf %271, %271 : vector<16x32xf32>
    %cst_139 = arith.constant dense<0.000000e+00> : vector<16xf32>
    %273 = vector.multi_reduction <add>, %272, %cst_139 [1] : vector<16x32xf32> to vector<16xf32>
    %274 = vector.shape_cast %273 : vector<16xf32> to vector<16x1xf32>
    %cst_140 = arith.constant 3.200000e+01 : f32
    %275 = vector.broadcast %cst_140 : f32 to vector<16x1xf32>
    %276 = arith.divf %274, %275 : vector<16x1xf32>
    %cst_141 = arith.constant 9.99999974E-6 : f32
    %277 = vector.broadcast %cst_141 : f32 to vector<16x1xf32>
    %278 = arith.addf %276, %277 : vector<16x1xf32>
    %279 = math.rsqrt %278 : vector<16x1xf32>
    %280 = vector.broadcast %279 : vector<16x1xf32> to vector<16x32xf32>
    %281 = arith.mulf %271, %280 : vector<16x32xf32>
    %282 = vector.broadcast %262 : vector<1x32xf32> to vector<16x32xf32>
    %283 = arith.mulf %281, %282 : vector<16x32xf32>
    %284 = vector.broadcast %264 : vector<1x32xf32> to vector<16x32xf32>
    %285 = arith.addf %283, %284 : vector<16x32xf32>
    %c0_142 = arith.constant 0 : index
    %c0_143 = arith.constant 0 : index
    %c0_144 = arith.constant 0 : index
    %286 = vector.load %arg26[%c0_142, %c0_143, %c0_144] : memref<1x32x64xbf16, #tpu.memory_space<vmem>>, vector<1x32x64xbf16>
    %287 = vector.shape_cast %286 : vector<1x32x64xbf16> to vector<32x64xbf16>
    %c0_145 = arith.constant 0 : index
    %c0_146 = arith.constant 0 : index
    %c0_147 = arith.constant 0 : index
    %288 = vector.load %arg27[%c0_145, %c0_146, %c0_147] : memref<1x1x64xf32, #tpu.memory_space<vmem>>, vector<1x1x64xf32>
    %289 = vector.shape_cast %288 : vector<1x1x64xf32> to vector<1x64xf32>
    %c0_148 = arith.constant 0 : index
    %c0_149 = arith.constant 0 : index
    %c0_150 = arith.constant 0 : index
    %290 = vector.load %arg28[%c0_148, %c0_149, %c0_150] : memref<1x64x32xbf16, #tpu.memory_space<vmem>>, vector<1x64x32xbf16>
    %291 = vector.shape_cast %290 : vector<1x64x32xbf16> to vector<64x32xbf16>
    %c0_151 = arith.constant 0 : index
    %c0_152 = arith.constant 0 : index
    %c0_153 = arith.constant 0 : index
    %292 = vector.load %arg29[%c0_151, %c0_152, %c0_153] : memref<1x1x32xf32, #tpu.memory_space<vmem>>, vector<1x1x32xf32>
    %293 = vector.shape_cast %292 : vector<1x1x32xf32> to vector<1x32xf32>
    %c0_154 = arith.constant 0 : index
    %c0_155 = arith.constant 0 : index
    %c0_156 = arith.constant 0 : index
    %294 = vector.load %arg30[%c0_154, %c0_155, %c0_156] : memref<1x1x32xf32, #tpu.memory_space<vmem>>, vector<1x1x32xf32>
    %295 = vector.shape_cast %294 : vector<1x1x32xf32> to vector<1x32xf32>
    %c0_157 = arith.constant 0 : index
    %c0_158 = arith.constant 0 : index
    %c0_159 = arith.constant 0 : index
    %296 = vector.load %arg31[%c0_157, %c0_158, %c0_159] : memref<1x1x32xf32, #tpu.memory_space<vmem>>, vector<1x1x32xf32>
    %297 = vector.shape_cast %296 : vector<1x1x32xf32> to vector<1x32xf32>
    %298 = arith.truncf %285 : vector<16x32xf32> to vector<16x32xbf16>
    %cst_160 = arith.constant dense<0.000000e+00> : vector<16x64xf32>
    %299 = tpu.matmul %298, %287, %cst_160 {dimension_numbers = #tpu.dot_dimension_numbers<[1], [0], [0], [1], [0, 0, 1, 1], [], []>} : vector<16x32xbf16>, vector<32x64xbf16>, vector<16x64xf32> -> vector<16x64xf32>
    %300 = vector.broadcast %289 : vector<1x64xf32> to vector<16x64xf32>
    %301 = arith.addf %299, %300 : vector<16x64xf32>
    %cst_161 = arith.constant 0.000000e+00 : f32
    %302 = vector.broadcast %cst_161 : f32 to vector<16x64xf32>
    %303 = arith.maximumf %301, %302 : vector<16x64xf32>
    %304 = arith.truncf %303 : vector<16x64xf32> to vector<16x64xbf16>
    %cst_162 = arith.constant dense<0.000000e+00> : vector<16x32xf32>
    %305 = tpu.matmul %304, %291, %cst_162 {dimension_numbers = #tpu.dot_dimension_numbers<[1], [0], [0], [1], [0, 0, 1, 1], [], []>} : vector<16x64xbf16>, vector<64x32xbf16>, vector<16x32xf32> -> vector<16x32xf32>
    %306 = vector.broadcast %293 : vector<1x32xf32> to vector<16x32xf32>
    %307 = arith.addf %305, %306 : vector<16x32xf32>
    %308 = arith.addf %285, %307 : vector<16x32xf32>
    %cst_163 = arith.constant dense<0.000000e+00> : vector<16xf32>
    %309 = vector.multi_reduction <add>, %308, %cst_163 [1] : vector<16x32xf32> to vector<16xf32>
    %310 = vector.shape_cast %309 : vector<16xf32> to vector<16x1xf32>
    %cst_164 = arith.constant 3.200000e+01 : f32
    %311 = vector.broadcast %cst_164 : f32 to vector<16x1xf32>
    %312 = arith.divf %310, %311 : vector<16x1xf32>
    %313 = vector.broadcast %312 : vector<16x1xf32> to vector<16x32xf32>
    %314 = arith.subf %308, %313 : vector<16x32xf32>
    %315 = arith.mulf %314, %314 : vector<16x32xf32>
    %cst_165 = arith.constant dense<0.000000e+00> : vector<16xf32>
    %316 = vector.multi_reduction <add>, %315, %cst_165 [1] : vector<16x32xf32> to vector<16xf32>
    %317 = vector.shape_cast %316 : vector<16xf32> to vector<16x1xf32>
    %cst_166 = arith.constant 3.200000e+01 : f32
    %318 = vector.broadcast %cst_166 : f32 to vector<16x1xf32>
    %319 = arith.divf %317, %318 : vector<16x1xf32>
    %cst_167 = arith.constant 9.99999974E-6 : f32
    %320 = vector.broadcast %cst_167 : f32 to vector<16x1xf32>
    %321 = arith.addf %319, %320 : vector<16x1xf32>
    %322 = math.rsqrt %321 : vector<16x1xf32>
    %323 = vector.broadcast %322 : vector<16x1xf32> to vector<16x32xf32>
    %324 = arith.mulf %314, %323 : vector<16x32xf32>
    %325 = vector.broadcast %295 : vector<1x32xf32> to vector<16x32xf32>
    %326 = arith.mulf %324, %325 : vector<16x32xf32>
    %327 = vector.broadcast %297 : vector<1x32xf32> to vector<16x32xf32>
    %328 = arith.addf %326, %327 : vector<16x32xf32>
    %c0_168 = arith.constant 0 : index
    %c0_169 = arith.constant 0 : index
    %329 = vector.load %arg33[%c0_168, %c0_169] : memref<16x32xf32, #tpu.memory_space<vmem>>, vector<16x32xf32>
    tpu.vector_store %arg33[%c0_168, %c0_169], %328 {strides = array<i32>} : memref<16x32xf32, #tpu.memory_space<vmem>>, vector<16x32xf32>,
    %c1_i32 = arith.constant 1 : i32
    %330 = arith.cmpi eq, %arg0, %c1_i32 : i32
    %331 = arith.extui %330 : i1 to i32
    %c0_i32_170 = arith.constant 0 : i32
    %332 = arith.cmpi ne, %331, %c0_i32_170 : i32
    scf.if %332 {
      %c0_171 = arith.constant 0 : index
      %c0_172 = arith.constant 0 : index
      %333 = vector.load %arg33[%c0_171, %c0_172] : memref<16x32xf32, #tpu.memory_space<vmem>>, vector<16x32xf32>
      %c0_173 = arith.constant 0 : index
      %c0_174 = arith.constant 0 : index
      %334 = vector.load %arg32[%c0_173, %c0_174] : memref<16x32xf32, #tpu.memory_space<vmem>>, vector<16x32xf32>
      tpu.vector_store %arg32[%c0_173, %c0_174], %333 {strides = array<i32>} : memref<16x32xf32, #tpu.memory_space<vmem>>, vector<16x32xf32>,
    } else {
    }
    return
  }
  func.func @transform_0(%arg0: i32) -> (i32, i32) {
    %c0_i32 = arith.constant 0 : i32
    %c0_i32_0 = arith.constant 0 : i32
    %c0_i32_1 = arith.constant 0 : i32
    return %c0_i32, %c0_i32_0 : i32, i32
  }
  func.func @transform_1(%arg0: i32) -> (i32, i32) {
    %c0_i32 = arith.constant 0 : i32
    %c0_i32_0 = arith.constant 0 : i32
    %c0_i32_1 = arith.constant 0 : i32
    return %c0_i32, %c0_i32_0 : i32, i32
  }
  func.func @transform_2(%arg0: i32) -> (i32, i32) {
    %c0_i32 = arith.constant 0 : i32
    %c0_i32_0 = arith.constant 0 : i32
    %c0_i32_1 = arith.constant 0 : i32
    return %c0_i32, %c0_i32_0 : i32, i32
  }
  func.func @transform_3(%arg0: i32) -> (i32, i32) {
    %c0_i32 = arith.constant 0 : i32
    %c0_i32_0 = arith.constant 0 : i32
    %c0_i32_1 = arith.constant 0 : i32
    return %c0_i32, %c0_i32_0 : i32, i32
  }
  func.func @transform_4(%arg0: i32) -> (i32, i32) {
    %c0_i32 = arith.constant 0 : i32
    %c0_i32_0 = arith.constant 0 : i32
    %c0_i32_1 = arith.constant 0 : i32
    return %c0_i32, %c0_i32_0 : i32, i32
  }
  func.func @transform_5(%arg0: i32) -> (i32, i32, i32) {
    %c0_i32 = arith.constant 0 : i32
    %c0_i32_0 = arith.constant 0 : i32
    %c0_i32_1 = arith.constant 0 : i32
    return %arg0, %c0_i32, %c0_i32_0 : i32, i32, i32
  }
  func.func @transform_6(%arg0: i32) -> (i32, i32, i32) {
    %c0_i32 = arith.constant 0 : i32
    %c0_i32_0 = arith.constant 0 : i32
    %c0_i32_1 = arith.constant 0 : i32
    return %arg0, %c0_i32, %c0_i32_0 : i32, i32, i32
  }
  func.func @transform_7(%arg0: i32) -> (i32, i32, i32) {
    %c0_i32 = arith.constant 0 : i32
    %c0_i32_0 = arith.constant 0 : i32
    %c0_i32_1 = arith.constant 0 : i32
    return %arg0, %c0_i32, %c0_i32_0 : i32, i32, i32
  }
  func.func @transform_8(%arg0: i32) -> (i32, i32, i32) {
    %c0_i32 = arith.constant 0 : i32
    %c0_i32_0 = arith.constant 0 : i32
    %c0_i32_1 = arith.constant 0 : i32
    return %arg0, %c0_i32, %c0_i32_0 : i32, i32, i32
  }
  func.func @transform_9(%arg0: i32) -> (i32, i32, i32) {
    %c0_i32 = arith.constant 0 : i32
    %c0_i32_0 = arith.constant 0 : i32
    %c0_i32_1 = arith.constant 0 : i32
    return %arg0, %c0_i32, %c0_i32_0 : i32, i32, i32
  }
  func.func @transform_10(%arg0: i32) -> (i32, i32, i32) {
    %c0_i32 = arith.constant 0 : i32
    %c0_i32_0 = arith.constant 0 : i32
    %c0_i32_1 = arith.constant 0 : i32
    return %arg0, %c0_i32, %c0_i32_0 : i32, i32, i32
  }
  func.func @transform_11(%arg0: i32) -> (i32, i32, i32) {
    %c0_i32 = arith.constant 0 : i32
    %c0_i32_0 = arith.constant 0 : i32
    %c0_i32_1 = arith.constant 0 : i32
    return %arg0, %c0_i32, %c0_i32_0 : i32, i32, i32
  }
  func.func @transform_12(%arg0: i32) -> (i32, i32, i32) {
    %c0_i32 = arith.constant 0 : i32
    %c0_i32_0 = arith.constant 0 : i32
    %c0_i32_1 = arith.constant 0 : i32
    return %arg0, %c0_i32, %c0_i32_0 : i32, i32, i32
  }
  func.func @transform_13(%arg0: i32) -> (i32, i32, i32) {
    %c0_i32 = arith.constant 0 : i32
    %c0_i32_0 = arith.constant 0 : i32
    %c0_i32_1 = arith.constant 0 : i32
    return %arg0, %c0_i32, %c0_i32_0 : i32, i32, i32
  }
  func.func @transform_14(%arg0: i32) -> (i32, i32, i32) {
    %c0_i32 = arith.constant 0 : i32
    %c0_i32_0 = arith.constant 0 : i32
    %c0_i32_1 = arith.constant 0 : i32
    return %arg0, %c0_i32, %c0_i32_0 : i32, i32, i32
  }
  func.func @transform_15(%arg0: i32) -> (i32, i32, i32) {
    %c0_i32 = arith.constant 0 : i32
    %c0_i32_0 = arith.constant 0 : i32
    %c0_i32_1 = arith.constant 0 : i32
    return %arg0, %c0_i32, %c0_i32_0 : i32, i32, i32
  }
  func.func @transform_16(%arg0: i32) -> (i32, i32, i32) {
    %c0_i32 = arith.constant 0 : i32
    %c0_i32_0 = arith.constant 0 : i32
    %c0_i32_1 = arith.constant 0 : i32
    return %arg0, %c0_i32, %c0_i32_0 : i32, i32, i32
  }
  func.func @transform_17(%arg0: i32) -> (i32, i32, i32) {
    %c0_i32 = arith.constant 0 : i32
    %c0_i32_0 = arith.constant 0 : i32
    %c0_i32_1 = arith.constant 0 : i32
    return %arg0, %c0_i32, %c0_i32_0 : i32, i32, i32
  }
  func.func @transform_18(%arg0: i32) -> (i32, i32, i32) {
    %c0_i32 = arith.constant 0 : i32
    %c0_i32_0 = arith.constant 0 : i32
    %c0_i32_1 = arith.constant 0 : i32
    return %arg0, %c0_i32, %c0_i32_0 : i32, i32, i32
  }
  func.func @transform_19(%arg0: i32) -> (i32, i32, i32) {
    %c0_i32 = arith.constant 0 : i32
    %c0_i32_0 = arith.constant 0 : i32
    %c0_i32_1 = arith.constant 0 : i32
    return %arg0, %c0_i32, %c0_i32_0 : i32, i32, i32
  }
  func.func @transform_20(%arg0: i32) -> (i32, i32, i32) {
    %c0_i32 = arith.constant 0 : i32
    %c0_i32_0 = arith.constant 0 : i32
    %c0_i32_1 = arith.constant 0 : i32
    return %arg0, %c0_i32, %c0_i32_0 : i32, i32, i32
  }
  func.func @transform_21(%arg0: i32) -> (i32, i32, i32) {
    %c0_i32 = arith.constant 0 : i32
    %c0_i32_0 = arith.constant 0 : i32
    %c0_i32_1 = arith.constant 0 : i32
    return %arg0, %c0_i32, %c0_i32_0 : i32, i32, i32
  }
  func.func @transform_22(%arg0: i32) -> (i32, i32, i32) {
    %c0_i32 = arith.constant 0 : i32
    %c0_i32_0 = arith.constant 0 : i32
    %c0_i32_1 = arith.constant 0 : i32
    return %arg0, %c0_i32, %c0_i32_0 : i32, i32, i32
  }
  func.func @transform_23(%arg0: i32) -> (i32, i32, i32) {
    %c0_i32 = arith.constant 0 : i32
    %c0_i32_0 = arith.constant 0 : i32
    %c0_i32_1 = arith.constant 0 : i32
    return %arg0, %c0_i32, %c0_i32_0 : i32, i32, i32
  }
  func.func @transform_24(%arg0: i32) -> (i32, i32, i32) {
    %c0_i32 = arith.constant 0 : i32
    %c0_i32_0 = arith.constant 0 : i32
    %c0_i32_1 = arith.constant 0 : i32
    return %arg0, %c0_i32, %c0_i32_0 : i32, i32, i32
  }
  func.func @transform_25(%arg0: i32) -> (i32, i32, i32) {
    %c0_i32 = arith.constant 0 : i32
    %c0_i32_0 = arith.constant 0 : i32
    %c0_i32_1 = arith.constant 0 : i32
    return %arg0, %c0_i32, %c0_i32_0 : i32, i32, i32
  }
  func.func @transform_26(%arg0: i32) -> (i32, i32, i32) {
    %c0_i32 = arith.constant 0 : i32
    %c0_i32_0 = arith.constant 0 : i32
    %c0_i32_1 = arith.constant 0 : i32
    return %arg0, %c0_i32, %c0_i32_0 : i32, i32, i32
  }
  func.func @transform_27(%arg0: i32) -> (i32, i32, i32) {
    %c0_i32 = arith.constant 0 : i32
    %c0_i32_0 = arith.constant 0 : i32
    %c0_i32_1 = arith.constant 0 : i32
    return %arg0, %c0_i32, %c0_i32_0 : i32, i32, i32
  }
  func.func @transform_28(%arg0: i32) -> (i32, i32, i32) {
    %c0_i32 = arith.constant 0 : i32
    %c0_i32_0 = arith.constant 0 : i32
    %c0_i32_1 = arith.constant 0 : i32
    return %arg0, %c0_i32, %c0_i32_0 : i32, i32, i32
  }
  func.func @transform_29(%arg0: i32) -> (i32, i32, i32) {
    %c0_i32 = arith.constant 0 : i32
    %c0_i32_0 = arith.constant 0 : i32
    %c0_i32_1 = arith.constant 0 : i32
    return %arg0, %c0_i32, %c0_i32_0 : i32, i32, i32
  }
  func.func @transform_30(%arg0: i32) -> (i32, i32, i32) {
    %c0_i32 = arith.constant 0 : i32
    %c0_i32_0 = arith.constant 0 : i32
    %c0_i32_1 = arith.constant 0 : i32
    return %arg0, %c0_i32, %c0_i32_0 : i32, i32, i32
  }
  func.func @transform_31(%arg0: i32) -> (i32, i32) {
    %c0_i32 = arith.constant 0 : i32
    %c0_i32_0 = arith.constant 0 : i32
    %c0_i32_1 = arith.constant 0 : i32
    return %c0_i32, %c0_i32_0 : i32, i32
  }
}

module attributes {stable_mosaic.version = 11 : i64} {
  func.func @_linear_kernel(%arg0: memref<16x32xf32, #tpu.memory_space<vmem>>, %arg1: memref<32x128xbf16, #tpu.memory_space<vmem>>, %arg2: memref<1x128xf32, #tpu.memory_space<vmem>>, %arg3: memref<16x128xf32, #tpu.memory_space<vmem>>) attributes {dimension_semantics = [], scalar_prefetch = 0 : i64, scratch_operands = 0 : i64, tpu.core_type = #tpu.core_type<tc>} {
    %c0 = arith.constant 0 : index
    %c0_0 = arith.constant 0 : index
    %0 = vector.load %arg0[%c0, %c0_0] : memref<16x32xf32, #tpu.memory_space<vmem>>, vector<16x32xf32>
    %1 = arith.truncf %0 : vector<16x32xf32> to vector<16x32xbf16>
    %c0_1 = arith.constant 0 : index
    %c0_2 = arith.constant 0 : index
    %2 = vector.load %arg1[%c0_1, %c0_2] : memref<32x128xbf16, #tpu.memory_space<vmem>>, vector<32x128xbf16>
    %cst = arith.constant dense<0.000000e+00> : vector<16x128xf32>
    %3 = tpu.matmul %1, %2, %cst {dimension_numbers = #tpu.dot_dimension_numbers<[1], [0], [0], [1], [0, 0, 1, 1], [], []>} : vector<16x32xbf16>, vector<32x128xbf16>, vector<16x128xf32> -> vector<16x128xf32>
    %c0_3 = arith.constant 0 : index
    %c0_4 = arith.constant 0 : index
    %4 = vector.load %arg2[%c0_3, %c0_4] : memref<1x128xf32, #tpu.memory_space<vmem>>, vector<1x128xf32>
    %5 = vector.broadcast %4 : vector<1x128xf32> to vector<16x128xf32>
    %6 = arith.addf %3, %5 : vector<16x128xf32>
    %c0_5 = arith.constant 0 : index
    %c0_6 = arith.constant 0 : index
    %7 = vector.load %arg3[%c0_5, %c0_6] : memref<16x128xf32, #tpu.memory_space<vmem>>, vector<16x128xf32>
    tpu.vector_store %arg3[%c0_5, %c0_6], %6 {strides = array<i32>} : memref<16x128xf32, #tpu.memory_space<vmem>>, vector<16x128xf32>,
    return
  }
}

</mosaic_0001>

<bundles_post_ra>
// kernel: transformer_forward.5
= control target key start
LH: loop header
LB: loop body
LE: loop exit
PB: predicated region body
PF: predicated region fallthrough
CT: control target
= control target key end

     0   :  { %v99_v0 = vmov 0.0   ;;  %vm100_vm0 = vmmov 0   ;;  %vm33_vm1 = vcmask 130048   ;;  %vm78_vm2 = vcmask 261120   ;;  %s139_s1 = inlined_call_operand.vmem [shape: bf16[16,32], index: 1, kind: input, shape index: {}]   ;;  %s140_s0 = inlined_call_operand.vmem [shape: f32[16,16], index: 0, kind: input, shape index: {}]   ;;  %s141_s2 = inlined_call_operand.vmem [shape: f32[1,32], index: 2, kind: input, shape index: {}]   ;;  %s142_s3 = inlined_call_operand.vmem [shape: f32[16,32], index: 3, kind: output, shape index: {}]  }
   0x1   :  { %90 = vmatprep.subr.bf16.mxu0 %v99_v0  ;;  %v98_v1 = vld [vmem:[%s139_s1] sm:$0xff]   ;;  %92 = vmatprep.mubr.msk.bf16.mxu0 %vm100_vm0, %v99_v0  ;;  %v16_v3 = vld [vmem:[%s140_s0 + $0x8] sm:$0xff] }
   0x2   :  { %v15_v2 = vld [vmem:[%s140_s0] sm:$0xff]  ;;  %91 = vmatpush3.bf16.msra.mxu0 %v98_v1 }
   0x3   :  { %v17_v4 = vpack.c.bf16 %v16_v3, %v15_v2  ;;  %v85_v5 = vld [vmem:[%s141_s2] ss:$0 sm:$0xff] }
   0x5   :  { %93 = vmatmul.mubr.msk.bf16.vlgmr.msra.gmra.mrb[0].mxu0 %vm33_vm1, %v17_v4 }
  0xd8   :  { %v71_v6 = vpop.f32.mrb[0].mxu0 }
  0xd9   :  { %v72_v7 = vadd.f32 %v85_v5, %v71_v6  ;;  %v94_v8 = vpop.f32.mrb[1].mxu0 }
  0xda   :  { %v74_v9 = vpop.f32.mrb[2].mxu0 }
  0xdb   :  { %79 = vst.msk [vmem:[%s142_s3] sm:$0xff] %vm78_vm2, %v72_v7  ;;  %v75_v10 = vadd.f32 %v85_v5, %v74_v9  ;;  %v95_v11 = vpop.f32.mrb[3].mxu0 }
  0xdd   :  { %80 = vst.msk [vmem:[%s142_s3 + $0x8] sm:$0xff] %vm78_vm2, %v75_v10 }

// kernel: transformer_forward.6
= control target key start
LH: loop header
LB: loop body
LE: loop exit
PB: predicated region body
PF: predicated region fallthrough
CT: control target
= control target key end

     0   :  { %vm30_vm0 = vcmask 1042432   ;;  %v94_v0 = vmov 0.0   ;;  %vm95_vm1 = vmmov 0   ;;  %vm26_vm2 = vcmask 48128   ;;  %s134_s1 = inlined_call_operand.vmem [shape: bf16[6,32], index: 1, kind: input, shape index: {}]   ;;  %s135_s0 = inlined_call_operand.vmem [shape: f32[16,6], index: 0, kind: input, shape index: {}]   ;;  %s136_s2 = inlined_call_operand.vmem [shape: f32[1,32], index: 2, kind: input, shape index: {}]   ;;  %s137_s3 = inlined_call_operand.vmem [shape: f32[16,32], index: 3, kind: output, shape index: {}]  }
   0x1   :  { %86 = vmatprep.subr.bf16.mxu0 %v94_v0  ;;  %v18_v1 = vld [vmem:[%s134_s1] sm:$0x7]  ;;  %88 = vmatprep.mubr.msk.bf16.mxu0 %vm95_vm1, %v94_v0  ;;  %v16_v3 = vld [vmem:[%s135_s0 + $0x8] sm:$0xff]  ;;  %vm75_vm3 = vcmask 261120  }
   0x2   :  { %v15_v2 = vld [vmem:[%s135_s0] sm:$0xff]  ;;  %v32_v4 = vsel %vm30_vm0, %v18_v1, 0 }
   0x3   :  { %v17_v5 = vpack.c.bf16 %v16_v3, %v15_v2  ;;  %87 = vmatpush3.bf16.msra.mxu0 %v32_v4  ;;  %v82_v6 = vld [vmem:[%s136_s2] ss:$0 sm:$0xff] }
   0x6   :  { %89 = vmatmul.mubr.msk.bf16.vlgmr.msra.gmra.mrb[0].mxu0 %vm26_vm2, %v17_v5 }
  0xd9   :  { %v68_v7 = vpop.f32.mrb[0].mxu0 }
  0xda   :  { %v69_v8 = vadd.f32 %v82_v6, %v68_v7  ;;  %v90_v9 = vpop.f32.mrb[1].mxu0 }
  0xdb   :  { %v71_v10 = vpop.f32.mrb[2].mxu0 }
  0xdc   :  { %76 = vst.msk [vmem:[%s137_s3] sm:$0xff] %vm75_vm3, %v69_v8  ;;  %v72_v11 = vadd.f32 %v82_v6, %v71_v10  ;;  %v91_v12 = vpop.f32.mrb[3].mxu0 }
  0xde   :  { %77 = vst.msk [vmem:[%s137_s3 + $0x8] sm:$0xff] %vm75_vm3, %v72_v11 }

// kernel: transformer_forward.7
= control target key start
LH: loop header
LB: loop body
LE: loop exit
PB: predicated region body
PF: predicated region fallthrough
CT: control target
= control target key end

     0   :  { %s2791_s0 = inlined_call_operand.vmem [shape: f32[16,32], index: 0, kind: input, shape index: {}]   ;;  %s2792_s1 = inlined_call_operand.vmem [shape: s32[16,1], index: 1, kind: input, shape index: {}]   ;;  %s2793_s2 = inlined_call_operand.vmem [shape: s32[1,16], index: 2, kind: input, shape index: {}]   ;;  %s2794_s3 = inlined_call_operand.vmem [shape: bf16[2,32,32], index: 3, kind: input, shape index: {}]   ;;  %s2795_s4 = inlined_call_operand.vmem [shape: f32[2,1,32], index: 4, kind: input, shape index: {}]   ;;  %s2796_s5 = inlined_call_operand.vmem [shape: bf16[2,32,32], index: 5, kind: input, shape index: {}]   ;;  %s2797_s6 = inlined_call_operand.vmem [shape: f32[2,1,32], index: 6, kind: input, shape index: {}]   ;;  %s2798_s7 = inlined_call_operand.vmem [shape: bf16[2,32,32], index: 7, kind: input, shape index: {}]   ;;  %s2799_s8 = inlined_call_operand.vmem [shape: f32[2,1,32], index: 8, kind: input, shape index: {}]   ;;  %s2800_s9 = inlined_call_operand.vmem [shape: bf16[2,32,32], index: 9, kind: input, shape index: {}]   ;;  %s2801_s10 = inlined_call_operand.vmem [shape: f32[2,1,32], index: 10, kind: input, shape index: {}]   ;;  %s2802_s11 = inlined_call_operand.vmem [shape: f32[2,1,32], index: 11, kind: input, shape index: {}]   ;;  %s2803_s12 = inlined_call_operand.vmem [shape: f32[2,1,32], index: 12, kind: input, shape index: {}]   ;;  %s2804_s13 = inlined_call_operand.vmem [shape: bf16[2,32,64], index: 13, kind: input, shape index: {}]   ;;  %s2805_s14 = inlined_call_operand.vmem [shape: f32[2,1,64], index: 14, kind: input, shape index: {}]   ;;  %s2806_s15 = inlined_call_operand.vmem [shape: bf16[2,64,32], index: 15, kind: input, shape index: {}]   ;;  %s2807_s16 = inlined_call_operand.vmem [shape: f32[2,1,32], index: 16, kind: input, shape index: {}]   ;;  %s2808_s17 = inlined_call_operand.vmem [shape: f32[2,1,32], index: 17, kind: input, shape index: {}]   ;;  %s2809_s18 = inlined_call_operand.vmem [shape: f32[2,1,32], index: 18, kind: input, shape index: {}]   ;;  %s2810_s19 = inlined_call_operand.vmem [shape: f32[16,32], index: 19, kind: output, shape index: {}]  }
   0x1   :  { %2816 = sst [smem:[#allocation6_spill]] %s2791_s0  ;;  %s2504_s0 = smov 0  }
   0x2   :  { %2817 = sst [smem:[#allocation7_spill]] %s2792_s1 }
   0x3   :  { %2818 = sst [smem:[#allocation8_spill]] %s2793_s2 }
   0x4   :  { %2819 = sst [smem:[#allocation9_spill]] %s2794_s3 }
   0x5   :  { %2820 = sst [smem:[#allocation10_spill]] %s2795_s4 }
   0x6   :  { %2821 = sst [smem:[#allocation11_spill]] %s2796_s5 }
   0x7   :  { %2822 = sst [smem:[#allocation12_spill]] %s2797_s6 }
   0x8   :  { %2823 = sst [smem:[#allocation13_spill]] %s2798_s7 }
   0x9   :  { %2824 = sst [smem:[#allocation14_spill]] %s2800_s9 }
   0xa   :  { %2825 = sst [smem:[#allocation15_spill]] %s2804_s13 }
   0xb   :  { %2826 = sst [smem:[#allocation16_spill]] %s2809_s18 }
   0xc   :  { %2827 = sst [smem:[#allocation17_spill]] %s2810_s19 }
   0xd LB: > { %2828 = sst [smem:[#allocation4_spill]] %s2392_s0  ;;  %s2510_s30 = sadd.s32 4294967295, %s2392_s0   ;;  %s2392_s0 = sphi %s2504_s0, %s29_s0  }
   0xe   : > { %2829 = sst [smem:[#allocation5_spill]] %s2510_s30  ;;  %p2114_p0 = scmp.ge.s32.totalorder %s2392_s0, 1 }
   0xf   : > { %p662_p1 = scmp.lt.s32.totalorder %s2392_s0, 3 }
  0x11   : > { %p663_p2 = pnand %p2114_p0, %p662_p1 }
  0x12   : > { %p768_p3 = scmp.lt.s32.totalorder (!%p663_p2), %s2510_s30, 1  ;;  %s2831_s25 = sld [smem:[#allocation9_spill]] (!%p663_p2) }
  0x13   : > { %666 = sbr.rel (%p663_p2) target bundleno = 2675 (0xa73), region = 96  ;;  %s2832_s5 = sld [smem:[#allocation11_spill]] (!%p663_p2) }
  0x14   : > { %s2834_s7 = sld [smem:[#allocation13_spill]] (!%p663_p2)  ;;  %s2835_s9 = sld [smem:[#allocation14_spill]] (!%p663_p2) }
  0x15   : > { %s2836_s13 = sld [smem:[#allocation15_spill]] (!%p663_p2)  ;;  %s2837_s19 = sld [smem:[#allocation16_spill]] (!%p663_p2) }
  0x16   : > { %s2838_s24 = sld [smem:[#allocation5_spill]] (!%p663_p2) }
  0x1a   : > { %s2516_s20 = scalar_select %p768_p3, %s2510_s30, 1 }
  0x1c   : > { %s2170_s21 = sshll.u32 %s2516_s20, 4  ;;  %s821_s18 = scalar_lea.vmem %s2807_s16, %s2516_s20 }
  0x1d   : > { %s772_s3 = scalar_lea.vmem %s2831_s25, %s2170_s21  ;;  %s2529_s28 = scalar_lea.vmem %s2832_s5, %s2170_s21 }
  0x1e   : > { %s2538_s1 = scalar_lea.vmem %s2834_s7, %s2170_s21  ;;  %s2547_s4 = scalar_lea.vmem %s2835_s9, %s2170_s21 }
  0x1f   : > { %s2564_s22 = scalar_lea.vmem %s2836_s13, %s2170_s21  ;;  %s2175_s9 = sshll.u32 %s2516_s20, 5 }
  0x20   : > { %s2574_s5 = scalar_lea.vmem %s2806_s15, %s2175_s9  ;;  %s824_s6 = scalar_lea.vmem %s2808_s17, %s2516_s20 }
  0x21   : > { %s827_s13 = scalar_lea.vmem %s2837_s19, %s2516_s20  ;;  %p2127_p4 = scmp.ne.s32.totalorder %s2838_s24, 0 }
  0x22   : > { %s2839_s26 = sld [smem:[#allocation6_spill]] (!%p2127_p4)  ;;  %vm835_vm0 = vcmask (!%p2127_p4), 261120  }
  0x23   : > { %832 = sbr.rel (%p2127_p4) target bundleno = 42 (0x2a), region = 100 }
  0x28   : > { %v833_v0 = vld [vmem:[%s2839_s26] sm:$0xff] (!%p2127_p4)  ;;  %v834_v1 = vld [vmem:[%s2839_s26 + $0x8] sm:$0xff] (!%p2127_p4) }
  0x29   : > { %836 = vst.msk [vmem:[#allocation2] sm:$0xff] (!%p2127_p4), %vm835_vm0, %v833_v0  ;;  %837 = vst.msk [vmem:[#allocation2 + $0x8] sm:$0xff] (!%p2127_p4), %vm835_vm0, %v834_v1 }
  0x2a PF: > { %v2332_v2 = vld [vmem:[%s772_s3] sm:$0xff]   ;;  %v2394_v3 = vmov 0.0   ;;  %v2333_v4 = vld [vmem:[%s772_s3 + $0x8] sm:$0xff]   ;;  %vm2395_vm1 = vmmov 0   ;;  %vm881_vm2 = vcmask 261120   ;;  %s2840_s3 = sld [smem:[#allocation10_spill]]  ;;  %s2847_s25 = scalar_lea.vmem %s2801_s10, %s2516_s20 }
  0x2b   : > { %2212 = vmatprep.subr.bf16.mxu0 %v2394_v3  ;;  %2220 = vmatprep.subr.bf16.mxu1 %v2394_v3  ;;  %v2334_v7 = vld [vmem:[%s2529_s28] sm:$0xff]   ;;  %v2335_v8 = vld [vmem:[%s2529_s28 + $0x8] sm:$0xff]   ;;  %s2396_s23 = smov 112   ;;  %s2397_s0 = smov 120   ;;  %v2399_v27 = vmov 0   ;;  %vm1099_vm3 = vcmask 1043456  }
  0x2c   : > { %2213 = vmatpush3.bf16.msra.mxu0 %v2332_v2  ;;  %2216 = vmatprep.mubr.msk.bf16.mxu0 %vm2395_vm1, %v2394_v3  ;;  %s2398_s29 = smov 104   ;;  %s2842_s2 = sld [smem:[#allocation12_spill]]  ;;  %v2336_v26 = vld [vmem:[%s2538_s1] sm:$0xff]   ;;  %v2337_v28 = vld [vmem:[%s2538_s1 + $0x8] sm:$0xff]   ;;  %vm1095_vm4 = vcmask 64512   ;;  %vm1144_vm7 = vcmask 130048  }
  0x2d   : > { %2214 = vmatprep.subr.bf16.mxu0 %v2394_v3  ;;  %2224 = vmatprep.mubr.msk.bf16.mxu1 %vm2395_vm1, %v2394_v3  ;;  %s2844_s27 = sld [smem:[#allocation7_spill]]  ;;  %v2400_v48 = vmov -1e+30   ;;  %vm1345_vm8 = vcmask 130112   ;;  %vm1475_vm9 = vcmask 195712   ;;  %vm1607_vm10 = vcmask 261312   ;;  %s2848_s7 = scalar_lea.vmem %s2802_s11, %s2516_s20 }
  0x2e   : > { %2221 = vmatpush3.bf16.msra.mxu1 %v2334_v7  ;;  %2330 = vset.pattern.permute.xlu1 %v2399_v27  ;;  %s2850_s21 = scalar_lea.vmem %s2805_s14, %s2516_s20  ;;  %vm1834_vm11 = vcmask 523264  }
  0x2f   : > { %2222 = vmatprep.subr.bf16.mxu1 %v2394_v3 }
  0x30   : > { %v2599_v5 = vld [vmem:[#allocation2] sm:$0xff]  ;;  %v2601_v6 = vld [vmem:[#allocation2 + $0x8] sm:$0xff]  ;;  %2215 = vmatpush3.bf16.msra.mxu0 %v2333_v4  ;;  %s2841_s28 = scalar_lea.vmem %s2840_s3, %s2516_s20  ;;  %s2849_s3 = scalar_lea.vmem %s2803_s12, %s2516_s20 }
  0x31   : > { %v857_v9 = vpack.c.bf16 %v2601_v6, %v2599_v5  ;;  %2228 = vmatprep.subr.bf16.mxu0 %v2394_v3  ;;  %v2129_v10 = vld [vmem:[%s2841_s28] ss:$0 sm:$0xff]  ;;  %s2845_s28 = sld [smem:[#allocation8_spill]] }
  0x32   : > { %2223 = vmatpush3.bf16.msra.mxu1 %v2335_v8  ;;  %s2843_s24 = scalar_lea.vmem %s2842_s2, %s2516_s20  ;;  %s2846_s2 = scalar_lea.vmem %s2799_s8, %s2516_s20 }
  0x33   : > { %2217 = vmatmul.mubr.msk.bf16.vlgmr.msra.gmra.mrb[0].mxu0 %vm881_vm2, %v857_v9  ;;  %2236 = vmatprep.subr.bf16.mxu1 %v2394_v3  ;;  %v2133_v22 = vld [vmem:[%s2843_s24] ss:$0 sm:$0xff]  ;;  %v841_v29 = vld [vmem:[%s2844_s27 + $0x8] sm:$0xff]  ;;  %s2852_s24 = sld [smem:[#allocation5_spill]] }
  0x34   : > { %2232 = vmatprep.mubr.msk.bf16.mxu0 %vm2395_vm1, %v2394_v3  ;;  %v840_v25 = vld [vmem:[%s2844_s27] sm:$0xff]  ;;  %2229 = vmatpush3.bf16.msra.mxu0 %v2336_v26 }
  0x35   : > { %2225 = vmatmul.mubr.msk.bf16.vlgmr.msra.gmra.mrb[0].mxu1 %vm881_vm2, %v857_v9  ;;  %2230 = vmatprep.subr.bf16.mxu0 %v2394_v3 }
  0x36   : > { %2238 = vmatprep.mubr.msk.bf16.mxu1 %vm2395_vm1, %v2394_v3 }
  0x37   : > { %v2128_v46 = vld [vmem:[%s2845_s28] ss:$0 sm:$0xff] }
  0x38   : > { %2231 = vmatpush3.bf16.msra.mxu0 %v2337_v28 }
  0x39   : > { %2242 = vmatprep.subr.bf16.mxu0 %v2394_v3  ;;  %p2167_p5 = scmp.ne.s32.totalorder %s2852_s24, 1 }
  0x3b   : > { %2233 = vmatmul.mubr.msk.bf16.vlgmr.msra.gmra.mrb[4].mxu0 %vm881_vm2, %v857_v9 }
  0x3c   : > { %2244 = vmatprep.mubr.msk.bf16.mxu0 %vm2395_vm1, %v2394_v3 }
 0x106   : > { %v919_v11 = vpop.f32.mrb[0].mxu0 }
 0x107   : > { %v2218_v12 = vpop.f32.mrb[1].mxu0  ;;  %v920_v14 = vadd.f32 %v2129_v10, %v919_v11 }
 0x108   : > { %v922_v13 = vpop.f32.mrb[2].mxu0  ;;  %v983_v17 = vpop.f32.mrb[0].mxu1 }
 0x109   : > { %v923_v15 = vadd.f32 %v2129_v10, %v922_v13  ;;  %v2219_v16 = vpop.f32.mrb[3].mxu0  ;;  %v2226_v18 = vpop.f32.mrb[1].mxu1  ;;  %v984_v23 = vadd.f32 %v2133_v22, %v983_v17 }
 0x10a   : > { %v986_v20 = vpop.f32.mrb[2].mxu1 }
 0x10b   : > { %v1059_v19 = vpack.c.bf16 %v923_v15, %v920_v14  ;;  %v2227_v21 = vpop.f32.mrb[3].mxu1  ;;  %v987_v24 = vadd.f32 %v2133_v22, %v986_v20  ;;  %v2137_v22 = vld [vmem:[%s2846_s2] ss:$0 sm:$0xff] }
 0x10d   : > { %1348 = vrot.lane.b32.xlu1 %v1059_v19, %s2396_s23  ;;  %1215 = vrot.lane.b32.xlu0 %v1059_v19, %s2397_s0 }
 0x111   : > { %1478 = vrot.lane.b32.xlu1 %v1059_v19, %s2398_s29 }
 0x115   : > { %844 = vperm.xlu1 %2330, %v840_v25  }
 0x119   : > { %847 = vperm.xlu1 %2330, %v841_v29  }
 0x12b   : > { %1060 = vxpose.xlu0.b32.start [1/2] (short) (narrow) %v984_v23, 32  ;;  %v1047_v23 = vpop.f32.mrb[4].mxu0 }
 0x12c   : > { %v2234_v25 = vpop.f32.mrb[5].mxu0 }
 0x12d   : > { %v1050_v26 = vpop.f32.mrb[6].mxu0 }
 0x12e   : > { %v2235_v28 = vpop.f32.mrb[7].mxu0 }
 0x12f   : > { %1061 = vxpose.xlu0.b32.end [2/2] (short) (narrow) %v987_v24, 32  ;;  %v1048_v24 = vadd.f32 %v2137_v22, %v1047_v23 }
 0x158   : > { %2331 = vset.pattern.permute.xlu0 %v2399_v27  ;;  %v1051_v27 = vadd.f32 %v2137_v22, %v1050_v26 }
 0x15a   : > { %v1094_v29 = vpack.c.bf16 %v1051_v27, %v1048_v24 }
 0x15c   : > { %2243 = vmatpush3.bf16.msra.mxu0 %v1094_v29 }
 0x15d   : > { %2254 = vmatprep.subr.bf16.mxu0 %v2394_v3 }
 0x17f   : > { %v1216_v30 = vpop.permute.xlu0 %1215  ;;  %v1349_v42 = vpop.permute.xlu1 %1348 }
 0x183   : > { %v1479_v44 = vpop.permute.xlu1 %1478 }
 0x194   : > { %v845_v45 = vpop.permute.xlu1 %844 }
 0x195   : > { %vm853_vm5 = vcmp.eq.s32.totalorder %v845_v45, %v2128_v46 }
 0x196   : > { %v855_v49 = vsel %vm853_vm5, 0.0, %v2400_v48 }
 0x198   : > { %v848_v47 = vpop.permute.xlu1 %847 }
 0x199   : > { %vm854_vm6 = vcmp.eq.s32.totalorder %v848_v47, %v2128_v46 }
 0x19a   : > { %v856_v50 = vsel %vm854_vm6, 0.0, %v2400_v48 }
 0x1ab   : > { %v1076_v31 = vpop.trf.xlu0 }
 0x1af   : > { %v1077_v32 = vpop.trf.xlu0 }
 0x1b0   : > { %v1092_v33 = vpack.c.bf16 %v1077_v32, %v1076_v31 }
 0x1b2   : > { %v1101_v34 = vsel %vm1099_vm3, %v1092_v33, 0  ;;  %v1218_v35 = vrot.slane %v1092_v33, 4 }
 0x1b3   : > { %2237 = vmatpush3.bf16.msra.mxu1 %v1101_v34  ;;  %v1078_v36 = vpop.trf.xlu0 }
 0x1b4   : > { %2248 = vmatprep.subr.bf16.mxu1 %v2394_v3  ;;  %v1223_v37 = vsel %vm1099_vm3, %v1218_v35, 0 }
 0x1b6   : > { %2239 = vmatmul.mubr.msk.bf16.vlgmr.msra.gmra.mrb[4].mxu1 %vm1095_vm4, %v1059_v19 }
 0x1b7   : > { %2249 = vmatpush3.bf16.msra.mxu1 %v1223_v37  ;;  %v1079_v38 = vpop.trf.xlu0  ;;  %2250 = vmatprep.mubr.msk.bf16.mxu1 %vm2395_vm1, %v2394_v3 }
 0x1b8   : > { %v1093_v39 = vpack.c.bf16 %v1079_v38, %v1078_v36  ;;  %2260 = vmatprep.subr.bf16.mxu1 %v2394_v3 }
 0x1ba   : > { %v1354_v40 = vsel %vm1099_vm3, %v1093_v39, 0  ;;  %v1481_v41 = vrot.slane %v1093_v39, 4 }
 0x1bc   : > { %v1486_v43 = vsel %vm1099_vm3, %v1481_v41, 0 }
 0x1be   : > { %2251 = vmatmul.mubr.msk.bf16.vlgmr.msra.gmra.mrb[8].mxu1 %vm1095_vm4, %v1216_v30 }
 0x1bf   : > { %2261 = vmatpush3.bf16.msra.mxu1 %v1354_v40  ;;  %2262 = vmatprep.mubr.msk.bf16.mxu1 %vm2395_vm1, %v2394_v3 }
 0x1c0   : > { %2272 = vmatprep.subr.bf16.mxu1 %v2394_v3 }
 0x1c6   : > { %2263 = vmatmul.mubr.msk.bf16.vlgmr.msra.gmra.mrb[12].mxu1 %vm1095_vm4, %v1349_v42 }
 0x1c7   : > { %2273 = vmatpush3.bf16.msra.mxu1 %v1486_v43  ;;  %2274 = vmatprep.mubr.msk.bf16.mxu1 %vm2395_vm1, %v2394_v3 }
 0x1c8   : > { %2284 = vmatprep.subr.bf16.mxu1 %v2394_v3 }
 0x1ce   : > { %2275 = vmatmul.mubr.msk.bf16.vlgmr.msra.gmra.mrb[16].mxu1 %vm1095_vm4, %v1479_v44 }
 0x1cf   : > { %2288 = vmatprep.mubr.msk.bf16.mxu1 %vm2395_vm1, %v2394_v3 }
 0x289   : > { %v1137_v51 = vpop.f32.mrb[4].mxu1 }
 0x28a   : > { %v1138_v52 = vadd.f32 %v1137_v51, %v855_v49  ;;  %v2240_v53 = vpop.f32.mrb[5].mxu1 }
 0x28b   : > { %v1140_v54 = vpop.f32.mrb[6].mxu1 }
 0x28c   : > { %v1141_v55 = vadd.f32 %v1140_v54, %v856_v50  ;;  %v2241_v56 = vpop.f32.mrb[7].mxu1  ;;  %v1145_v57 = vsel %vm1144_vm7, %v1138_v52, -inf }
 0x28d   : > { %1146 = vmax.xlane.f32.xlu1 %v1145_v57 }
 0x28e   : > { %v1148_v58 = vsel %vm1144_vm7, %v1141_v55, -inf }
 0x28f   : > { %1149 = vmax.xlane.f32.xlu0 %v1148_v58 }
 0x291   : > { %v1259_v59 = vpop.f32.mrb[8].mxu1 }
 0x292   : > { %v1260_v60 = vadd.f32 %v1259_v59, %v855_v49  ;;  %v2252_v61 = vpop.f32.mrb[9].mxu1 }
 0x293   : > { %v1262_v62 = vpop.f32.mrb[10].mxu1 }
 0x294   : > { %v1263_v63 = vadd.f32 %v1262_v62, %v856_v50  ;;  %v2253_v0 = vpop.f32.mrb[11].mxu1  ;;  %v1266_v1 = vsel %vm1144_vm7, %v1260_v60, -inf }
 0x295   : > { %1267 = vmax.xlane.f32.xlu1 %v1266_v1 }
 0x296   : > { %v1269_v2 = vsel %vm1144_vm7, %v1263_v63, -inf }
 0x299   : > { %1270 = vmax.xlane.f32.xlu1 %v1269_v2  ;;  %v1390_v4 = vpop.f32.mrb[12].mxu1 }
 0x29a   : > { %v1391_v7 = vadd.f32 %v1390_v4, %v855_v49  ;;  %v2264_v8 = vpop.f32.mrb[13].mxu1 }
 0x29b   : > { %v1393_v9 = vpop.f32.mrb[14].mxu1 }
 0x29c   : > { %v1394_v10 = vadd.f32 %v1393_v9, %v856_v50  ;;  %v2265_v11 = vpop.f32.mrb[15].mxu1  ;;  %v1397_v12 = vsel %vm1144_vm7, %v1391_v7, -inf }
 0x29d   : > { %1398 = vmax.xlane.f32.xlu1 %v1397_v12 }
 0x29e   : > { %v1400_v13 = vsel %vm1144_vm7, %v1394_v10, -inf }
 0x2a1   : > { %1401 = vmax.xlane.f32.xlu1 %v1400_v13  ;;  %v1522_v14 = vpop.f32.mrb[16].mxu1 }
 0x2a2   : > { %v1523_v15 = vadd.f32 %v1522_v14, %v855_v49  ;;  %v2276_v16 = vpop.f32.mrb[17].mxu1 }
 0x2a3   : > { %v1525_v17 = vpop.f32.mrb[18].mxu1 }
 0x2a4   : > { %v2674_v18 = vadd.f32 %v1525_v17, %v856_v50  ;;  %v2277_v19 = vpop.f32.mrb[19].mxu1  ;;  %v1529_v20 = vsel %vm1144_vm7, %v1523_v15, -inf }
 0x2a5   : > { %1530 = vmax.xlane.f32.xlu1 %v1529_v20 }
 0x2a6   : > { %v1532_v21 = vsel %vm1144_vm7, %v2674_v18, -inf }
 0x2a9   : > { %1533 = vmax.xlane.f32.xlu1 %v1532_v21 }
 0x31a   : > { %v1147_v30 = vpop.xlane.xlu1 %1146 }
 0x31b   : > { %v1151_v31 = vsub.f32 %v1138_v52, %v1147_v30 }
 0x31c   : > { %v1150_v32 = vpop.xlane.xlu0 %1149 }
 0x31d   : > { %v1153_v33 = vmul.f32 1.442695, %v1151_v31  ;;  %v1152_v34 = vsub.f32 %v1141_v55, %v1150_v32 }
 0x31f   : > { %2346 = vpow2.f32 %v1153_v33  ;;  %v1155_v35 = vmul.f32 1.442695, %v1152_v34 }
 0x321   : > { %2348 = vpow2.f32 %v1155_v35 }
 0x322   : > { %v1268_v36 = vpop.xlane.xlu1 %1267 }
 0x323   : > { %v1272_v37 = vsub.f32 %v1260_v60, %v1268_v36 }
 0x325   : > { %v1274_v38 = vmul.f32 1.442695, %v1272_v37 }
 0x326   : > { %v1271_v39 = vpop.xlane.xlu1 %1270 }
 0x327   : > { %2350 = vpow2.f32 %v1274_v38  ;;  %v1273_v40 = vsub.f32 %v1263_v63, %v1271_v39 }
 0x329   : > { %v2347_v41 = vpop.eup %2346  ;;  %v1276_v42 = vmul.f32 1.442695, %v1273_v40 }
 0x32a   : > { %v1399_v43 = vpop.xlane.xlu1 %1398  ;;  %v1157_v44 = vsel %vm1144_vm7, %v2347_v41, 0.0 }
 0x32b   : > { %v2349_v45 = vpop.eup %2348  ;;  %2352 = vpow2.f32 %v1276_v42  ;;  %v1403_v46 = vsub.f32 %v1391_v7, %v1399_v43  ;;  %1158 = vadd.xlane.f32.xlu1 %v1157_v44 }
 0x32c   : > { %v1160_v49 = vsel %vm1144_vm7, %v2349_v45, 0.0 }
 0x32d   : > { %v1405_v47 = vmul.f32 1.442695, %v1403_v46 }
 0x32e   : > { %v1402_v48 = vpop.xlane.xlu1 %1401 }
 0x32f   : > { %2354 = vpow2.f32 %v1405_v47  ;;  %v1404_v50 = vsub.f32 %v1394_v10, %v1402_v48  ;;  %1161 = vadd.xlane.f32.xlu1 %v1160_v49 }
 0x331   : > { %v2351_v51 = vpop.eup %2350  ;;  %v1407_v52 = vmul.f32 1.442695, %v1404_v50 }
 0x332   : > { %v1531_v53 = vpop.xlane.xlu1 %1530  ;;  %v1278_v54 = vsel %vm1144_vm7, %v2351_v51, 0.0 }
 0x333   : > { %2356 = vpow2.f32 %v1407_v52  ;;  %v1535_v55 = vsub.f32 %v1523_v15, %v1531_v53  ;;  %1279 = vadd.xlane.f32.xlu1 %v1278_v54  ;;  %v2338_v52 = vld [vmem:[%s2547_s4] sm:$0xff]   ;;  %v2339_v53 = vld [vmem:[%s2547_s4 + $0x8] sm:$0xff]  }
 0x334   : > { %2285 = vmatpush3.bf16.msra.mxu1 %v2338_v52 }
 0x335   : > { %v2353_v56 = vpop.eup %2352  ;;  %v1537_v57 = vmul.f32 1.442695, %v1535_v55  ;;  %2286 = vmatprep.subr.bf16.mxu1 %v2394_v3 }
 0x336   : > { %v1281_v58 = vsel %vm1144_vm7, %v2353_v56, 0.0  ;;  %v1534_v1 = vpop.xlane.xlu1 %1533 }
 0x337   : > { %2358 = vpow2.f32 %v1537_v57  ;;  %1282 = vadd.xlane.f32.xlu1 %v1281_v58  ;;  %v1536_v2 = vsub.f32 %v2674_v18, %v1534_v1 }
 0x338   : > { %2287 = vmatpush3.bf16.msra.mxu1 %v2339_v53 }
 0x339   : > { %v2355_v59 = vpop.eup %2354  ;;  %v1539_v4 = vmul.f32 1.442695, %v1536_v2  ;;  %2300 = vmatprep.subr.bf16.mxu1 %v2394_v3 }
 0x33a   : > { %v1409_v60 = vsel %vm1144_vm7, %v2355_v59, 0.0 }
 0x33b   : > { %1410 = vadd.xlane.f32.xlu0 %v1409_v60  ;;  %2360 = vpow2.f32 %v1539_v4  ;;  %v2149_v4 = vld [vmem:[%s2847_s25] ss:$0 sm:$0xff] }
 0x33d   : > { %v2357_v61 = vpop.eup %2356 }
 0x33e   : > { %v1412_v62 = vsel %vm1144_vm7, %v2357_v61, 0.0 }
 0x33f   : > { %1413 = vadd.xlane.f32.xlu1 %v1412_v62 }
 0x341   : > { %v2359_v63 = vpop.eup %2358 }
 0x342   : > { %v1541_v0 = vsel %vm1144_vm7, %v2359_v63, 0.0 }
 0x343   : > { %1542 = vadd.xlane.f32.xlu0 %v1541_v0 }
 0x345   : > { %v2361_v7 = vpop.eup %2360 }
 0x346   : > { %v1544_v8 = vsel %vm1144_vm7, %v2361_v7, 0.0 }
 0x350   : > { %1420 = vrot.lane.b32.xlu1 %v1094_v29, %s2396_s23  ;;  %s2401_s23 = smov 8  }
 0x359   : > { %1290 = vrot.lane.b32.xlu0 %v1094_v29, %s2397_s0  ;;  %s2402_s0 = smov 16  }
 0x374   : > { %1545 = vadd.xlane.f32.xlu1 %v1544_v8 }
 0x385   : > { %1552 = vrot.lane.b32.xlu1 %v1094_v29, %s2398_s29  ;;  %s2403_s29 = smov 24  }
 0x3b8   : > { %v1159_v9 = vpop.xlane.xlu1 %1158 }
 0x3b9   : > { %2362 = vrcp.f32 %v1159_v9 }
 0x3bc   : > { %v1162_v10 = vpop.xlane.xlu1 %1161 }
 0x3bd   : > { %2364 = vrcp.f32 %v1162_v10 }
 0x3c0   : > { %v1280_v11 = vpop.xlane.xlu1 %1279 }
 0x3c3   : > { %v2363_v13 = vpop.eup %2362 }
 0x3c4   : > { %v1283_v12 = vpop.xlane.xlu1 %1282  ;;  %v1165_v15 = vmul.f32 %v2363_v13, %v2347_v41 }
 0x3c5   : > { %2366 = vrcp.f32 %v1283_v12 }
 0x3c6   : > { %2368 = vrcp.f32 %v1280_v11 }
 0x3c7   : > { %v2365_v14 = vpop.eup %2364 }
 0x3c8   : > { %v1166_v16 = vmul.f32 %v2365_v14, %v2349_v45  ;;  %v1411_v18 = vpop.xlane.xlu0 %1410 }
 0x3ca   : > { %v1167_v17 = vpack.c.bf16 %v1166_v16, %v1165_v15 }
 0x3cc   : > { %v1414_v19 = vpop.xlane.xlu1 %1413  ;;  %2245 = vmatmul.mubr.msk.bf16.vlgmr.msra.gmra.mrb[8].mxu0 %vm1144_vm7, %v1167_v17 }
 0x3cd   : > { %2370 = vrcp.f32 %v1414_v19  ;;  %2256 = vmatprep.mubr.msk.bf16.mxu0 %vm2395_vm1, %v2394_v3 }
 0x3ce   : > { %2372 = vrcp.f32 %v1411_v18 }
 0x3cf   : > { %v2367_v20 = vpop.eup %2366 }
 0x3d0   : > { %v1543_v21 = vpop.xlane.xlu0 %1542  ;;  %v2369_v22 = vpop.eup %2368  ;;  %v1287_v23 = vmul.f32 %v2367_v20, %v2353_v56 }
 0x3d1   : > { %v1286_v24 = vmul.f32 %v2369_v22, %v2351_v51  ;;  %v1421_v28 = vpop.permute.xlu1 %1420  ;;  %2374 = vrcp.f32 %v1543_v21 }
 0x3d3   : > { %v1288_v26 = vpack.c.bf16 %v1287_v23, %v1286_v24 }
 0x3d4   : > { %v1291_v25 = vpop.permute.xlu0 %1290 }
 0x3d5   : > { %2255 = vmatpush3.bf16.msra.mxu0 %v1291_v25  ;;  %v2340_v25 = vld [vmem:[%s2564_s22] sm:$0xff]  }
 0x3d6   : > { %2266 = vmatprep.subr.bf16.mxu0 %v2394_v3 }
 0x3d7   : > { %v2371_v27 = vpop.eup %2370 }
 0x3d8   : > { %2257 = vmatmul.mubr.msk.bf16.vlgmr.msra.gmra.mrb[12].mxu0 %vm1144_vm7, %v1288_v26  ;;  %v2373_v29 = vpop.eup %2372  ;;  %v1418_v30 = vmul.f32 %v2371_v27, %v2357_v61  ;;  %v2341_v26 = vld [vmem:[%s2564_s22 + $0x8] sm:$0xff]   ;;  %v2342_v27 = vld [vmem:[%s2574_s5] sm:$0xff]   ;;  %s2853_s22 = sld [smem:[#allocation17_spill]] (!%p2167_p5) }
 0x3d9   : > { %2267 = vmatpush3.bf16.msra.mxu0 %v1421_v28  ;;  %2268 = vmatprep.mubr.msk.bf16.mxu0 %vm2395_vm1, %v2394_v3  ;;  %v1417_v31 = vmul.f32 %v2373_v29, %v2355_v59  ;;  %v2343_v28 = vld [vmem:[%s2574_s5 + $0x8] sm:$0xff]  }
 0x3da   : > { %2278 = vmatprep.subr.bf16.mxu0 %v2394_v3 }
 0x3db   : > { %v1419_v32 = vpack.c.bf16 %v1418_v30, %v1417_v31  ;;  %v2375_v35 = vpop.eup %2374 }
 0x3dc   : > { %v1549_v37 = vmul.f32 %v2375_v35, %v2359_v63 }
 0x3e0   : > { %2269 = vmatmul.mubr.msk.bf16.vlgmr.msra.gmra.mrb[16].mxu0 %vm1144_vm7, %v1419_v32 }
 0x3e1   : > { %2280 = vmatprep.mubr.msk.bf16.mxu0 %vm2395_vm1, %v2394_v3 }
 0x401   : > { %v1546_v33 = vpop.xlane.xlu1 %1545 }
 0x402   : > { %2376 = vrcp.f32 %v1546_v33 }
 0x405   : > { %v1553_v34 = vpop.permute.xlu1 %1552 }
 0x406   : > { %2279 = vmatpush3.bf16.msra.mxu0 %v1553_v34 }
 0x407   : > { %2292 = vmatprep.subr.bf16.mxu0 %v2394_v3 }
 0x40c   : > { %v2377_v36 = vpop.eup %2376 }
 0x40d   : > { %v1550_v38 = vmul.f32 %v2377_v36, %v2361_v7 }
 0x40f   : > { %v1551_v39 = vpack.c.bf16 %v1550_v38, %v1549_v37  ;;  %v2153_v37 = vld [vmem:[%s2848_s7] ss:$0 sm:$0xff] }
 0x411   : > { %2281 = vmatmul.mubr.msk.bf16.vlgmr.msra.gmra.mrb[20].mxu0 %vm1144_vm7, %v1551_v39 }
 0x412   : > { %2296 = vmatprep.mubr.msk.bf16.mxu0 %vm2395_vm1, %v2394_v3  ;;  %2293 = vmatpush3.bf16.msra.mxu0 %v2340_v25  ;;  %v2166_v25 = vld [vmem:[%s827_s13] ss:$0 sm:$0xff] }
 0x413   : > { %2294 = vmatprep.subr.bf16.mxu0 %v2394_v3 }
 0x416   : > { %2295 = vmatpush3.bf16.msra.mxu0 %v2341_v26 }
 0x49f   : > { %v1205_v40 = vpop.f32.mrb[8].mxu0 }
 0x4a0   : > { %1212 = vst.msk [vmem:[#allocation3] sm:$0xff] %vm1095_vm4, %v1205_v40  ;;  %v2246_v41 = vpop.f32.mrb[9].mxu0 }
 0x4a1   : > { %v1208_v42 = vpop.f32.mrb[10].mxu0  ;;  %v2154_v41 = vld [vmem:[%s2849_s3] ss:$0 sm:$0xff] }
 0x4a2   : > { %1213 = vst.msk [vmem:[#allocation3 + $0x8] sm:$0xff] %vm1095_vm4, %v1208_v42  ;;  %v2247_v43 = vpop.f32.mrb[11].mxu0 }
 0x4ab   : > { %v1330_v44 = vpop.f32.mrb[12].mxu0 }
 0x4ac   : > { %1339 = vrot.lane.b32.xlu0 %v1330_v44, %s2401_s23  ;;  %v2258_v45 = vpop.f32.mrb[13].mxu0 }
 0x4ad   : > { %v1333_v46 = vpop.f32.mrb[14].mxu0 }
 0x4ae   : > { %1341 = vrot.lane.b32.xlu1 %v1333_v46, %s2401_s23  ;;  %v2259_v47 = vpop.f32.mrb[15].mxu0  ;;  %v2344_v46 = vld [vmem:[%s2574_s5 + $0x10] sm:$0xff]  }
 0x4af   : > { %v2345_v47 = vld [vmem:[%s2574_s5 + $0x18] sm:$0xff]  }
 0x4b3   : > { %v1460_v48 = vpop.f32.mrb[16].mxu0 }
 0x4b4   : > { %1469 = vrot.lane.b32.xlu0 %v1460_v48, %s2402_s0  ;;  %v2270_v49 = vpop.f32.mrb[17].mxu0  ;;  %v2155_v48 = vld [vmem:[%s2850_s21] ss:$0 sm:$0xff] }
 0x4b5   : > { %v1463_v50 = vpop.f32.mrb[18].mxu0 }
 0x4b6   : > { %1471 = vrot.lane.b32.xlu1 %v1463_v50, %s2402_s0  ;;  %v2271_v51 = vpop.f32.mrb[19].mxu0 }
 0x4e4   : > { %v1592_v54 = vpop.f32.mrb[20].mxu0 }
 0x4e5   : > { %1601 = vrot.lane.b32.xlu0 %v1592_v54, %s2403_s29  ;;  %v2282_v55 = vpop.f32.mrb[21].mxu0 }
 0x4e6   : > { %v1595_v56 = vpop.f32.mrb[22].mxu0 }
 0x4e7   : > { %1603 = vrot.lane.b32.xlu1 %v1595_v56, %s2403_s29  ;;  %v2283_v57 = vpop.f32.mrb[23].mxu0 }
 0x51e   : > { %v1340_v58 = vpop.permute.xlu0 %1339 }
 0x51f   : > { %1346 = vst.msk [vmem:[#allocation3] sm:$0xff] %vm1345_vm8, %v1340_v58 }
 0x520   : > { %v1342_v59 = vpop.permute.xlu1 %1341 }
 0x521   : > { %1347 = vst.msk [vmem:[#allocation3 + $0x8] sm:$0xff] %vm1345_vm8, %v1342_v59 }
 0x526   : > { %v1470_v60 = vpop.permute.xlu0 %1469 }
 0x527   : > { %1476 = vst.msk [vmem:[#allocation3] sm:$0xff] %vm1475_vm9, %v1470_v60 }
 0x528   : > { %v1472_v61 = vpop.permute.xlu1 %1471 }
 0x529   : > { %1477 = vst.msk [vmem:[#allocation3 + $0x8] sm:$0xff] %vm1475_vm9, %v1472_v61 }
 0x557   : > { %v1602_v62 = vpop.permute.xlu0 %1601 }
 0x558   : > { %1608 = vst.msk [vmem:[#allocation3] sm:$0xff] %vm1607_vm10, %v1602_v62 }
 0x559   : > { %v1604_v63 = vpop.permute.xlu1 %1603 }
 0x55a   : > { %1609 = vst.msk [vmem:[#allocation3 + $0x8] sm:$0xff] %vm1607_vm10, %v1604_v63 }
 0x55f   : > { %v1610_v0 = vld [vmem:[#allocation3] sm:$0xff] }
 0x561   : > { %v1611_v1 = vld [vmem:[#allocation3 + $0x8] sm:$0xff] }
 0x562   : > { %v1612_v2 = vpack.c.bf16 %v1611_v1, %v1610_v0 }
 0x564   : > { %2289 = vmatmul.mubr.msk.bf16.vlgmr.msra.gmra.mrb[20].mxu1 %vm881_vm2, %v1612_v2 }
 0x565   : > { %2308 = vmatprep.mubr.msk.bf16.mxu1 %vm2395_vm1, %v2394_v3  ;;  %2301 = vmatpush3.bf16.msra.mxu1 %v2342_v27 }
 0x566   : > { %2302 = vmatprep.subr.bf16.mxu1 %v2394_v3 }
 0x569   : > { %2303 = vmatpush3.bf16.msra.mxu1 %v2343_v28 }
 0x56a   : > { %2304 = vmatprep.subr.bf16.mxu1 %v2394_v3 }
 0x56d   : > { %2305 = vmatpush3.bf16.msra.mxu1 %v2344_v46 }
 0x56e   : > { %2306 = vmatprep.subr.bf16.mxu1 %v2394_v3  ;;  %v2159_v3 = vld [vmem:[%s821_s18] ss:$0 sm:$0xff] }
 0x571   : > { %2307 = vmatpush3.bf16.msra.mxu1 %v2345_v47 }
 0x637   : > { %v1668_v7 = vpop.f32.mrb[20].mxu1 }
 0x638   : > { %v1669_v8 = vadd.f32 %v2149_v4, %v1668_v7  ;;  %v2290_v9 = vpop.f32.mrb[21].mxu1 }
 0x639   : > { %v1671_v10 = vpop.f32.mrb[22].mxu1 }
 0x63a   : > { %v1672_v11 = vadd.f32 %v2149_v4, %v1671_v10  ;;  %v2291_v12 = vpop.f32.mrb[23].mxu1  ;;  %v1677_v13 = vadd.f32 %v1669_v8, %v2599_v5 }
 0x63c   : > { %v1679_v14 = vsel %vm881_vm2, %v1677_v13, 0.0  ;;  %v1678_v15 = vadd.f32 %v1672_v11, %v2601_v6 }
 0x63d   : > { %1680 = vadd.xlane.f32.xlu0 %v1679_v14 }
 0x63e   : > { %v1682_v16 = vsel %vm881_vm2, %v1678_v15, 0.0 }
 0x63f   : > { %1683 = vadd.xlane.f32.xlu1 %v1682_v16 }
 0x6ca   : > { %v1681_v17 = vpop.xlane.xlu0 %1680 }
 0x6cb   : > { %v1686_v18 = vmul.f32 0.03125, %v1681_v17 }
 0x6cc   : > { %v1684_v19 = vpop.xlane.xlu1 %1683 }
 0x6cd   : > { %v1688_v20 = vsub.f32 %v1677_v13, %v1686_v18  ;;  %v1687_v21 = vmul.f32 0.03125, %v1684_v19 }
 0x6cf   : > { %v1689_v22 = vsub.f32 %v1678_v15, %v1687_v21  ;;  %v1690_v23 = vmul.f32 %v1688_v20, %v1688_v20 }
 0x6d1   : > { %v1692_v5 = vsel %vm881_vm2, %v1690_v23, 0.0  ;;  %v1691_v24 = vmul.f32 %v1689_v22, %v1689_v22 }
 0x6d2   : > { %1693 = vadd.xlane.f32.xlu0 %v1692_v5  ;;  %v2165_v5 = vld [vmem:[%s824_s6] ss:$0 sm:$0xff] }
 0x6d3   : > { %v1695_v6 = vsel %vm881_vm2, %v1691_v24, 0.0 }
 0x6d6   : > { %1696 = vadd.xlane.f32.xlu0 %v1695_v6 }
 0x75f   : > { %v1694_v29 = vpop.xlane.xlu0 %1693 }
 0x760   : > { %v1698_v30 = vmul.f32 0.03125, %v1694_v29 }
 0x762   : > { %v1700_v31 = vadd.f32 1e-05, %v1698_v30 }
 0x763   : > { %v1697_v32 = vpop.xlane.xlu0 %1696 }
 0x764   : > { %2378 = vrsqrt.f32 %v1700_v31  ;;  %v1699_v33 = vmul.f32 0.03125, %v1697_v32 }
 0x766   : > { %v1701_v34 = vadd.f32 1e-05, %v1699_v33 }
 0x768   : > { %2380 = vrsqrt.f32 %v1701_v34 }
 0x76e   : > { %v2379_v35 = vpop.eup %2378 }
 0x76f   : > { %v1704_v36 = vmul.f32 %v2379_v35, %v1688_v20 }
 0x771   : > { %v1712_v39 = vmul.f32 %v2153_v37, %v1704_v36 }
 0x772   : > { %v2381_v38 = vpop.eup %2380 }
 0x773   : > { %v1705_v40 = vmul.f32 %v2381_v38, %v1689_v22  ;;  %v1720_v43 = vadd.f32 %v2154_v41, %v1712_v39 }
 0x775   : > { %v1713_v42 = vmul.f32 %v2153_v37, %v1705_v40 }
 0x777   : > { %v1721_v44 = vadd.f32 %v2154_v41, %v1713_v42 }
 0x779   : > { %v1738_v45 = vpack.c.bf16 %v1721_v44, %v1720_v43 }
 0x77b   : > { %2297 = vmatmul.mubr.msk.bf16.vlgmr.msra.gmra.mrb[24].mxu0 %vm881_vm2, %v1738_v45 }
 0x84e   : > { %v1794_v49 = vpop.f32.mrb[24].mxu0 }
 0x84f   : > { %v1795_v50 = vadd.f32 %v2155_v48, %v1794_v49  ;;  %v2298_v51 = vpop.f32.mrb[25].mxu0 }
 0x850   : > { %v1797_v52 = vpop.f32.mrb[26].mxu0 }
 0x851   : > { %v1798_v53 = vadd.f32 %v2155_v48, %v1797_v52  ;;  %v2299_v54 = vpop.f32.mrb[27].mxu0  ;;  %v1801_v55 = vmax.f32 %v1795_v50, 0.0 }
 0x853   : > { %v1802_v56 = vmax.f32 %v1798_v53, 0.0 }
 0x855   : > { %v1803_v57 = vpack.c.bf16 %v1802_v56, %v1801_v55 }
 0x857   : > { %2309 = vmatmul.mubr.msk.bf16.vlgmr.msra.gmra.mrb[24].mxu1 %vm1834_vm11, %v1803_v57 }
 0x92a   : > { %v1872_v58 = vpop.f32.mrb[24].mxu1 }
 0x92b   : > { %v1873_v59 = vadd.f32 %v2159_v3, %v1872_v58  ;;  %v2310_v60 = vpop.f32.mrb[25].mxu1 }
 0x92c   : > { %v1875_v61 = vpop.f32.mrb[26].mxu1 }
 0x92d   : > { %v1876_v62 = vadd.f32 %v2159_v3, %v1875_v61  ;;  %v2311_v63 = vpop.f32.mrb[27].mxu1  ;;  %v1879_v0 = vadd.f32 %v1873_v59, %v1720_v43 }
 0x92f   : > { %v1881_v1 = vsel %vm881_vm2, %v1879_v0, 0.0  ;;  %v1880_v2 = vadd.f32 %v1876_v62, %v1721_v44 }
 0x930   : > { %1882 = vadd.xlane.f32.xlu1 %v1881_v1 }
 0x931   : > { %v1884_v4 = vsel %vm881_vm2, %v1880_v2, 0.0 }
 0x932   : > { %1885 = vadd.xlane.f32.xlu0 %v1884_v4 }
 0x9bd   : > { %v1883_v7 = vpop.xlane.xlu1 %1882 }
 0x9be   : > { %v1887_v8 = vmul.f32 0.03125, %v1883_v7 }
 0x9bf   : > { %v1886_v9 = vpop.xlane.xlu0 %1885 }
 0x9c0   : > { %v1889_v10 = vsub.f32 %v1879_v0, %v1887_v8  ;;  %v1888_v11 = vmul.f32 0.03125, %v1886_v9 }
 0x9c2   : > { %v1890_v12 = vsub.f32 %v1880_v2, %v1888_v11  ;;  %v1891_v13 = vmul.f32 %v1889_v10, %v1889_v10 }
 0x9c4   : > { %v1893_v14 = vsel %vm881_vm2, %v1891_v13, 0.0  ;;  %v1892_v15 = vmul.f32 %v1890_v12, %v1890_v12 }
 0x9c5   : > { %1894 = vadd.xlane.f32.xlu1 %v1893_v14 }
 0x9c6   : > { %v1896_v16 = vsel %vm881_vm2, %v1892_v15, 0.0 }
 0x9c7   : > { %1897 = vadd.xlane.f32.xlu0 %v1896_v16 }
 0xa52   : > { %v1895_v17 = vpop.xlane.xlu1 %1894 }
 0xa53   : > { %v1899_v18 = vmul.f32 0.03125, %v1895_v17 }
 0xa54   : > { %v1898_v19 = vpop.xlane.xlu0 %1897 }
 0xa55   : > { %v1901_v20 = vadd.f32 1e-05, %v1899_v18  ;;  %v1900_v21 = vmul.f32 0.03125, %v1898_v19 }
 0xa57   : > { %2382 = vrsqrt.f32 %v1901_v20  ;;  %v1902_v22 = vadd.f32 1e-05, %v1900_v21 }
 0xa59   : > { %2384 = vrsqrt.f32 %v1902_v22 }
 0xa61   : > { %v2383_v23 = vpop.eup %2382 }
 0xa62   : > { %v1905_v24 = vmul.f32 %v2383_v23, %v1889_v10 }
 0xa63   : > { %v2385_v6 = vpop.eup %2384 }
 0xa64   : > { %v1913_v26 = vmul.f32 %v2165_v5, %v1905_v24  ;;  %v1906_v27 = vmul.f32 %v2385_v6, %v1890_v12  ;;  %1928 = sbr.rel (%p2167_p5) target bundleno = 2675 (0xa73), region = 104 }
 0xa66   : > { %v1921_v28 = vadd.f32 %v2166_v25, %v1913_v26  ;;  %v1914_v29 = vmul.f32 %v2165_v5, %v1906_v27 }
 0xa68   : > { %1923 = vst.msk [vmem:[#allocation2] sm:$0xff] %vm881_vm2, %v1921_v28  ;;  %v1922_v30 = vadd.f32 %v2166_v25, %v1914_v29 }
 0xa6a   : > { %1924 = vst.msk [vmem:[#allocation2 + $0x8] sm:$0xff] %vm881_vm2, %v1922_v30 }
 0xa6f   : > { %v1929_v31 = vld [vmem:[#allocation2] sm:$0xff] }
 0xa70   : > { %1931 = vst.msk [vmem:[%s2853_s22] sm:$0xff] %vm881_vm2, %v1929_v31 }
 0xa71   : > { %v1930_v32 = vld [vmem:[#allocation2 + $0x8] sm:$0xff] }
 0xa72   : > { %1932 = vst.msk [vmem:[%s2853_s22 + $0x8] sm:$0xff] %vm881_vm2, %v1930_v32 }
 0xa73 PF: > { %s2854_s9 = sld [smem:[#allocation4_spill]] }
 0xa79   : > { %s29_s0 = sadd.s32 1, %s2854_s9  }
 0xa7a   : > { %p26_p6 = scmp.ge.s32.totalorder %s29_s0, 4  }
 0xa7c   :  { %28 = sbr.rel (!%p26_p6) target bundleno = 13 (0xd), region = 175 }

// kernel: transformer_forward.9
= control target key start
LH: loop header
LB: loop body
LE: loop exit
PB: predicated region body
PF: predicated region fallthrough
CT: control target
= control target key end

     0   :  { %v111_v0 = vmov 0.0   ;;  %vm112_vm0 = vmmov 0   ;;  %vm41_vm1 = vcmask 261120   ;;  %s154_s1 = inlined_call_operand.vmem [shape: bf16[32,128], index: 1, kind: input, shape index: {}]   ;;  %s155_s0 = inlined_call_operand.vmem [shape: f32[16,32], index: 0, kind: input, shape index: {}]   ;;  %s156_s2 = inlined_call_operand.vmem [shape: f32[1,128], index: 2, kind: input, shape index: {}]   ;;  %s157_s3 = inlined_call_operand.vmem [shape: f32[16,128], index: 3, kind: output, shape index: {}]  }
   0x1   :  { %99 = vmatprep.subr.bf16.mxu0 %v111_v0  ;;  %v109_v1 = vld [vmem:[%s154_s1] sm:$0xff]   ;;  %103 = vmatprep.mubr.msk.bf16.mxu0 %vm112_vm0, %v111_v0  ;;  %v110_v2 = vld [vmem:[%s154_s1 + $0x8] sm:$0xff]  }
   0x2   :  { %100 = vmatpush3.bf16.msra.mxu0 %v109_v1  ;;  %v15_v3 = vld [vmem:[%s155_s0] sm:$0xff]  ;;  %v16_v4 = vld [vmem:[%s155_s0 + $0x8] sm:$0xff] }
   0x3   :  { %101 = vmatprep.subr.bf16.mxu0 %v111_v0  ;;  %v17_v5 = vpack.c.bf16 %v16_v4, %v15_v3  ;;  %v92_v6 = vld [vmem:[%s156_s2] ss:$0 sm:$0xff] }
   0x6   :  { %102 = vmatpush3.bf16.msra.mxu0 %v110_v2 }
   0x9   :  { %104 = vmatmul.mubr.msk.bf16.vlgmr.msra.gmra.mrb[0].mxu0 %vm41_vm1, %v17_v5 }
  0xdc   :  { %v79_v7 = vpop.f32.mrb[0].mxu0 }
  0xdd   :  { %v80_v8 = vadd.f32 %v92_v6, %v79_v7  ;;  %v105_v9 = vpop.f32.mrb[1].mxu0 }
  0xde   :  { %v82_v10 = vpop.f32.mrb[2].mxu0 }
  0xdf   :  { %86 = vst [vmem:[%s157_s3] sm:$0xff] %v80_v8  ;;  %v83_v11 = vadd.f32 %v92_v6, %v82_v10  ;;  %v106_v12 = vpop.f32.mrb[3].mxu0 }
  0xe1   :  { %87 = vst [vmem:[%s157_s3 + $0x8] sm:$0xff] %v83_v11 }

// kernel: transformer_forward.8
= control target key start
LH: loop header
LB: loop body
LE: loop exit
PB: predicated region body
PF: predicated region fallthrough
CT: control target
= control target key end

     0   :  { %s4597_s6 = smov 1   ;;  %s4598_s10 = smov 2   ;;  %s5444_s0 = inlined_call_operand.smem [shape: u32[32], index: -1, kind: input, shape index: {}] }
   0x1   :  { %s4652_s5 = sld [smem:[%s5444_s0]]   ;;  %s4599_s14 = smov 3  }
   0x2   :  { %s4657_s9 = sld [smem:[%s5444_s0 + %s4597_s6]]   ;;  %s4600_s18 = smov 4  }
   0x3   :  { %s4662_s13 = sld [smem:[%s5444_s0 + %s4598_s10]]   ;;  %s4601_s22 = smov 5  }
   0x4   :  { %s4667_s17 = sld [smem:[%s5444_s0 + %s4599_s14]]   ;;  %s4602_s26 = smov 6  }
   0x5   :  { %s4672_s21 = sld [smem:[%s5444_s0 + %s4600_s18]]   ;;  %s4603_s30 = smov 7  }
   0x6   :  { %s4677_s25 = sld [smem:[%s5444_s0 + %s4601_s22]]   ;;  %s4604_s4 = smov 8  }
   0x7   :  { %5470 = sst [smem:[#allocation18_spill]] %s4652_s5  ;;  %s4605_s10 = smov 9  }
   0x8   :  { %5471 = sst [smem:[#allocation19_spill]] %s4657_s9  ;;  %s4606_s15 = smov 10  }
   0x9   :  { %5472 = sst [smem:[#allocation20_spill]] %s4662_s13  ;;  %s4607_s20 = smov 11  }
   0xa   :  { %5473 = sst [smem:[#allocation21_spill]] %s4667_s17  ;;  %s4609_s1 = smov 13  }
   0xb   :  { %5474 = sst [smem:[#allocation22_spill]] %s4672_s21  ;;  %s4610_s7 = smov 14  }
   0xc   :  { %5475 = sst [smem:[#allocation23_spill]] %s4677_s25  ;;  %s4612_s22 = smov 16  }
   0xd   :  { %s4682_s29 = sld [smem:[%s5444_s0 + %s4602_s26]]   ;;  %s4608_s26 = smov 12  }
   0xe   :  { %s4687_s3 = sld [smem:[%s5444_s0 + %s4603_s30]]   ;;  %s4613_s28 = smov 17  }
   0xf   :  { %s4692_s8 = sld [smem:[%s5444_s0 + %s4604_s4]]  }
  0x10   :  { %s4697_s14 = sld [smem:[%s5444_s0 + %s4605_s10]]  }
  0x11   :  { %s4702_s19 = sld [smem:[%s5444_s0 + %s4606_s15]]   ;;  %s4611_s15 = smov 15  }
  0x12   :  { %s4707_s24 = sld [smem:[%s5444_s0 + %s4607_s20]]  }
  0x13   :  { %5476 = sst [smem:[#allocation24_spill]] %s4682_s29 }
  0x14   :  { %5477 = sst [smem:[#allocation25_spill]] %s4687_s3 }
  0x15   :  { %5478 = sst [smem:[#allocation26_spill]] %s4692_s8 }
  0x16   :  { %5479 = sst [smem:[#allocation27_spill]] %s4697_s14 }
  0x17   :  { %s4712_s30 = sld [smem:[%s5444_s0 + %s4608_s26]]  }
  0x18   :  { %5480 = sst [smem:[#allocation28_spill]] %s4707_s24 }
  0x19   :  { %s4717_s6 = sld [smem:[%s5444_s0 + %s4609_s1]]  }
  0x1a   :  { %s4722_s12 = sld [smem:[%s5444_s0 + %s4610_s7]]   ;;  %s4614_s7 = smov 18  }
  0x1b   :  { %s4727_s20 = sld [smem:[%s5444_s0 + %s4611_s15]]   ;;  %s4615_s15 = smov 19  }
  0x1c   :  { %s4732_s27 = sld [smem:[%s5444_s0 + %s4612_s22]]   ;;  %s4616_s22 = smov 20  }
  0x1d   :  { %5481 = sst [smem:[#allocation29_spill]] %s4712_s30 }
  0x1e   :  { %s4737_s4 = sld [smem:[%s5444_s0 + %s4613_s28]]   ;;  %s4617_s28 = smov 21  }
  0x1f   :  { %5482 = sst [smem:[#allocation30_spill]] %s4717_s6 }
  0x20   :  { %5483 = sst [smem:[#allocation31_spill]] %s4722_s12 }
  0x21   :  { %5484 = sst [smem:[#allocation32_spill]] %s4727_s20 }
  0x22   :  { %5485 = sst [smem:[#allocation33_spill]] %s4732_s27 }
  0x23   :  { %s4742_s9 = sld [smem:[%s5444_s0 + %s4614_s7]]   ;;  %s4618_s7 = smov 22  }
  0x24   :  { %5486 = sst [smem:[#allocation34_spill]] %s4737_s4 }
  0x25   :  { %s4747_s17 = sld [smem:[%s5444_s0 + %s4615_s15]]   ;;  %s4619_s15 = smov 23  }
  0x26   :  { %s4752_s21 = sld [smem:[%s5444_s0 + %s4616_s22]]   ;;  %s4620_s22 = smov 24  }
  0x27   :  { %s4757_s13 = sld [smem:[%s5444_s0 + %s4617_s28]]   ;;  %s4621_s28 = smov 25  }
  0x28   :  { %s4762_s5 = sld [smem:[%s5444_s0 + %s4618_s7]]   ;;  %s4622_s7 = smov 26  }
  0x29   :  { %5487 = sst [smem:[#allocation35_spill]] %s4742_s9 }
  0x2b   :  { %5488 = sst [smem:[#allocation36_spill]] %s4747_s17 }
  0x2c   :  { %5489 = sst [smem:[#allocation37_spill]] %s4752_s21 }
  0x2d   :  { %5490 = sst [smem:[#allocation38_spill]] %s4757_s13 }
  0x2e   :  { %5491 = sst [smem:[#allocation39_spill]] %s4762_s5 }
  0x2f   :  { %s4767_s17 = sld [smem:[%s5444_s0 + %s4619_s15]]   ;;  %s4623_s15 = smov 27  }
  0x30   :  { %s4772_s21 = sld [smem:[%s5444_s0 + %s4620_s22]]   ;;  %s4624_s22 = smov 28  }
  0x31   :  { %s4777_s13 = sld [smem:[%s5444_s0 + %s4621_s28]]   ;;  %s4625_s28 = smov 29  }
  0x32   :  { %s4782_s5 = sld [smem:[%s5444_s0 + %s4622_s7]]   ;;  %s4626_s7 = smov 30  }
  0x33   :  { %s4787_s9 = sld [smem:[%s5444_s0 + %s4623_s15]]   ;;  %s4627_s15 = smov 31  }
  0x34   :  { %s4792_s4 = sld [smem:[%s5444_s0 + %s4624_s22]]  }
  0x35   :  { %5492 = sst [smem:[#allocation40_spill]] %s4767_s17 }
  0x36   :  { %5493 = sst [smem:[#allocation41_spill]] %s4772_s21 }
  0x37   :  { %5494 = sst [smem:[#allocation42_spill]] %s4777_s13 }
  0x38   :  { %5495 = sst [smem:[#allocation43_spill]] %s4782_s5 }
  0x39   :  { %5496 = sst [smem:[#allocation44_spill]] %s4787_s9 }
  0x3a   :  { %5497 = sst [smem:[#allocation45_spill]] %s4792_s4 }
  0x3b   :  { %s4797_s13 = sld [smem:[%s5444_s0 + %s4625_s28]]  }
  0x3c   :  { %s4802_s27 = sld [smem:[%s5444_s0 + %s4626_s7]]  }
  0x3d   :  { %s4807_s9 = sld [smem:[%s5444_s0 + %s4627_s15]]  }
  0x41   :  { %5498 = sst [smem:[#allocation46_spill]] %s4797_s13 }
  0x42   :  { %5499 = sst [smem:[#allocation47_spill]] %s4802_s27 }
  0x43   :  { %5500 = sst [smem:[#allocation48_spill]] %s4807_s9 }
  0x44   :  { %68 = vsyncpa [#allocation5], 0 }
  0x45   :  { %70 = vsyncpa [#allocation5 + $0x1], 0 }
  0x46   :  { %71 = vsyncpa [#allocation7], 0 }
  0x47   :  { %73 = vsyncpa [#allocation7 + $0x1], 0 }
  0x48   :  { %74 = vsyncpa [#allocation10], 0 }
  0x49   :  { %76 = vsyncpa [#allocation10 + $0x1], 0 }
  0x4a   :  { %77 = vsyncpa [#allocation13], 0 }
  0x4b   :  { %79 = vsyncpa [#allocation13 + $0x1], 0  ;;  %s4809_s22 = smov 0   ;;  %s4811_s23 = smov 0  }
  0x4c   :  { %s4813_s26 = smov 0   ;;  %s4815_s28 = smov 0  }
  0x4d LB: > { %s5501_s27 = sld [smem:[#allocation47_spill]]  ;;  %s5502_s17 = sld [smem:[#allocation40_spill]]  ;;  %s4587_s23 = sphi %s4811_s23, %s5580_s23   ;;  %s4583_s22 = sphi %s4809_s22, %s5579_s22   ;;  %s4595_s28 = sphi %s4815_s28, %s5578_s28   ;;  %s4591_s26 = sphi %s4813_s26, %s5581_s26  }
  0x4e   : > { %s5503_s13 = sld [smem:[#allocation46_spill]]  ;;  %s5504_s5 = sld [smem:[#allocation43_spill]] }
  0x4f   : > { %s5505_s4 = sld [smem:[#allocation45_spill]]  ;;  %s5506_s21 = sld [smem:[#allocation41_spill]] }
  0x50   : > { %5507 = sst [smem:[#allocation49_spill]] %s4587_s23  ;;  %s4828_s0 = sadd.s32 4294967295, %s4595_s28  }
  0x51   : > { %5508 = sst [smem:[#allocation50_spill]] %s4591_s26  ;;  %s4831_s1 = sadd.s32 1, %s4595_s28  }
  0x52   : > { %5509 = sst [smem:[#allocation51_spill]] %s4828_s0  ;;  %s662_s2 = ssub.s32 %s4595_s28, %s4831_s1 }
  0x53   : > { %5510 = sst [smem:[#allocation52_spill]] %s4831_s1  ;;  %s665_s7 = sadd.s32 1, %s4591_s26 }
  0x54   : > { %p663_p0 = scmp.eq.s32.totalorder %s662_s2, 0  ;;  %p672_p1 = scmp.ne.s32.totalorder %s4591_s26, %s4587_s23 }
  0x55   : > { %p673_p2 = scmp.eq.s32.totalorder %s4595_s28, 0  ;;  %p678_p3 = scmp.ne.s32.totalorder %s4587_s23, %s4583_s22 }
  0x56   : > { %s4841_s10 = scalar_select %p663_p0, %s4591_s26, %s665_s7  }
  0x57   : > { %p674_p4 = por %p673_p2, %p672_p1  ;;  %p679_p5 = scmp.eq.s32.totalorder %s4828_s0, 0 }
  0x58   : > { %5511 = sst [smem:[#allocation53_spill]] %s4841_s10  ;;  %p4195_p6 = scmp.lt.s32.totalorder %s4595_s28, 2 }
  0x59   : > { %p4845_p7 = por %p679_p5, %p678_p3  ;;  %s4850_s15 = sand.u32 1, %s4591_s26  }
  0x5a   : > { %s4853_s16 = sshll.u32 %s4595_s28, 4  ;;  %p4855_p8 = pnand %p4195_p6, %p674_p4 }
  0x5b   : > { %s5512_s11 = scalar_select %p4845_p7, 1, 0 }
  0x5c   : > { %s5513_s18 = scalar_select %p4855_p8, 1, 0 }
  0x5d   : > { %s5453_s22 = sand.u32 1, %s4595_s28   ;;  %s4862_s2 = scalar_lea.hbm %s5506_s21, %s4853_s16 }
  0x5e   : > { %s1064_s7 = scalar_lea.vmem [#allocation6], %s4850_s15  ;;  %s4870_s26 = scalar_lea.sflag [#allocation7], %s5453_s22 }
  0x5f   : > { %s1071_s10 = sshll.u32 %s1064_s7, 4  ;;  %s4369_s1 = scalar_lea.hbm %s4862_s2, 16  ;;  %s4865_s10 = int_to_ptr.vmem [resolvable:$true] %s1071_s10 }
  0x60   : > { %p4370_p10 = scmp.ne.s32.totalorder %s4862_s2, %s4369_s1  ;;  %p4876_p11 = pneg %p4855_p8 }
  0x61   : > { %s4374_s20 = scalar_lea.hbm %s5506_s21, 32  ;;  %p4375_p0 = scmp.lt.u32.totalorder %s4862_s2, %s5506_s21 }
  0x62   : > { %p4372_p12 = pnand %p4876_p11, %p4370_p10  ;;  %p4376_p1 = scmp.lt.u32.totalorder %s4374_s20, %s4369_s1 }
  0x63   : > { %p4378_p3 = scmp.lt.u32.totalorder %s4369_s1, %s4862_s2 }
  0x64   : > { %p4373_p13 = pneg %p4372_p12  ;;  %p4377_p2 = por %p4376_p1, %p4375_p0 }
  0x66   : > { %p4379_p4 = por %p4378_p3, %p4377_p2 }
  0x68   : > { %p4380_p5 = pnand %p4379_p4, %p4373_p13 }
  0x6a   : > { %4383 = shalt.err (!%p4380_p5)
}
  0x6b   : > { %s4384_s7 = scalar_lea.vmem %s4865_s10, 16  ;;  %s4628_s22 = smov [#allocation6]  }
  0x6c   : > { %p4385_p6 = scmp.ne.s32.totalorder %s4865_s10, %s4384_s7  ;;  %s4389_s12 = sshll.u32 %s4628_s22, 4  ;;  %s4390_s12 = int_to_ptr.vmem [resolvable:$false] %s4389_s12 }
  0x6d   : > { %s4391_s6 = scalar_lea.vmem %s4390_s12, 32  ;;  %p4392_p10 = scmp.lt.s32.totalorder %s4865_s10, %s4390_s12 }
  0x6e   : > { %p4387_p9 = pnand %p4385_p6, %p4876_p11  ;;  %p4393_p12 = scmp.lt.s32.totalorder %s4391_s6, %s4384_s7 }
  0x70   : > { %p4388_p7 = pneg %p4387_p9  ;;  %p4394_p0 = por %p4393_p12, %p4392_p10 }
  0x72   : > { %p4395_p1 = pnand %p4394_p0, %p4388_p7 }
  0x74   : > { %4398 = shalt.err (!%p4395_p1)
}
  0x75   : > { %4182 = dma.hbm_to_vmem [thread:$0]  (!%p4855_p8), %s4862_s2, 16, %s4865_s10, %s4870_s26  }
  0x76   : > { %p1160_p9 = scmp.lt.s32.totalorder %s4595_s28, 3  ;;  %s4899_s6 = scalar_lea.hbm %s5505_s4, %s4853_s16 }
  0x77   : > { %p5515_p7 = scmp.ge.s32.totalorder %s4595_s28, 1  ;;  %s1114_s20 = scalar_lea.vmem [#allocation9], %s4850_s15 }
  0x78   : > { %s1121_s1 = sshll.u32 %s1114_s20, 4  ;;  %s5517_s22 = sand.u32 1, %s4595_s28   ;;  %s1122_s1 = int_to_ptr.vmem [resolvable:$true] %s1121_s1 }
  0x79   : > { %p4903_p13 = pnand %p5515_p7, %p1160_p9  ;;  %s4910_s7 = scalar_lea.sflag [#allocation10], %s5517_s22 }
  0x7a   : > { %s4399_s21 = scalar_lea.hbm %s4899_s6, 16  ;;  %s4404_s10 = scalar_lea.hbm %s5505_s4, 32 }
  0x7b   : > { %s5516_s12 = scalar_select %p4903_p13, 1, 0 }
  0x7c   : > { %p4400_p2 = scmp.ne.s32.totalorder %s4899_s6, %s4399_s21  ;;  %p4405_p5 = scmp.lt.u32.totalorder %s4899_s6, %s5505_s4 }
  0x7d   : > { %p4406_p6 = scmp.lt.u32.totalorder %s4404_s10, %s4399_s21  ;;  %p4408_p12 = scmp.lt.u32.totalorder %s4399_s21, %s4899_s6 }
  0x7e   : > { %p4402_p3 = pnand %p4400_p2, %p4876_p11 }
  0x7f   : > { %p4407_p10 = por %p4406_p6, %p4405_p5 }
  0x80   : > { %p4403_p4 = pneg %p4402_p3 }
  0x81   : > { %p4409_p0 = por %p4408_p12, %p4407_p10 }
  0x83   : > { %p4410_p1 = pnand %p4409_p0, %p4403_p4 }
  0x85   : > { %4413 = shalt.err (!%p4410_p1)
}
  0x86   : > { %s4414_s2 = scalar_lea.vmem %s1122_s1, 16  ;;  %s4629_s28 = smov [#allocation9]  }
  0x87   : > { %p4415_p9 = scmp.ne.s32.totalorder %s1122_s1, %s4414_s2  ;;  %s4419_s20 = sshll.u32 %s4629_s28, 4  ;;  %s4420_s20 = int_to_ptr.vmem [resolvable:$false] %s4419_s20 }
  0x88   : > { %s4421_s22 = scalar_lea.vmem %s4420_s20, 32  ;;  %p4422_p2 = scmp.lt.s32.totalorder %s1122_s1, %s4420_s20 }
  0x89   : > { %p4417_p7 = pnand %p4415_p9, %p4876_p11  ;;  %p4423_p3 = scmp.lt.s32.totalorder %s4421_s22, %s4414_s2 }
  0x8b   : > { %p4418_p13 = pneg %p4417_p7  ;;  %p4424_p8 = por %p4423_p3, %p4422_p2 }
  0x8d   : > { %p4425_p5 = pnand %p4424_p8, %p4418_p13 }
  0x8f   : > { %4428 = shalt.err (!%p4425_p5)
}
  0x90   : > { %p5518_p6 = scmp.ne.s32.totalorder %s5513_s18, 0  ;;  %s4928_s21 = scalar_lea.hbm %s5502_s17, %s4853_s16 }
  0x91   : > { %s1047_s10 = scalar_lea.vmem [#allocation4], %s4850_s15  ;;  %s4935_s28 = scalar_lea.hbm %s5504_s5, %s4853_s16 }
  0x92   : > { %4188 = dma.hbm_to_vmem [thread:$0]  (!%p5518_p6), %s4899_s6, 16, %s1122_s1, %s4910_s7  }
  0x93   : > { %s1054_s2 = sshll.u32 %s1047_s10, 4  ;;  %s1045_s20 = scalar_lea.sflag [#allocation5], %s4850_s15  ;;  %s4931_s2 = int_to_ptr.vmem [resolvable:$true] %s1054_s2 }
  0x94   : > { %s4429_s22 = scalar_lea.hbm %s4928_s21, 16  ;;  %s4434_s4 = scalar_lea.hbm %s5502_s17, 32 }
  0x95   : > { %p4430_p8 = scmp.ne.s32.totalorder %s4928_s21, %s4429_s22  ;;  %p4435_p10 = scmp.lt.u32.totalorder %s4928_s21, %s5502_s17 }
  0x96   : > { %p4436_p12 = scmp.lt.u32.totalorder %s4434_s4, %s4429_s22  ;;  %p4438_p1 = scmp.lt.u32.totalorder %s4429_s22, %s4928_s21 }
  0x97   : > { %p4432_p13 = pnand %p4430_p8, %p4876_p11 }
  0x98   : > { %p4437_p0 = por %p4436_p12, %p4435_p10 }
  0x99   : > { %p4433_p4 = pneg %p4432_p13 }
  0x9a   : > { %p4439_p9 = por %p4438_p1, %p4437_p0 }
  0x9c   : > { %p4440_p7 = pnand %p4439_p9, %p4433_p4 }
  0x9e   : > { %4443 = shalt.err (!%p4440_p7)
}
  0x9f   : > { %s4444_s6 = scalar_lea.vmem %s4931_s2, 16  ;;  %s4630_s1 = smov [#allocation4]  }
  0xa0   : > { %p4445_p2 = scmp.ne.s32.totalorder %s4931_s2, %s4444_s6  ;;  %s4449_s10 = sshll.u32 %s4630_s1, 4  ;;  %s4450_s10 = int_to_ptr.vmem [resolvable:$false] %s4449_s10 }
  0xa1   : > { %s4451_s30 = scalar_lea.vmem %s4450_s10, 32  ;;  %p4452_p8 = scmp.lt.s32.totalorder %s4931_s2, %s4450_s10 }
  0xa2   : > { %p4447_p3 = pnand %p4445_p2, %p4876_p11  ;;  %p4453_p13 = scmp.lt.s32.totalorder %s4451_s30, %s4444_s6 }
  0xa4   : > { %p4448_p5 = pneg %p4447_p3  ;;  %p4454_p10 = por %p4453_p13, %p4452_p8 }
  0xa6   : > { %p4455_p12 = pnand %p4454_p10, %p4448_p5 }
  0xa8   : > { %4458 = shalt.err (!%p4455_p12)
}
  0xa9   : > { %4179 = dma.hbm_to_vmem [thread:$0]  (!%p5518_p6), %s4928_s21, 16, %s4931_s2, %s1045_s20  }
  0xaa   : > { %s1089_s4 = scalar_lea.vmem [#allocation8], %s4850_s15  ;;  %s4958_s22 = scalar_lea.hbm %s5503_s13, %s4853_s16 }
  0xab   : > { %s1096_s30 = sshll.u32 %s1089_s4, 4  ;;  %s4459_s6 = scalar_lea.hbm %s4935_s28, 16  ;;  %s1097_s30 = int_to_ptr.vmem [resolvable:$true] %s1096_s30 }
  0xac   : > { %p4460_p4 = scmp.ne.s32.totalorder %s4935_s28, %s4459_s6  ;;  %s4464_s1 = scalar_lea.hbm %s5504_s5, 32 }
  0xad   : > { %p4465_p9 = scmp.lt.u32.totalorder %s4935_s28, %s5504_s5  ;;  %p4466_p7 = scmp.lt.u32.totalorder %s4464_s1, %s4459_s6 }
  0xae   : > { %p4462_p0 = pnand %p4460_p4, %p4876_p11  ;;  %p4468_p3 = scmp.lt.u32.totalorder %s4459_s6, %s4935_s28 }
  0xaf   : > { %p4467_p2 = por %p4466_p7, %p4465_p9 }
  0xb0   : > { %p4463_p1 = pneg %p4462_p0 }
  0xb1   : > { %p4469_p5 = por %p4468_p3, %p4467_p2 }
  0xb3   : > { %p4470_p8 = pnand %p4469_p5, %p4463_p1 }
  0xb5   : > { %4473 = shalt.err (!%p4470_p8)
}
  0xb6   : > { %s4474_s10 = scalar_lea.vmem %s1097_s30, 16  ;;  %s4631_s21 = smov [#allocation8]  }
  0xb7   : > { %p4475_p13 = scmp.ne.s32.totalorder %s1097_s30, %s4474_s10  ;;  %s4479_s2 = sshll.u32 %s4631_s21, 4  ;;  %s4480_s2 = int_to_ptr.vmem [resolvable:$false] %s4479_s2 }
  0xb8   : > { %s4481_s20 = scalar_lea.vmem %s4480_s2, 32  ;;  %p4482_p4 = scmp.lt.s32.totalorder %s1097_s30, %s4480_s2 }
  0xb9   : > { %p4477_p10 = pnand %p4475_p13, %p4876_p11  ;;  %p4483_p0 = scmp.lt.s32.totalorder %s4481_s20, %s4474_s10 }
  0xbb   : > { %p4478_p12 = pneg %p4477_p10  ;;  %p4484_p6 = por %p4483_p0, %p4482_p4 }
  0xbd   : > { %p4485_p7 = pnand %p4484_p6, %p4478_p12 }
  0xbf   : > { %4488 = shalt.err (!%p4485_p7)
}
  0xc0   : > { %p5519_p9 = scmp.ne.s32.totalorder %s5513_s18, 0  ;;  %s1131_s4 = scalar_lea.vmem [#allocation11], %s4850_s15 }
  0xc1   : > { %s1138_s6 = sshll.u32 %s1131_s4, 4  ;;  %s4489_s1 = scalar_lea.hbm %s4958_s22, 16  ;;  %s1139_s6 = int_to_ptr.vmem [resolvable:$true] %s1138_s6 }
  0xc2   : > { %4185 = dma.hbm_to_vmem [thread:$0]  (!%p5519_p9), %s4935_s28, 16, %s1097_s30, %s4870_s26  }
  0xc3   : > { %p4490_p1 = scmp.ne.s32.totalorder %s4958_s22, %s4489_s1  ;;  %s4494_s10 = scalar_lea.hbm %s5503_s13, 32 }
  0xc4   : > { %p4495_p3 = scmp.lt.u32.totalorder %s4958_s22, %s5503_s13  ;;  %p4496_p5 = scmp.lt.u32.totalorder %s4494_s10, %s4489_s1 }
  0xc5   : > { %p4492_p6 = pnand %p4490_p1, %p4876_p11  ;;  %p4498_p13 = scmp.lt.u32.totalorder %s4489_s1, %s4958_s22 }
  0xc6   : > { %p4497_p8 = por %p4496_p5, %p4495_p3 }
  0xc7   : > { %p4493_p2 = pneg %p4492_p6 }
  0xc8   : > { %p4499_p10 = por %p4498_p13, %p4497_p8 }
  0xca   : > { %p4500_p12 = pnand %p4499_p10, %p4493_p2 }
  0xcc   : > { %4503 = shalt.err (!%p4500_p12)
}
  0xcd   : > { %s4504_s21 = scalar_lea.vmem %s1139_s6, 16  ;;  %s4632_s26 = smov [#allocation11]  }
  0xce   : > { %p4505_p4 = scmp.ne.s32.totalorder %s1139_s6, %s4504_s21  ;;  %s4509_s28 = sshll.u32 %s4632_s26, 4  ;;  %s4510_s28 = int_to_ptr.vmem [resolvable:$false] %s4509_s28 }
  0xcf   : > { %s4511_s30 = scalar_lea.vmem %s4510_s28, 32  ;;  %p4512_p1 = scmp.lt.s32.totalorder %s1139_s6, %s4510_s28 }
  0xd0   : > { %p4507_p0 = pnand %p4505_p4, %p4876_p11  ;;  %p4513_p6 = scmp.lt.s32.totalorder %s4511_s30, %s4504_s21 }
  0xd2   : > { %p4508_p7 = pneg %p4507_p0  ;;  %p4514_p9 = por %p4513_p6, %p4512_p1 }
  0xd4   : > { %p4515_p3 = pnand %p4514_p9, %p4508_p7 }
  0xd6   : > { %4518 = shalt.err (!%p4515_p3)
}
  0xd7   : > { %p5520_p5 = scmp.ne.s32.totalorder %s5513_s18, 0  ;;  %s4991_s2 = scalar_lea.hbm %s5501_s27, %s4853_s16 }
  0xd8   : > { %s1148_s20 = scalar_lea.vmem [#allocation12], %s4850_s15  ;;  %s1146_s1 = scalar_lea.sflag [#allocation13], %s4850_s15 }
  0xd9   : > { %4191 = dma.hbm_to_vmem [thread:$0]  (!%p5520_p5), %s4958_s22, 16, %s1139_s6, %s4910_s7  }
  0xda   : > { %s1155_s4 = sshll.u32 %s1148_s20, 4  ;;  %s4519_s10 = scalar_lea.hbm %s4991_s2, 16  ;;  %s1156_s4 = int_to_ptr.vmem [resolvable:$true] %s1155_s4 }
  0xdb   : > { %p4520_p9 = scmp.ne.s32.totalorder %s4991_s2, %s4519_s10  ;;  %s4524_s21 = scalar_lea.hbm %s5501_s27, 32 }
  0xdc   : > { %p4525_p13 = scmp.lt.u32.totalorder %s4991_s2, %s5501_s27  ;;  %p4526_p10 = scmp.lt.u32.totalorder %s4524_s21, %s4519_s10 }
  0xdd   : > { %p4522_p2 = pnand %p4520_p9, %p4876_p11  ;;  %p4528_p4 = scmp.lt.u32.totalorder %s4519_s10, %s4991_s2 }
  0xde   : > { %p4527_p12 = por %p4526_p10, %p4525_p13 }
  0xdf   : > { %p4523_p8 = pneg %p4522_p2 }
  0xe0   : > { %p4529_p0 = por %p4528_p4, %p4527_p12 }
  0xe2   : > { %p4530_p7 = pnand %p4529_p0, %p4523_p8 }
  0xe4   : > { %4533 = shalt.err (!%p4530_p7)
}
  0xe5   : > { %s4534_s16 = scalar_lea.vmem %s1156_s4, 16  ;;  %s4633_s15 = smov [#allocation12]  }
  0xe6   : > { %p4535_p1 = scmp.ne.s32.totalorder %s1156_s4, %s4534_s16  ;;  %s4539_s7 = sshll.u32 %s4633_s15, 4  ;;  %s4540_s7 = int_to_ptr.vmem [resolvable:$false] %s4539_s7 }
  0xe7   : > { %s4541_s22 = scalar_lea.vmem %s4540_s7, 32  ;;  %p4542_p9 = scmp.lt.s32.totalorder %s1156_s4, %s4540_s7 }
  0xe8   : > { %p4537_p6 = pnand %p4535_p1, %p4876_p11  ;;  %p4543_p2 = scmp.lt.s32.totalorder %s4541_s22, %s4534_s16 }
  0xea   : > { %p4538_p3 = pneg %p4537_p6  ;;  %p4544_p5 = por %p4543_p2, %p4542_p9 }
  0xec   : > { %p4545_p10 = pnand %p4544_p5, %p4538_p3 }
  0xee   : > { %4548 = shalt.err (!%p4545_p10)
}
  0xef   : > { %p5521_p13 = scmp.ne.s32.totalorder %s5513_s18, 0  ;;  %p5522_p8 = scmp.ne.s32.totalorder %s5516_s12, 0 }
  0xf1   : > { %4194 = dma.hbm_to_vmem [thread:$0]  (!%p5521_p13), %s4991_s2, 16, %s1156_s4, %s1146_s1  }
  0xf2   : > { %1164 = sbr.rel (%p5522_p8) target bundleno = 4689 (0x1251), region = 144 }
  0xf9   : > { %s5011_s9 = sand.u32 1, %s4587_s23   ;;  %p5524_p11 = scmp.ne.s32.totalorder %s5512_s11, 0 }
  0xfa   : > { %5523 = sst [smem:[#allocation54_spill]] %s5011_s9  ;;  %s1167_s6 = scalar_lea.sflag [#allocation5], %s5011_s9 }
  0xfb   : > { %4566 = dma.done.wait (%p5524_p11), %s1167_s6, 16  }
  0xfc   : > { %4568 = vsyncadd (%p5524_p11), %s1167_s6, 4294967280  ;;  %s1174_s18 = sand.u32 1, %s4828_s0  }
  0xfd   : > { %s1175_s28 = scalar_lea.sflag [#allocation7], %s1174_s18 }
  0xfe   : > { %4570 = dma.done.wait (%p5524_p11), %s1175_s28, 32  }
  0xff   : > { %4572 = vsyncadd (%p5524_p11), %s1175_s28, 4294967264  ;;  %s1191_s2 = scalar_lea.sflag [#allocation10], %s1174_s18 }
 0x100   : > { %4574 = dma.done.wait (%p5524_p11), %s1191_s2, 32  }
 0x101   : > { %4576 = vsyncadd (%p5524_p11), %s1191_s2, 4294967264  ;;  %s1207_s1 = scalar_lea.sflag [#allocation13], %s5011_s9 }
 0x102   : > { %4578 = dma.done.wait (%p5524_p11), %s1207_s1, 16  }
 0x103   : > { %4580 = vsyncadd (%p5524_p11), %s1207_s1, 4294967280  ;;  %s5526_s25 = sld [smem:[#allocation23_spill]]  ;;  %s5527_s3 = sld [smem:[#allocation25_spill]] }
 0x104   : > { %s5529_s14 = sld [smem:[#allocation27_spill]]  ;;  %s5530_s24 = sld [smem:[#allocation28_spill]] }
 0x105   : > { %s5531_s21 = sld [smem:[#allocation29_spill]]  ;;  %s5532_s16 = sld [smem:[#allocation30_spill]] }
 0x106   : > { %s5533_s15 = sld [smem:[#allocation31_spill]]  ;;  %s5534_s7 = sld [smem:[#allocation32_spill]] }
 0x107   : > { %s5535_s22 = sld [smem:[#allocation33_spill]]  ;;  %s5536_s6 = sld [smem:[#allocation34_spill]] }
 0x108   : > { %p1382_p5 = scmp.lt.s32.totalorder %s4828_s0, 1  ;;  %s5537_s18 = sld [smem:[#allocation35_spill]] }
 0x109   : > { %s5538_s11 = sld [smem:[#allocation36_spill]]  ;;  %s5539_s1 = sld [smem:[#allocation37_spill]] }
 0x10a   : > { %s5040_s28 = scalar_select %p1382_p5, %s4828_s0, 1 }
 0x10b   : > { %s5540_s4 = sld [smem:[#allocation38_spill]]  ;;  %s5542_s30 = sld [smem:[#allocation39_spill]] }
 0x10c   : > { %s3910_s2 = sshll.u32 %s5040_s28, 4  ;;  %s5544_s26 = sld [smem:[#allocation42_spill]] }
 0x10d   : > { %s5046_s20 = scalar_lea.vmem %s5526_s25, %s3910_s2  ;;  %s5049_s12 = scalar_lea.vmem %s5527_s3, %s3910_s2 }
 0x10e   : > { %5541 = sst [smem:[#allocation55_spill]] %s5046_s20  ;;  %s5054_s13 = scalar_lea.vmem %s5529_s14, %s3910_s2 }
 0x10f   : > { %5543 = sst [smem:[#allocation56_spill]] %s5049_s12  ;;  %s5546_s17 = sld [smem:[#allocation44_spill]] }
 0x110   : > { %5545 = sst [smem:[#allocation57_spill]] %s5054_s13  ;;  %s5059_s23 = scalar_lea.vmem %s5530_s24, %s3910_s2 }
 0x111   : > { %s1413_s9 = scalar_lea.vmem %s5531_s21, %s5040_s28  ;;  %s1416_s0 = scalar_lea.vmem %s5532_s16, %s5040_s28 }
 0x112   : > { %s1419_s10 = scalar_lea.vmem %s5533_s15, %s5040_s28  ;;  %s5068_s29 = scalar_lea.vmem %s5534_s7, %s3910_s2 }
 0x113   : > { %s1427_s25 = scalar_lea.vmem %s5535_s22, %s5040_s28  ;;  %s5073_s20 = scalar_lea.vmem %s5536_s6, %s3910_s2 }
 0x114   : > { %s1435_s3 = scalar_lea.vmem %s5537_s18, %s5040_s28  ;;  %s5078_s12 = scalar_lea.vmem %s5538_s11, %s3910_s2 }
 0x115   : > { %s1443_s5 = scalar_lea.vmem %s5539_s1, %s5040_s28  ;;  %s5083_s8 = scalar_lea.vmem %s5540_s4, %s3910_s2 }
 0x116   : > { %s1451_s14 = scalar_lea.vmem %s5542_s30, %s5040_s28  ;;  %s5088_s13 = scalar_lea.vmem %s5544_s26, %s3910_s2 }
 0x117   : > { %s3919_s27 = sshll.u32 %s5040_s28, 5  ;;  %s5547_s21 = sld [smem:[#allocation51_spill]] }
 0x118   : > { %s5092_s24 = scalar_lea.vmem %s5546_s17, %s3919_s27 }
 0x11d   : > { %p3840_p12 = scmp.ne.s32.totalorder %s5547_s21, 0 }
 0x11e   : > { %s5548_s16 = sld [smem:[#allocation18_spill]] (!%p3840_p12)  ;;  %vm1469_vm0 = vcmask (!%p3840_p12), 261120  }
 0x11f   : > { %1466 = sbr.rel (%p3840_p12) target bundleno = 294 (0x126), region = 172 }
 0x124   : > { %v1467_v0 = vld [vmem:[%s5548_s16] sm:$0xff] (!%p3840_p12)  ;;  %v1468_v1 = vld [vmem:[%s5548_s16 + $0x8] sm:$0xff] (!%p3840_p12) }
 0x125   : > { %1470 = vst.msk [vmem:[#allocation2] sm:$0xff] (!%p3840_p12), %vm1469_vm0, %v1467_v0  ;;  %1471 = vst.msk [vmem:[#allocation2 + $0x8] sm:$0xff] (!%p3840_p12), %vm1469_vm0, %v1468_v1 }
 0x126 PF: > { %s5549_s15 = sld [smem:[#allocation55_spill]]  ;;  %s5550_s4 = sld [smem:[#allocation56_spill]]  ;;  %v4634_v3 = vmov 0.0   ;;  %vm4635_vm1 = vmmov 0   ;;  %vm1524_vm2 = vcmask 261120   ;;  %v4639_v27 = vmov 0  }
 0x127   : > { %3984 = vmatprep.subr.bf16.mxu0 %v4634_v3  ;;  %3992 = vmatprep.subr.bf16.mxu1 %v4634_v3  ;;  %s5551_s17 = sld [smem:[#allocation24_spill]]  ;;  %s5553_s26 = sld [smem:[#allocation26_spill]]  ;;  %vm1742_vm3 = vcmask 1043456   ;;  %vm1738_vm4 = vcmask 64512   ;;  %v4640_v47 = vmov -1e+30  }
 0x128   : > { %3988 = vmatprep.mubr.msk.bf16.mxu0 %vm4635_vm1, %v4634_v3  ;;  %3996 = vmatprep.mubr.msk.bf16.mxu1 %vm4635_vm1, %v4634_v3  ;;  %s5554_s30 = sld [smem:[#allocation20_spill]]  ;;  %s5555_s7 = sld [smem:[#allocation57_spill]]  ;;  %vm1787_vm8 = vcmask 130048   ;;  %vm1988_vm9 = vcmask 130112   ;;  %vm2118_vm10 = vcmask 195712   ;;  %vm2250_vm11 = vcmask 261312  }
 0x129   : > { %s4636_s22 = smov 112   ;;  %s4637_s6 = smov 120   ;;  %4269 = vset.pattern.permute.xlu1 %v4639_v27  ;;  %vm3340_vm13 = vcmask 523264  }
 0x12a   : > { %s4638_s18 = smov 104   ;;  %s5557_s2 = sld [smem:[#allocation22_spill]] }
 0x12b   : > { %s5558_s1 = sld [smem:[#allocation21_spill]]  ;;  %s5559_s21 = scalar_lea.vmem %s4702_s19, %s5040_s28 }
 0x12c   : > { %v4271_v2 = vld [vmem:[%s5549_s15] sm:$0xff]   ;;  %v4272_v4 = vld [vmem:[%s5549_s15 + $0x8] sm:$0xff]   ;;  %s4641_s15 = smov 8  }
 0x12d   : > { %3985 = vmatpush3.bf16.msra.mxu0 %v4271_v2  ;;  %v5103_v5 = vld [vmem:[#allocation2] sm:$0xff]  ;;  %v5105_v6 = vld [vmem:[#allocation2 + $0x8] sm:$0xff]  ;;  %s5552_s27 = scalar_lea.vmem %s5551_s17, %s5040_s28  ;;  %s5556_s11 = scalar_lea.vmem %s5553_s26, %s5040_s28 }
 0x12e   : > { %3986 = vmatprep.subr.bf16.mxu0 %v4634_v3  ;;  %v4273_v7 = vld [vmem:[%s5550_s4] sm:$0xff]   ;;  %v4274_v8 = vld [vmem:[%s5550_s4 + $0x8] sm:$0xff]   ;;  %v1500_v9 = vpack.c.bf16 %v5105_v6, %v5103_v5  ;;  %s4642_s4 = smov 16   ;;  %s4643_s17 = smov 24  }
 0x12f   : > { %3993 = vmatpush3.bf16.msra.mxu1 %v4273_v7  ;;  %v3843_v10 = vld [vmem:[%s5552_s27] ss:$0 sm:$0xff]  ;;  %v4276_v28 = vld [vmem:[%s5555_s7 + $0x8] sm:$0xff]   ;;  %s5561_s27 = sld [smem:[#allocation19_spill]] }
 0x130   : > { %3994 = vmatprep.subr.bf16.mxu1 %v4634_v3  ;;  %v3847_v22 = vld [vmem:[%s5556_s11] ss:$0 sm:$0xff]  ;;  %v1475_v29 = vld [vmem:[%s5554_s30 + $0x8] sm:$0xff] }
 0x131   : > { %3987 = vmatpush3.bf16.msra.mxu0 %v4272_v4  ;;  %v1474_v25 = vld [vmem:[%s5554_s30] sm:$0xff] }
 0x132   : > { %4000 = vmatprep.subr.bf16.mxu0 %v4634_v3  ;;  %v4275_v26 = vld [vmem:[%s5555_s7] sm:$0xff]  }
 0x133   : > { %3995 = vmatpush3.bf16.msra.mxu1 %v4274_v8  ;;  %v5160_v45 = vld [vmem:[%s5557_s2] ss:$0 sm:$0xff] }
 0x134   : > { %3989 = vmatmul.mubr.msk.bf16.vlgmr.msra.gmra.mrb[0].mxu0 %vm1524_vm2, %v1500_v9  ;;  %4008 = vmatprep.subr.bf16.mxu1 %v4634_v3  ;;  %v3841_v49 = vld [vmem:[%s5558_s1] ss:$0 sm:$0xff] }
 0x135   : > { %4004 = vmatprep.mubr.msk.bf16.mxu0 %vm4635_vm1, %v4634_v3  ;;  %4001 = vmatpush3.bf16.msra.mxu0 %v4275_v26 }
 0x136   : > { %3997 = vmatmul.mubr.msk.bf16.vlgmr.msra.gmra.mrb[0].mxu1 %vm1524_vm2, %v1500_v9  ;;  %4002 = vmatprep.subr.bf16.mxu0 %v4634_v3 }
 0x137   : > { %4010 = vmatprep.mubr.msk.bf16.mxu1 %vm4635_vm1, %v4634_v3 }
 0x139   : > { %4003 = vmatpush3.bf16.msra.mxu0 %v4276_v28 }
 0x13a   : > { %4014 = vmatprep.subr.bf16.mxu0 %v4634_v3 }
 0x13c   : > { %4005 = vmatmul.mubr.msk.bf16.vlgmr.msra.gmra.mrb[4].mxu0 %vm1524_vm2, %v1500_v9 }
 0x13d   : > { %4016 = vmatprep.mubr.msk.bf16.mxu0 %vm4635_vm1, %v4634_v3 }
 0x207   : > { %v1562_v11 = vpop.f32.mrb[0].mxu0 }
 0x208   : > { %v3990_v12 = vpop.f32.mrb[1].mxu0  ;;  %v1563_v14 = vadd.f32 %v3843_v10, %v1562_v11 }
 0x209   : > { %v1565_v13 = vpop.f32.mrb[2].mxu0  ;;  %v1626_v17 = vpop.f32.mrb[0].mxu1 }
 0x20a   : > { %v1566_v15 = vadd.f32 %v3843_v10, %v1565_v13  ;;  %v3991_v16 = vpop.f32.mrb[3].mxu0  ;;  %v3998_v18 = vpop.f32.mrb[1].mxu1  ;;  %v1627_v23 = vadd.f32 %v3847_v22, %v1626_v17 }
 0x20b   : > { %v1629_v20 = vpop.f32.mrb[2].mxu1 }
 0x20c   : > { %v1702_v19 = vpack.c.bf16 %v1566_v15, %v1563_v14  ;;  %v3999_v21 = vpop.f32.mrb[3].mxu1  ;;  %v1630_v24 = vadd.f32 %v3847_v22, %v1629_v20 }
 0x20e   : > { %1991 = vrot.lane.b32.xlu1 %v1702_v19, %s4636_s22  ;;  %1858 = vrot.lane.b32.xlu0 %v1702_v19, %s4637_s6 }
 0x212   : > { %2121 = vrot.lane.b32.xlu1 %v1702_v19, %s4638_s18 }
 0x216   : > { %1478 = vperm.xlu1 %4269, %v1474_v25   ;;  %v1690_v25 = vpop.f32.mrb[4].mxu0 }
 0x217   : > { %v4006_v28 = vpop.f32.mrb[5].mxu0 }
 0x21a   : > { %1481 = vperm.xlu1 %4269, %v1475_v29   ;;  %v1693_v29 = vpop.f32.mrb[6].mxu0 }
 0x22c   : > { %1703 = vxpose.xlu0.b32.start [1/2] (short) (narrow) %v1627_v23, 32 }
 0x230   : > { %1704 = vxpose.xlu0.b32.end [2/2] (short) (narrow) %v1630_v24, 32  ;;  %v3851_v24 = vld [vmem:[%s5559_s21] ss:$0 sm:$0xff] }
 0x231   : > { %v1691_v26 = vadd.f32 %v3851_v24, %v1690_v25 }
 0x280   : > { %v1859_v30 = vpop.permute.xlu0 %1858  ;;  %v1992_v42 = vpop.permute.xlu1 %1991 }
 0x284   : > { %v2122_v44 = vpop.permute.xlu1 %2121 }
 0x295   : > { %v1479_v46 = vpop.permute.xlu1 %1478 }
 0x296   : > { %vm1496_vm5 = vcmp.eq.s32.totalorder %v1479_v46, %v5160_v45  ;;  %vm1487_vm6 = vcmp.eq.s32.totalorder %v1479_v46, %v3841_v49 }
 0x297   : > { %v5167_v48 = vsel %vm1496_vm5, 0.0, %v4640_v47  ;;  %v1489_v51 = vsel %vm1487_vm6, 0.0, %v4640_v47 }
 0x299   : > { %v5170_v50 = vpop.permute.xlu1 %1481 }
 0x29a   : > { %vm1488_vm7 = vcmp.eq.s32.totalorder %v5170_v50, %v3841_v49  ;;  %vm1497_vm12 = vcmp.eq.s32.totalorder %v5170_v50, %v5160_v45 }
 0x29b   : > { %v1490_v52 = vsel %vm1488_vm7, 0.0, %v4640_v47 }
 0x2ac   : > { %v1719_v31 = vpop.trf.xlu0 }
 0x2b0   : > { %v1720_v32 = vpop.trf.xlu0 }
 0x2b1   : > { %v1735_v33 = vpack.c.bf16 %v1720_v32, %v1719_v31  ;;  %v4007_v31 = vpop.f32.mrb[7].mxu0 }
 0x2b3   : > { %v1744_v34 = vsel %vm1742_vm3, %v1735_v33, 0  ;;  %v1861_v35 = vrot.slane %v1735_v33, 4 }
 0x2b4   : > { %4009 = vmatpush3.bf16.msra.mxu1 %v1744_v34  ;;  %v1721_v36 = vpop.trf.xlu0 }
 0x2b5   : > { %4020 = vmatprep.subr.bf16.mxu1 %v4634_v3  ;;  %v1866_v37 = vsel %vm1742_vm3, %v1861_v35, 0 }
 0x2b7   : > { %4011 = vmatmul.mubr.msk.bf16.vlgmr.msra.gmra.mrb[4].mxu1 %vm1738_vm4, %v1702_v19 }
 0x2b8   : > { %4021 = vmatpush3.bf16.msra.mxu1 %v1866_v37  ;;  %v1722_v38 = vpop.trf.xlu0  ;;  %4022 = vmatprep.mubr.msk.bf16.mxu1 %vm4635_vm1, %v4634_v3 }
 0x2b9   : > { %v1736_v39 = vpack.c.bf16 %v1722_v38, %v1721_v36  ;;  %4032 = vmatprep.subr.bf16.mxu1 %v4634_v3 }
 0x2bb   : > { %v1997_v40 = vsel %vm1742_vm3, %v1736_v39, 0  ;;  %v2124_v41 = vrot.slane %v1736_v39, 4 }
 0x2bd   : > { %v2129_v43 = vsel %vm1742_vm3, %v2124_v41, 0 }
 0x2bf   : > { %4023 = vmatmul.mubr.msk.bf16.vlgmr.msra.gmra.mrb[8].mxu1 %vm1738_vm4, %v1859_v30  ;;  %v1694_v30 = vadd.f32 %v3851_v24, %v1693_v29 }
 0x2c0   : > { %4033 = vmatpush3.bf16.msra.mxu1 %v1997_v40  ;;  %4034 = vmatprep.mubr.msk.bf16.mxu1 %vm4635_vm1, %v4634_v3 }
 0x2c1   : > { %4044 = vmatprep.subr.bf16.mxu1 %v4634_v3  ;;  %v1737_v32 = vpack.c.bf16 %v1694_v30, %v1691_v26 }
 0x2c3   : > { %4015 = vmatpush3.bf16.msra.mxu0 %v1737_v32 }
 0x2c4   : > { %4026 = vmatprep.subr.bf16.mxu0 %v4634_v3 }
 0x2c7   : > { %4035 = vmatmul.mubr.msk.bf16.vlgmr.msra.gmra.mrb[12].mxu1 %vm1738_vm4, %v1992_v42 }
 0x2c8   : > { %4045 = vmatpush3.bf16.msra.mxu1 %v2129_v43  ;;  %4046 = vmatprep.mubr.msk.bf16.mxu1 %vm4635_vm1, %v4634_v3 }
 0x2c9   : > { %4056 = vmatprep.subr.bf16.mxu1 %v4634_v3 }
 0x2cf   : > { %4047 = vmatmul.mubr.msk.bf16.vlgmr.msra.gmra.mrb[16].mxu1 %vm1738_vm4, %v2122_v44 }
 0x2d0   : > { %4060 = vmatprep.mubr.msk.bf16.mxu1 %vm4635_vm1, %v4634_v3 }
 0x38a   : > { %v1780_v53 = vpop.f32.mrb[4].mxu1 }
 0x38b   : > { %v1781_v54 = vadd.f32 %v1780_v53, %v1489_v51  ;;  %v4012_v55 = vpop.f32.mrb[5].mxu1 }
 0x38c   : > { %v1783_v56 = vpop.f32.mrb[6].mxu1 }
 0x38d   : > { %v1784_v57 = vadd.f32 %v1783_v56, %v1490_v52  ;;  %v4013_v58 = vpop.f32.mrb[7].mxu1  ;;  %v1788_v59 = vsel %vm1787_vm8, %v1781_v54, -inf }
 0x38e   : > { %1789 = vmax.xlane.f32.xlu1 %v1788_v59 }
 0x38f   : > { %v1791_v60 = vsel %vm1787_vm8, %v1784_v57, -inf }
 0x390   : > { %1792 = vmax.xlane.f32.xlu0 %v1791_v60 }
 0x392   : > { %v1902_v61 = vpop.f32.mrb[8].mxu1 }
 0x393   : > { %v1903_v62 = vadd.f32 %v1902_v61, %v1489_v51  ;;  %v4024_v63 = vpop.f32.mrb[9].mxu1 }
 0x394   : > { %v1905_v0 = vpop.f32.mrb[10].mxu1 }
 0x395   : > { %v1906_v1 = vadd.f32 %v1905_v0, %v1490_v52  ;;  %v4025_v2 = vpop.f32.mrb[11].mxu1  ;;  %v1909_v4 = vsel %vm1787_vm8, %v1903_v62, -inf }
 0x396   : > { %1910 = vmax.xlane.f32.xlu1 %v1909_v4 }
 0x397   : > { %v1912_v7 = vsel %vm1787_vm8, %v1906_v1, -inf }
 0x39a   : > { %1913 = vmax.xlane.f32.xlu1 %v1912_v7  ;;  %v2033_v8 = vpop.f32.mrb[12].mxu1 }
 0x39b   : > { %v2034_v9 = vadd.f32 %v2033_v8, %v1489_v51  ;;  %v4036_v10 = vpop.f32.mrb[13].mxu1 }
 0x39c   : > { %v2036_v11 = vpop.f32.mrb[14].mxu1 }
 0x39d   : > { %v2037_v12 = vadd.f32 %v2036_v11, %v1490_v52  ;;  %v4037_v13 = vpop.f32.mrb[15].mxu1  ;;  %v2040_v14 = vsel %vm1787_vm8, %v2034_v9, -inf }
 0x39e   : > { %2041 = vmax.xlane.f32.xlu1 %v2040_v14 }
 0x39f   : > { %v2043_v15 = vsel %vm1787_vm8, %v2037_v12, -inf }
 0x3a2   : > { %2044 = vmax.xlane.f32.xlu1 %v2043_v15  ;;  %v2165_v16 = vpop.f32.mrb[16].mxu1 }
 0x3a3   : > { %v2166_v17 = vadd.f32 %v2165_v16, %v1489_v51  ;;  %v4048_v18 = vpop.f32.mrb[17].mxu1 }
 0x3a4   : > { %v2168_v19 = vpop.f32.mrb[18].mxu1 }
 0x3a5   : > { %v5181_v20 = vadd.f32 %v2168_v19, %v1490_v52  ;;  %v4049_v21 = vpop.f32.mrb[19].mxu1  ;;  %v2172_v22 = vsel %vm1787_vm8, %v2166_v17, -inf }
 0x3a6   : > { %2173 = vmax.xlane.f32.xlu1 %v2172_v22 }
 0x3a7   : > { %v2175_v23 = vsel %vm1787_vm8, %v5181_v20, -inf }
 0x3aa   : > { %2176 = vmax.xlane.f32.xlu1 %v2175_v23 }
 0x41b   : > { %v1790_v33 = vpop.xlane.xlu1 %1789 }
 0x41c   : > { %v1794_v34 = vsub.f32 %v1781_v54, %v1790_v33 }
 0x41d   : > { %v1793_v35 = vpop.xlane.xlu0 %1792 }
 0x41e   : > { %v1796_v36 = vmul.f32 1.442695, %v1794_v34  ;;  %v1795_v37 = vsub.f32 %v1784_v57, %v1793_v35 }
 0x420   : > { %4293 = vpow2.f32 %v1796_v36  ;;  %v1798_v38 = vmul.f32 1.442695, %v1795_v37 }
 0x422   : > { %4295 = vpow2.f32 %v1798_v38 }
 0x423   : > { %v1911_v39 = vpop.xlane.xlu1 %1910 }
 0x424   : > { %v1915_v40 = vsub.f32 %v1903_v62, %v1911_v39 }
 0x426   : > { %v1917_v41 = vmul.f32 1.442695, %v1915_v40 }
 0x427   : > { %v1914_v42 = vpop.xlane.xlu1 %1913 }
 0x428   : > { %4297 = vpow2.f32 %v1917_v41  ;;  %v1916_v43 = vsub.f32 %v1906_v1, %v1914_v42 }
 0x42a   : > { %v4294_v44 = vpop.eup %4293  ;;  %v1919_v46 = vmul.f32 1.442695, %v1916_v43 }
 0x42b   : > { %v2042_v49 = vpop.xlane.xlu1 %2041  ;;  %v1800_v51 = vsel %vm1787_vm8, %v4294_v44, 0.0 }
 0x42c   : > { %v4296_v52 = vpop.eup %4295  ;;  %4299 = vpow2.f32 %v1919_v46  ;;  %v2046_v53 = vsub.f32 %v2034_v9, %v2042_v49  ;;  %1801 = vadd.xlane.f32.xlu1 %v1800_v51 }
 0x42d   : > { %v1803_v56 = vsel %vm1787_vm8, %v4296_v52, 0.0 }
 0x42e   : > { %v2048_v54 = vmul.f32 1.442695, %v2046_v53 }
 0x42f   : > { %v2045_v55 = vpop.xlane.xlu1 %2044 }
 0x430   : > { %4301 = vpow2.f32 %v2048_v54  ;;  %v2047_v57 = vsub.f32 %v2037_v12, %v2045_v55  ;;  %1804 = vadd.xlane.f32.xlu1 %v1803_v56 }
 0x432   : > { %v4298_v58 = vpop.eup %4297  ;;  %v2050_v59 = vmul.f32 1.442695, %v2047_v57 }
 0x433   : > { %v2174_v60 = vpop.xlane.xlu1 %2173  ;;  %v1921_v61 = vsel %vm1787_vm8, %v4298_v58, 0.0 }
 0x434   : > { %4303 = vpow2.f32 %v2050_v59  ;;  %v2178_v62 = vsub.f32 %v2166_v17, %v2174_v60  ;;  %1922 = vadd.xlane.f32.xlu1 %v1921_v61 }
 0x436   : > { %v4300_v63 = vpop.eup %4299  ;;  %v2180_v0 = vmul.f32 1.442695, %v2178_v62 }
 0x437   : > { %v1924_v1 = vsel %vm1787_vm8, %v4300_v63, 0.0  ;;  %v2177_v11 = vpop.xlane.xlu1 %2176 }
 0x438   : > { %4305 = vpow2.f32 %v2180_v0  ;;  %1925 = vadd.xlane.f32.xlu1 %v1924_v1  ;;  %v2179_v12 = vsub.f32 %v5181_v20, %v2177_v11  ;;  %v4277_v0 = vld [vmem:[%s5059_s23] sm:$0xff]   ;;  %v4278_v1 = vld [vmem:[%s5059_s23 + $0x8] sm:$0xff]  }
 0x439   : > { %4057 = vmatpush3.bf16.msra.mxu1 %v4277_v0  ;;  %v3867_v0 = vld [vmem:[%s1416_s0] ss:$0 sm:$0xff] }
 0x43a   : > { %v4302_v2 = vpop.eup %4301  ;;  %v2182_v13 = vmul.f32 1.442695, %v2179_v12  ;;  %4058 = vmatprep.subr.bf16.mxu1 %v4634_v3 }
 0x43b   : > { %v2052_v4 = vsel %vm1787_vm8, %v4302_v2, 0.0 }
 0x43c   : > { %2053 = vadd.xlane.f32.xlu0 %v2052_v4  ;;  %4307 = vpow2.f32 %v2182_v13 }
 0x43d   : > { %4059 = vmatpush3.bf16.msra.mxu1 %v4278_v1 }
 0x43e   : > { %v4304_v7 = vpop.eup %4303  ;;  %4072 = vmatprep.subr.bf16.mxu1 %v4634_v3 }
 0x43f   : > { %v2055_v8 = vsel %vm1787_vm8, %v4304_v7, 0.0 }
 0x440   : > { %2056 = vadd.xlane.f32.xlu1 %v2055_v8 }
 0x442   : > { %v4306_v9 = vpop.eup %4305 }
 0x443   : > { %v2184_v10 = vsel %vm1787_vm8, %v4306_v9, 0.0 }
 0x444   : > { %2185 = vadd.xlane.f32.xlu0 %v2184_v10 }
 0x446   : > { %v4308_v14 = vpop.eup %4307 }
 0x447   : > { %v2187_v15 = vsel %vm1787_vm8, %v4308_v14, 0.0 }
 0x451   : > { %2063 = vrot.lane.b32.xlu1 %v1737_v32, %s4636_s22 }
 0x45a   : > { %1933 = vrot.lane.b32.xlu0 %v1737_v32, %s4637_s6 }
 0x475   : > { %2188 = vadd.xlane.f32.xlu1 %v2187_v15 }
 0x486   : > { %2195 = vrot.lane.b32.xlu1 %v1737_v32, %s4638_s18 }
 0x4b9   : > { %v1802_v16 = vpop.xlane.xlu1 %1801 }
 0x4ba   : > { %4309 = vrcp.f32 %v1802_v16 }
 0x4bd   : > { %v1805_v17 = vpop.xlane.xlu1 %1804 }
 0x4be   : > { %4311 = vrcp.f32 %v1805_v17 }
 0x4c1   : > { %v1923_v18 = vpop.xlane.xlu1 %1922 }
 0x4c4   : > { %v4310_v21 = vpop.eup %4309 }
 0x4c5   : > { %v1926_v19 = vpop.xlane.xlu1 %1925  ;;  %v1808_v23 = vmul.f32 %v4310_v21, %v4294_v44 }
 0x4c6   : > { %4313 = vrcp.f32 %v1926_v19 }
 0x4c7   : > { %4315 = vrcp.f32 %v1923_v18  ;;  %v3863_v18 = vld [vmem:[%s1413_s9] ss:$0 sm:$0xff] }
 0x4c8   : > { %v4312_v22 = vpop.eup %4311 }
 0x4c9   : > { %v1809_v20 = vmul.f32 %v4312_v22, %v4296_v52  ;;  %v2054_v25 = vpop.xlane.xlu0 %2053 }
 0x4cb   : > { %v1810_v24 = vpack.c.bf16 %v1809_v20, %v1808_v23 }
 0x4cd   : > { %v2057_v26 = vpop.xlane.xlu1 %2056  ;;  %4017 = vmatmul.mubr.msk.bf16.vlgmr.msra.gmra.mrb[8].mxu0 %vm1787_vm8, %v1810_v24 }
 0x4ce   : > { %4317 = vrcp.f32 %v2057_v26  ;;  %4028 = vmatprep.mubr.msk.bf16.mxu0 %vm4635_vm1, %v4634_v3 }
 0x4cf   : > { %4319 = vrcp.f32 %v2054_v25 }
 0x4d0   : > { %v4314_v28 = vpop.eup %4313 }
 0x4d1   : > { %v2186_v29 = vpop.xlane.xlu0 %2185  ;;  %v4316_v30 = vpop.eup %4315  ;;  %v1930_v31 = vmul.f32 %v4314_v28, %v4300_v63 }
 0x4d2   : > { %v1929_v32 = vmul.f32 %v4316_v30, %v4298_v58  ;;  %v2064_v36 = vpop.permute.xlu1 %2063  ;;  %4321 = vrcp.f32 %v2186_v29  ;;  %v4279_v30 = vld [vmem:[%s5073_s20] sm:$0xff]  }
 0x4d4   : > { %v1931_v34 = vpack.c.bf16 %v1930_v31, %v1929_v32  ;;  %v4280_v31 = vld [vmem:[%s5073_s20 + $0x8] sm:$0xff]   ;;  %v2366_v32 = vld [vmem:[%s5561_s27] sm:$0xff] }
 0x4d5   : > { %v1934_v33 = vpop.permute.xlu0 %1933 }
 0x4d6   : > { %4027 = vmatpush3.bf16.msra.mxu0 %v1934_v33  ;;  %v2367_v33 = vld [vmem:[%s5561_s27 + $0x8] sm:$0xff] }
 0x4d7   : > { %4038 = vmatprep.subr.bf16.mxu0 %v4634_v3 }
 0x4d8   : > { %v4318_v35 = vpop.eup %4317 }
 0x4d9   : > { %4029 = vmatmul.mubr.msk.bf16.vlgmr.msra.gmra.mrb[12].mxu0 %vm1787_vm8, %v1931_v34  ;;  %v4320_v37 = vpop.eup %4319  ;;  %v2061_v38 = vmul.f32 %v4318_v35, %v4304_v7  ;;  %v5250_v34 = vpack.c.bf16 %v2367_v33, %v2366_v32 }
 0x4da   : > { %4039 = vmatpush3.bf16.msra.mxu0 %v2064_v36  ;;  %4040 = vmatprep.mubr.msk.bf16.mxu0 %vm4635_vm1, %v4634_v3  ;;  %v2060_v39 = vmul.f32 %v4320_v37, %v4302_v2 }
 0x4db   : > { %4050 = vmatprep.subr.bf16.mxu0 %v4634_v3 }
 0x4dc   : > { %v2062_v40 = vpack.c.bf16 %v2061_v38, %v2060_v39  ;;  %v4322_v43 = vpop.eup %4321 }
 0x4dd   : > { %v2192_v46 = vmul.f32 %v4322_v43, %v4306_v9  ;;  %v4281_v43 = vld [vmem:[%s5068_s29] sm:$0xff]  }
 0x4e1   : > { %4041 = vmatmul.mubr.msk.bf16.vlgmr.msra.gmra.mrb[16].mxu0 %vm1787_vm8, %v2062_v40 }
 0x4e2   : > { %4052 = vmatprep.mubr.msk.bf16.mxu0 %vm4635_vm1, %v4634_v3 }
 0x502   : > { %v2189_v41 = vpop.xlane.xlu1 %2188 }
 0x503   : > { %4323 = vrcp.f32 %v2189_v41 }
 0x506   : > { %v2196_v42 = vpop.permute.xlu1 %2195 }
 0x507   : > { %4051 = vmatpush3.bf16.msra.mxu0 %v2196_v42 }
 0x508   : > { %4064 = vmatprep.subr.bf16.mxu0 %v4634_v3 }
 0x50d   : > { %v4324_v44 = vpop.eup %4323 }
 0x50e   : > { %v2193_v49 = vmul.f32 %v4324_v44, %v4308_v14  ;;  %v4282_v44 = vld [vmem:[%s5068_s29 + $0x8] sm:$0xff]  }
 0x510   : > { %v2194_v51 = vpack.c.bf16 %v2193_v49, %v2192_v46  ;;  %v3873_v46 = vld [vmem:[%s1435_s3] ss:$0 sm:$0xff]  ;;  %s5568_s3 = sld [smem:[#allocation54_spill]] }
 0x512   : > { %4053 = vmatmul.mubr.msk.bf16.vlgmr.msra.gmra.mrb[20].mxu0 %vm1787_vm8, %v2194_v51 }
 0x513   : > { %4068 = vmatprep.mubr.msk.bf16.mxu0 %vm4635_vm1, %v4634_v3  ;;  %4065 = vmatpush3.bf16.msra.mxu0 %v4281_v43 }
 0x514   : > { %4066 = vmatprep.subr.bf16.mxu0 %v4634_v3 }
 0x516   : > { %s5572_s0 = scalar_lea.vmem [#allocation9], %s5568_s3 }
 0x517   : > { %4067 = vmatpush3.bf16.msra.mxu0 %v4282_v44 }
 0x518   : > { %4080 = vmatprep.subr.bf16.mxu0 %v4634_v3 }
 0x5a0   : > { %v1848_v52 = vpop.f32.mrb[8].mxu0 }
 0x5a1   : > { %1855 = vst.msk [vmem:[#allocation3] sm:$0xff] %vm1738_vm4, %v1848_v52  ;;  %v4018_v53 = vpop.f32.mrb[9].mxu0 }
 0x5a2   : > { %v1851_v54 = vpop.f32.mrb[10].mxu0 }
 0x5a3   : > { %1856 = vst.msk [vmem:[#allocation3 + $0x8] sm:$0xff] %vm1738_vm4, %v1851_v54  ;;  %v4019_v55 = vpop.f32.mrb[11].mxu0 }
 0x5ac   : > { %v1973_v56 = vpop.f32.mrb[12].mxu0 }
 0x5ad   : > { %1982 = vrot.lane.b32.xlu0 %v1973_v56, %s4641_s15  ;;  %v4030_v57 = vpop.f32.mrb[13].mxu0 }
 0x5ae   : > { %v1976_v58 = vpop.f32.mrb[14].mxu0 }
 0x5af   : > { %1984 = vrot.lane.b32.xlu1 %v1976_v58, %s4641_s15  ;;  %v4031_v59 = vpop.f32.mrb[15].mxu0 }
 0x5b4   : > { %v2103_v60 = vpop.f32.mrb[16].mxu0 }
 0x5b5   : > { %2112 = vrot.lane.b32.xlu0 %v2103_v60, %s4642_s4  ;;  %v4042_v61 = vpop.f32.mrb[17].mxu0 }
 0x5b6   : > { %v2106_v62 = vpop.f32.mrb[18].mxu0 }
 0x5b7   : > { %2114 = vrot.lane.b32.xlu1 %v2106_v62, %s4642_s4  ;;  %v4043_v63 = vpop.f32.mrb[19].mxu0 }
 0x5e5   : > { %v2235_v2 = vpop.f32.mrb[20].mxu0 }
 0x5e6   : > { %2244 = vrot.lane.b32.xlu0 %v2235_v2, %s4643_s17  ;;  %v4054_v4 = vpop.f32.mrb[21].mxu0 }
 0x5e7   : > { %v2238_v7 = vpop.f32.mrb[22].mxu0 }
 0x5e8   : > { %2246 = vrot.lane.b32.xlu1 %v2238_v7, %s4643_s17  ;;  %v4055_v8 = vpop.f32.mrb[23].mxu0  ;;  %v3868_v7 = vld [vmem:[%s1419_s10] ss:$0 sm:$0xff]  ;;  %s5575_s10 = sld [smem:[#allocation51_spill]] }
 0x5ee   : > { %p3907_p4 = scmp.ne.s32.totalorder %s5575_s10, 1 }
 0x5ef   : > { %s5576_s28 = sld [smem:[#allocation48_spill]] (!%p3907_p4) }
 0x5f5   : > { %s5577_s7 = smov (!%p3907_p4), %s5576_s28 }
 0x61f   : > { %v1983_v9 = vpop.permute.xlu0 %1982 }
 0x620   : > { %1989 = vst.msk [vmem:[#allocation3] sm:$0xff] %vm1988_vm9, %v1983_v9 }
 0x621   : > { %v1985_v10 = vpop.permute.xlu1 %1984 }
 0x622   : > { %1990 = vst.msk [vmem:[#allocation3 + $0x8] sm:$0xff] %vm1988_vm9, %v1985_v10 }
 0x627   : > { %v2113_v11 = vpop.permute.xlu0 %2112 }
 0x628   : > { %2119 = vst.msk [vmem:[#allocation3] sm:$0xff] %vm2118_vm10, %v2113_v11 }
 0x629   : > { %v2115_v12 = vpop.permute.xlu1 %2114 }
 0x62a   : > { %2120 = vst.msk [vmem:[#allocation3 + $0x8] sm:$0xff] %vm2118_vm10, %v2115_v12 }
 0x658   : > { %v2245_v13 = vpop.permute.xlu0 %2244 }
 0x659   : > { %2251 = vst.msk [vmem:[#allocation3] sm:$0xff] %vm2250_vm11, %v2245_v13 }
 0x65a   : > { %v2247_v14 = vpop.permute.xlu1 %2246 }
 0x65b   : > { %2252 = vst.msk [vmem:[#allocation3 + $0x8] sm:$0xff] %vm2250_vm11, %v2247_v14 }
 0x660   : > { %v2253_v15 = vld [vmem:[#allocation3] sm:$0xff] }
 0x662   : > { %v2254_v16 = vld [vmem:[#allocation3 + $0x8] sm:$0xff] }
 0x663   : > { %v2255_v17 = vpack.c.bf16 %v2254_v16, %v2253_v15  ;;  %v3869_v15 = vld [vmem:[%s1427_s25] ss:$0 sm:$0xff] }
 0x665   : > { %4061 = vmatmul.mubr.msk.bf16.vlgmr.msra.gmra.mrb[20].mxu1 %vm1524_vm2, %v2255_v17 }
 0x666   : > { %4076 = vmatprep.mubr.msk.bf16.mxu1 %vm4635_vm1, %v4634_v3  ;;  %4073 = vmatpush3.bf16.msra.mxu1 %v4279_v30 }
 0x667   : > { %4074 = vmatprep.subr.bf16.mxu1 %v4634_v3 }
 0x66a   : > { %4075 = vmatpush3.bf16.msra.mxu1 %v4280_v31 }
 0x66b   : > { %4088 = vmatprep.subr.bf16.mxu1 %v4634_v3 }
 0x66d   : > { %4077 = vmatmul.mubr.msk.bf16.vlgmr.msra.gmra.mrb[24].mxu1 %vm1524_vm2, %v5250_v34 }
 0x66e   : > { %4090 = vmatprep.mubr.msk.bf16.mxu1 %vm4635_vm1, %v4634_v3 }
 0x738   : > { %v2311_v19 = vpop.f32.mrb[20].mxu1 }
 0x739   : > { %v2312_v21 = vadd.f32 %v3863_v18, %v2311_v19  ;;  %v4062_v22 = vpop.f32.mrb[21].mxu1 }
 0x73a   : > { %v2314_v23 = vpop.f32.mrb[22].mxu1 }
 0x73b   : > { %v2315_v20 = vadd.f32 %v3863_v18, %v2314_v23  ;;  %v4063_v24 = vpop.f32.mrb[23].mxu1  ;;  %v2320_v25 = vadd.f32 %v2312_v21, %v5103_v5 }
 0x73d   : > { %v2322_v26 = vsel %vm1524_vm2, %v2320_v25, 0.0  ;;  %v2321_v28 = vadd.f32 %v2315_v20, %v5105_v6 }
 0x73e   : > { %2323 = vadd.xlane.f32.xlu0 %v2322_v26  ;;  %v4284_v26 = vld [vmem:[%s5078_s12 + $0x8] sm:$0xff]  }
 0x73f   : > { %v2325_v29 = vsel %vm1524_vm2, %v2321_v28, 0.0 }
 0x740   : > { %2326 = vadd.xlane.f32.xlu1 %v2325_v29  ;;  %v2496_v49 = vpop.f32.mrb[24].mxu1 }
 0x741   : > { %v2497_v51 = vadd.f32 %v3873_v46, %v2496_v49  ;;  %v4078_v52 = vpop.f32.mrb[25].mxu1  ;;  %v3877_v49 = vld [vmem:[%s1443_s5] ss:$0 sm:$0xff] }
 0x742   : > { %v2499_v53 = vpop.f32.mrb[26].mxu1 }
 0x743   : > { %v2500_v54 = vadd.f32 %v3873_v46, %v2499_v53  ;;  %v4079_v55 = vpop.f32.mrb[27].mxu1 }
 0x7cb   : > { %v2324_v5 = vpop.xlane.xlu0 %2323 }
 0x7cc   : > { %v2329_v6 = vmul.f32 0.03125, %v2324_v5 }
 0x7cd   : > { %v2327_v35 = vpop.xlane.xlu1 %2326 }
 0x7ce   : > { %v2331_v36 = vsub.f32 %v2320_v25, %v2329_v6  ;;  %v2330_v37 = vmul.f32 0.03125, %v2327_v35  ;;  %v4283_v25 = vld [vmem:[%s5078_s12] sm:$0xff]   ;;  %s5574_s12 = scalar_lea.vmem [#allocation12], %s5568_s3 }
 0x7d0   : > { %v2332_v38 = vsub.f32 %v2321_v28, %v2330_v37  ;;  %v2333_v39 = vmul.f32 %v2331_v36, %v2331_v36 }
 0x7d2   : > { %v2335_v40 = vsel %vm1524_vm2, %v2333_v39, 0.0  ;;  %v2334_v41 = vmul.f32 %v2332_v38, %v2332_v38 }
 0x7d3   : > { %2336 = vadd.xlane.f32.xlu0 %v2335_v40 }
 0x7d4   : > { %v2338_v42 = vsel %vm1524_vm2, %v2334_v41, 0.0 }
 0x7d7   : > { %2339 = vadd.xlane.f32.xlu0 %v2338_v42 }
 0x804   : > { %2573 = vxpose.xlu0.b32.start [1/2] (short) (narrow) %v2497_v51, 32 }
 0x808   : > { %2574 = vxpose.xlu0.b32.end [2/2] (short) (narrow) %v2500_v54, 32 }
 0x831   : > { %4270 = vset.pattern.permute.xlu0 %v4639_v27 }
 0x860   : > { %v2337_v56 = vpop.xlane.xlu0 %2336 }
 0x861   : > { %v2341_v57 = vmul.f32 0.03125, %v2337_v56 }
 0x863   : > { %v2343_v58 = vadd.f32 1e-05, %v2341_v57 }
 0x864   : > { %v2340_v59 = vpop.xlane.xlu0 %2339 }
 0x865   : > { %4325 = vrsqrt.f32 %v2343_v58  ;;  %v2342_v60 = vmul.f32 0.03125, %v2340_v59 }
 0x867   : > { %v2344_v61 = vadd.f32 1e-05, %v2342_v60 }
 0x869   : > { %4327 = vrsqrt.f32 %v2344_v61 }
 0x86f   : > { %v4326_v62 = vpop.eup %4325 }
 0x870   : > { %v2347_v63 = vmul.f32 %v4326_v62, %v2331_v36 }
 0x872   : > { %v2355_v2 = vmul.f32 %v3867_v0, %v2347_v63 }
 0x873   : > { %v4328_v1 = vpop.eup %4327 }
 0x874   : > { %v2348_v4 = vmul.f32 %v4328_v1, %v2332_v38  ;;  %v5273_v9 = vadd.f32 %v3868_v7, %v2355_v2  ;;  %v1499_v38 = vsel %vm1497_vm12, 0.0, %v4640_v47 }
 0x876   : > { %v2356_v8 = vmul.f32 %v3867_v0, %v2348_v4 }
 0x878   : > { %v5275_v27 = vadd.f32 %v3868_v7, %v2356_v8 }
 0x87a   : > { %v2365_v10 = vpack.c.bf16 %v5275_v27, %v5273_v9 }
 0x87c   : > { %4069 = vmatmul.mubr.msk.bf16.vlgmr.msra.gmra.mrb[24].mxu0 %vm1524_vm2, %v2365_v10 }
 0x87d   : > { %4084 = vmatprep.mubr.msk.bf16.mxu0 %vm4635_vm1, %v4634_v3  ;;  %4081 = vmatpush3.bf16.msra.mxu0 %v4283_v25 }
 0x87e   : > { %4082 = vmatprep.subr.bf16.mxu0 %v4634_v3 }
 0x881   : > { %4083 = vmatpush3.bf16.msra.mxu0 %v4284_v26 }
 0x882   : > { %4094 = vmatprep.subr.bf16.mxu0 %v4634_v3 }
 0x884   : > { %v2589_v11 = vpop.trf.xlu0  ;;  %4085 = vmatmul.mubr.msk.bf16.vlgmr.msra.gmra.mrb[28].mxu0 %vm1524_vm2, %v5250_v34 }
 0x885   : > { %4096 = vmatprep.mubr.msk.bf16.mxu0 %vm4635_vm1, %v4634_v3 }
 0x888   : > { %v2590_v12 = vpop.trf.xlu0 }
 0x889   : > { %v2605_v13 = vpack.c.bf16 %v2590_v12, %v2589_v11 }
 0x88b   : > { %v2612_v14 = vsel %vm1742_vm3, %v2605_v13, 0  ;;  %v2728_v17 = vrot.slane %v2605_v13, 4 }
 0x88c   : > { %4089 = vmatpush3.bf16.msra.mxu1 %v2612_v14  ;;  %v2591_v28 = vpop.trf.xlu0 }
 0x88d   : > { %4100 = vmatprep.subr.bf16.mxu1 %v4634_v3  ;;  %v2733_v24 = vsel %vm1742_vm3, %v2728_v17, 0 }
 0x890   : > { %v2592_v29 = vpop.trf.xlu0 }
 0x891   : > { %v2606_v30 = vpack.c.bf16 %v2592_v29, %v2591_v28 }
 0x893   : > { %v2863_v31 = vsel %vm1742_vm3, %v2606_v30, 0  ;;  %v2989_v33 = vrot.slane %v2606_v30, 4 }
 0x895   : > { %v2994_v34 = vsel %vm1742_vm3, %v2989_v33, 0 }
 0x94f   : > { %v2429_v16 = vpop.f32.mrb[24].mxu0 }
 0x950   : > { %v4070_v18 = vpop.f32.mrb[25].mxu0  ;;  %v2430_v21 = vadd.f32 %v3869_v15, %v2429_v16 }
 0x951   : > { %v2432_v19 = vpop.f32.mrb[26].mxu0 }
 0x952   : > { %v2433_v22 = vadd.f32 %v3869_v15, %v2432_v19  ;;  %v4071_v23 = vpop.f32.mrb[27].mxu0 }
 0x954   : > { %v2572_v20 = vpack.c.bf16 %v2433_v22, %v2430_v21 }
 0x956   : > { %2725 = vrot.lane.b32.xlu1 %v2572_v20, %s4637_s6  ;;  %4091 = vmatmul.mubr.msk.bf16.vlgmr.msra.gmra.mrb[28].mxu1 %vm1738_vm4, %v2572_v20 }
 0x957   : > { %4101 = vmatpush3.bf16.msra.mxu1 %v2733_v24  ;;  %4102 = vmatprep.mubr.msk.bf16.mxu1 %vm4635_vm1, %v4634_v3  ;;  %v2560_v44 = vpop.f32.mrb[28].mxu0 }
 0x958   : > { %4112 = vmatprep.subr.bf16.mxu1 %v4634_v3  ;;  %v4086_v46 = vpop.f32.mrb[29].mxu0  ;;  %v2561_v50 = vadd.f32 %v3877_v49, %v2560_v44 }
 0x959   : > { %v2563_v45 = vpop.f32.mrb[30].mxu0 }
 0x95a   : > { %2857 = vrot.lane.b32.xlu1 %v2572_v20, %s4636_s22  ;;  %v2564_v51 = vadd.f32 %v3877_v49, %v2563_v45  ;;  %v4087_v52 = vpop.f32.mrb[31].mxu0 }
 0x95c   : > { %v5325_v53 = vpack.c.bf16 %v2564_v51, %v2561_v50 }
 0x95e   : > { %2986 = vrot.lane.b32.xlu1 %v2572_v20, %s4638_s18  ;;  %4095 = vmatpush3.bf16.msra.mxu0 %v5325_v53 }
 0x95f   : > { %4106 = vmatprep.subr.bf16.mxu0 %v4634_v3 }
 0x9c8   : > { %v2726_v32 = vpop.permute.xlu1 %2725 }
 0x9c9   : > { %4103 = vmatmul.mubr.msk.bf16.vlgmr.msra.gmra.mrb[32].mxu1 %vm1738_vm4, %v2726_v32 }
 0x9ca   : > { %4113 = vmatpush3.bf16.msra.mxu1 %v2863_v31  ;;  %4114 = vmatprep.mubr.msk.bf16.mxu1 %vm4635_vm1, %v4634_v3 }
 0x9cb   : > { %4124 = vmatprep.subr.bf16.mxu1 %v4634_v3 }
 0x9cc   : > { %v2858_v5 = vpop.permute.xlu1 %2857 }
 0x9d0   : > { %v2987_v6 = vpop.permute.xlu1 %2986 }
 0x9d1   : > { %4115 = vmatmul.mubr.msk.bf16.vlgmr.msra.gmra.mrb[36].mxu1 %vm1738_vm4, %v2858_v5 }
 0x9d2   : > { %4125 = vmatpush3.bf16.msra.mxu1 %v2994_v34  ;;  %4126 = vmatprep.mubr.msk.bf16.mxu1 %vm4635_vm1, %v4634_v3 }
 0x9d3   : > { %4136 = vmatprep.subr.bf16.mxu1 %v4634_v3 }
 0x9d9   : > { %4127 = vmatmul.mubr.msk.bf16.vlgmr.msra.gmra.mrb[40].mxu1 %vm1738_vm4, %v2987_v6 }
 0x9da   : > { %4140 = vmatprep.mubr.msk.bf16.mxu1 %vm4635_vm1, %v4634_v3 }
 0xa29   : > { %v2648_v35 = vpop.f32.mrb[28].mxu1 }
 0xa2a   : > { %v2649_v36 = vadd.f32 %v2648_v35, %v5167_v48  ;;  %v4092_v37 = vpop.f32.mrb[29].mxu1 }
 0xa2b   : > { %v2651_v39 = vpop.f32.mrb[30].mxu1 }
 0xa2c   : > { %v2652_v40 = vadd.f32 %v2651_v39, %v1499_v38  ;;  %v4093_v41 = vpop.f32.mrb[31].mxu1  ;;  %v2655_v42 = vsel %vm1787_vm8, %v2649_v36, -inf }
 0xa2d   : > { %2656 = vmax.xlane.f32.xlu1 %v2655_v42 }
 0xa2e   : > { %v2658_v43 = vsel %vm1787_vm8, %v2652_v40, -inf }
 0xa2f   : > { %2659 = vmax.xlane.f32.xlu0 %v2658_v43 }
 0xa9c   : > { %v2769_v47 = vpop.f32.mrb[32].mxu1 }
 0xa9d   : > { %v2770_v54 = vadd.f32 %v2769_v47, %v5167_v48  ;;  %v4104_v55 = vpop.f32.mrb[33].mxu1 }
 0xa9e   : > { %v2772_v56 = vpop.f32.mrb[34].mxu1 }
 0xa9f   : > { %v2773_v57 = vadd.f32 %v2772_v56, %v1499_v38  ;;  %v4105_v58 = vpop.f32.mrb[35].mxu1  ;;  %v2776_v59 = vsel %vm1787_vm8, %v2770_v54, -inf }
 0xaa0   : > { %2777 = vmax.xlane.f32.xlu1 %v2776_v59 }
 0xaa1   : > { %v2779_v60 = vsel %vm1787_vm8, %v2773_v57, -inf }
 0xaa4   : > { %2780 = vmax.xlane.f32.xlu1 %v2779_v60  ;;  %v2899_v61 = vpop.f32.mrb[36].mxu1 }
 0xaa5   : > { %v2900_v62 = vadd.f32 %v2899_v61, %v5167_v48  ;;  %v4116_v63 = vpop.f32.mrb[37].mxu1 }
 0xaa6   : > { %v2902_v0 = vpop.f32.mrb[38].mxu1 }
 0xaa7   : > { %v2903_v1 = vadd.f32 %v2902_v0, %v1499_v38  ;;  %v4117_v2 = vpop.f32.mrb[39].mxu1  ;;  %v2906_v4 = vsel %vm1787_vm8, %v2900_v62, -inf }
 0xaa8   : > { %2907 = vmax.xlane.f32.xlu1 %v2906_v4 }
 0xaa9   : > { %v2909_v7 = vsel %vm1787_vm8, %v2903_v1, -inf }
 0xaac   : > { %2910 = vmax.xlane.f32.xlu1 %v2909_v7  ;;  %v3030_v8 = vpop.f32.mrb[40].mxu1 }
 0xaad   : > { %v3031_v10 = vadd.f32 %v3030_v8, %v5167_v48  ;;  %v4128_v11 = vpop.f32.mrb[41].mxu1 }
 0xaae   : > { %v3033_v12 = vpop.f32.mrb[42].mxu1 }
 0xaaf   : > { %v3034_v13 = vadd.f32 %v3033_v12, %v1499_v38  ;;  %v4129_v14 = vpop.f32.mrb[43].mxu1  ;;  %v3037_v15 = vsel %vm1787_vm8, %v3031_v10, -inf }
 0xab0   : > { %3038 = vmax.xlane.f32.xlu1 %v3037_v15 }
 0xab1   : > { %v3040_v16 = vsel %vm1787_vm8, %v3034_v13, -inf }
 0xab4   : > { %3041 = vmax.xlane.f32.xlu1 %v3040_v16 }
 0xaba   : > { %v2657_v17 = vpop.xlane.xlu1 %2656 }
 0xabb   : > { %v2661_v18 = vsub.f32 %v2649_v36, %v2657_v17 }
 0xabc   : > { %v2660_v19 = vpop.xlane.xlu0 %2659 }
 0xabd   : > { %v2663_v21 = vmul.f32 1.442695, %v2661_v18  ;;  %v2662_v22 = vsub.f32 %v2652_v40, %v2660_v19 }
 0xabf   : > { %4329 = vpow2.f32 %v2663_v21  ;;  %v2665_v48 = vmul.f32 1.442695, %v2662_v22 }
 0xac1   : > { %4331 = vpow2.f32 %v2665_v48 }
 0xac5   : > { %2800 = vrot.lane.b32.xlu1 %v5325_v53, %s4637_s6 }
 0xac9   : > { %v4330_v23 = vpop.eup %4329 }
 0xaca   : > { %v2667_v20 = vsel %vm1787_vm8, %v4330_v23, 0.0 }
 0xacb   : > { %v4332_v24 = vpop.eup %4331 }
 0xacc   : > { %v2670_v25 = vsel %vm1787_vm8, %v4332_v24, 0.0 }
 0xae9   : > { %2668 = vadd.xlane.f32.xlu1 %v2667_v20 }
 0xaed   : > { %2671 = vadd.xlane.f32.xlu1 %v2670_v25 }
 0xb2d   : > { %v2778_v26 = vpop.xlane.xlu1 %2777 }
 0xb2e   : > { %v2782_v28 = vsub.f32 %v2770_v54, %v2778_v26 }
 0xb30   : > { %v2784_v29 = vmul.f32 1.442695, %v2782_v28 }
 0xb31   : > { %v2781_v30 = vpop.xlane.xlu1 %2780 }
 0xb32   : > { %4333 = vpow2.f32 %v2784_v29  ;;  %v2783_v31 = vsub.f32 %v2773_v57, %v2781_v30 }
 0xb34   : > { %v2786_v32 = vmul.f32 1.442695, %v2783_v31 }
 0xb35   : > { %v2908_v33 = vpop.xlane.xlu1 %2907 }
 0xb36   : > { %4335 = vpow2.f32 %v2786_v32  ;;  %v2912_v5 = vsub.f32 %v2900_v62, %v2908_v33 }
 0xb38   : > { %v2914_v34 = vmul.f32 1.442695, %v2912_v5 }
 0xb39   : > { %v2911_v6 = vpop.xlane.xlu1 %2910 }
 0xb3a   : > { %4337 = vpow2.f32 %v2914_v34  ;;  %v2913_v35 = vsub.f32 %v2903_v1, %v2911_v6  ;;  %v4285_v34 = vld [vmem:[%s5083_s8] sm:$0xff]  }
 0xb3b   : > { %4137 = vmatpush3.bf16.msra.mxu1 %v4285_v34 }
 0xb3c   : > { %v4334_v36 = vpop.eup %4333  ;;  %v2916_v37 = vmul.f32 1.442695, %v2913_v35  ;;  %v4286_v35 = vld [vmem:[%s5083_s8 + $0x8] sm:$0xff]   ;;  %4138 = vmatprep.subr.bf16.mxu1 %v4634_v3  ;;  %s5570_s8 = scalar_lea.vmem [#allocation6], %s5568_s3 }
 0xb3d   : > { %v3039_v38 = vpop.xlane.xlu1 %3038  ;;  %v2788_v39 = vsel %vm1787_vm8, %v4334_v36, 0.0 }
 0xb3e   : > { %4339 = vpow2.f32 %v2916_v37  ;;  %v3043_v40 = vsub.f32 %v3031_v10, %v3039_v38  ;;  %2789 = vadd.xlane.f32.xlu1 %v2788_v39 }
 0xb3f   : > { %4139 = vmatpush3.bf16.msra.mxu1 %v4286_v35 }
 0xb40   : > { %v4336_v41 = vpop.eup %4335  ;;  %v3045_v42 = vmul.f32 1.442695, %v3043_v40  ;;  %4152 = vmatprep.subr.bf16.mxu1 %v4634_v3 }
 0xb41   : > { %v3042_v43 = vpop.xlane.xlu1 %3041  ;;  %v2791_v44 = vsel %vm1787_vm8, %v4336_v41, 0.0 }
 0xb42   : > { %4341 = vpow2.f32 %v3045_v42  ;;  %v3044_v46 = vsub.f32 %v3034_v13, %v3042_v43  ;;  %2792 = vadd.xlane.f32.xlu1 %v2791_v44 }
 0xb44   : > { %v4338_v49 = vpop.eup %4337  ;;  %v3047_v45 = vmul.f32 1.442695, %v3044_v46 }
 0xb45   : > { %v2918_v50 = vsel %vm1787_vm8, %v4338_v49, 0.0  ;;  %v2801_v57 = vpop.permute.xlu1 %2800 }
 0xb46   : > { %4343 = vpow2.f32 %v3047_v45  ;;  %2919 = vadd.xlane.f32.xlu1 %v2918_v50 }
 0xb48   : > { %v4340_v51 = vpop.eup %4339 }
 0xb49   : > { %v2921_v52 = vsel %vm1787_vm8, %v4340_v51, 0.0 }
 0xb4a   : > { %2922 = vadd.xlane.f32.xlu0 %v2921_v52 }
 0xb4c   : > { %v4342_v47 = vpop.eup %4341 }
 0xb4d   : > { %v3049_v54 = vsel %vm1787_vm8, %v4342_v47, 0.0 }
 0xb4e   : > { %3050 = vadd.xlane.f32.xlu1 %v3049_v54  ;;  %v3889_v54 = vld [vmem:[%s1451_s14] ss:$0 sm:$0xff]  ;;  %s5571_s14 = scalar_lea.vmem [#allocation8], %s5568_s3 }
 0xb4f   : > { %v3895_v34 = vld [vmem:[%s5571_s14] ss:$0 sm:$0xff] }
 0xb50   : > { %v4344_v55 = vpop.eup %4343 }
 0xb51   : > { %v3052_v56 = vsel %vm1787_vm8, %v4344_v55, 0.0 }
 0xb52   : > { %3053 = vadd.xlane.f32.xlu0 %v3052_v56 }
 0xb5f   : > { %3060 = vrot.lane.b32.xlu1 %v5325_v53, %s4638_s18 }
 0xb68   : > { %2929 = vrot.lane.b32.xlu0 %v5325_v53, %s4636_s22 }
 0xb76   : > { %v2669_v58 = vpop.xlane.xlu1 %2668 }
 0xb77   : > { %4345 = vrcp.f32 %v2669_v58 }
 0xb7a   : > { %v2672_v59 = vpop.xlane.xlu1 %2671 }
 0xb7b   : > { %4347 = vrcp.f32 %v2672_v59 }
 0xb81   : > { %v4346_v60 = vpop.eup %4345 }
 0xb82   : > { %v2675_v62 = vmul.f32 %v4346_v60, %v4330_v23 }
 0xb85   : > { %v4348_v61 = vpop.eup %4347 }
 0xb86   : > { %v2676_v63 = vmul.f32 %v4348_v61, %v4332_v24 }
 0xb88   : > { %v2677_v0 = vpack.c.bf16 %v2676_v63, %v2675_v62 }
 0xb8a   : > { %4097 = vmatmul.mubr.msk.bf16.vlgmr.msra.gmra.mrb[32].mxu0 %vm1787_vm8, %v2677_v0 }
 0xb8b   : > { %4107 = vmatpush3.bf16.msra.mxu0 %v2801_v57  ;;  %4108 = vmatprep.mubr.msk.bf16.mxu0 %vm4635_vm1, %v4634_v3 }
 0xb8c   : > { %4118 = vmatprep.subr.bf16.mxu0 %v4634_v3 }
 0xbcb   : > { %v2790_v1 = vpop.xlane.xlu1 %2789 }
 0xbcc   : > { %4349 = vrcp.f32 %v2790_v1 }
 0xbcf   : > { %v2793_v53 = vpop.xlane.xlu1 %2792 }
 0xbd0   : > { %4351 = vrcp.f32 %v2793_v53 }
 0xbd3   : > { %v2920_v2 = vpop.xlane.xlu1 %2919 }
 0xbd4   : > { %4353 = vrcp.f32 %v2920_v2 }
 0xbd6   : > { %v4350_v7 = vpop.eup %4349 }
 0xbd7   : > { %v2923_v4 = vpop.xlane.xlu0 %2922  ;;  %v2796_v10 = vmul.f32 %v4350_v7, %v4334_v36 }
 0xbd8   : > { %4355 = vrcp.f32 %v2923_v4 }
 0xbda   : > { %v4352_v8 = vpop.eup %4351 }
 0xbdb   : > { %v2797_v11 = vmul.f32 %v4352_v8, %v4336_v41  ;;  %v3051_v12 = vpop.xlane.xlu1 %3050 }
 0xbdc   : > { %4357 = vrcp.f32 %v3051_v12  ;;  %v4287_v12 = vld [vmem:[%s5088_s13] sm:$0xff]  }
 0xbdd   : > { %v2798_v13 = vpack.c.bf16 %v2797_v11, %v2796_v10 }
 0xbde   : > { %v4354_v15 = vpop.eup %4353 }
 0xbdf   : > { %v3054_v14 = vpop.xlane.xlu0 %3053  ;;  %4109 = vmatmul.mubr.msk.bf16.vlgmr.msra.gmra.mrb[36].mxu0 %vm1787_vm8, %v2798_v13  ;;  %v2926_v17 = vmul.f32 %v4354_v15, %v4338_v49  ;;  %v3061_v22 = vpop.permute.xlu1 %3060  ;;  %v4288_v13 = vld [vmem:[%s5088_s13 + $0x8] sm:$0xff]   ;;  %s5569_s13 = scalar_lea.vmem [#allocation4], %s5568_s3 }
 0xbe0   : > { %4359 = vrcp.f32 %v3054_v14  ;;  %4120 = vmatprep.mubr.msk.bf16.mxu0 %vm4635_vm1, %v4634_v3  ;;  %v4289_v14 = vld [vmem:[%s5092_s24] sm:$0xff]   ;;  %v4290_v15 = vld [vmem:[%s5092_s24 + $0x8] sm:$0xff]  }
 0xbe2   : > { %v4356_v16 = vpop.eup %4355 }
 0xbe3   : > { %v2927_v18 = vmul.f32 %v4356_v16, %v4340_v51  ;;  %v2930_v19 = vpop.permute.xlu0 %2929 }
 0xbe4   : > { %4119 = vmatpush3.bf16.msra.mxu0 %v2930_v19 }
 0xbe5   : > { %v2928_v21 = vpack.c.bf16 %v2927_v18, %v2926_v17  ;;  %4130 = vmatprep.subr.bf16.mxu0 %v4634_v3 }
 0xbe6   : > { %v4358_v48 = vpop.eup %4357 }
 0xbe7   : > { %4121 = vmatmul.mubr.msk.bf16.vlgmr.msra.gmra.mrb[40].mxu0 %vm1787_vm8, %v2928_v21  ;;  %v3057_v20 = vmul.f32 %v4358_v48, %v4342_v47 }
 0xbe8   : > { %4131 = vmatpush3.bf16.msra.mxu0 %v3061_v22  ;;  %4132 = vmatprep.mubr.msk.bf16.mxu0 %vm4635_vm1, %v4634_v3 }
 0xbe9   : > { %4144 = vmatprep.subr.bf16.mxu0 %v4634_v3 }
 0xbea   : > { %v4360_v23 = vpop.eup %4359 }
 0xbeb   : > { %v3058_v24 = vmul.f32 %v4360_v23, %v4344_v55 }
 0xbed   : > { %v3059_v25 = vpack.c.bf16 %v3058_v24, %v3057_v20  ;;  %v3893_v20 = vld [vmem:[%s5569_s13] ss:$0 sm:$0xff] }
 0xbef   : > { %4133 = vmatmul.mubr.msk.bf16.vlgmr.msra.gmra.mrb[44].mxu0 %vm1787_vm8, %v3059_v25 }
 0xbf0   : > { %4148 = vmatprep.mubr.msk.bf16.mxu0 %vm4635_vm1, %v4634_v3  ;;  %4145 = vmatpush3.bf16.msra.mxu0 %v4287_v12  ;;  %v3906_v12 = vld [vmem:[%s5574_s12] ss:$0 sm:$0xff] }
 0xbf1   : > { %4146 = vmatprep.subr.bf16.mxu0 %v4634_v3 }
 0xbf4   : > { %4147 = vmatpush3.bf16.msra.mxu0 %v4288_v13 }
 0xc5d   : > { %v2715_v26 = vpop.f32.mrb[32].mxu0 }
 0xc5e   : > { %2722 = vst.msk [vmem:[#allocation3] sm:$0xff] %vm1738_vm4, %v2715_v26  ;;  %v4098_v28 = vpop.f32.mrb[33].mxu0 }
 0xc5f   : > { %v2718_v29 = vpop.f32.mrb[34].mxu0  ;;  %v3894_v28 = vld [vmem:[%s5570_s8] ss:$0 sm:$0xff] }
 0xc60   : > { %2723 = vst.msk [vmem:[#allocation3 + $0x8] sm:$0xff] %vm1738_vm4, %v2718_v29  ;;  %v4099_v30 = vpop.f32.mrb[35].mxu0 }
 0xcb2   : > { %v2840_v31 = vpop.f32.mrb[36].mxu0 }
 0xcb3   : > { %2849 = vrot.lane.b32.xlu1 %v2840_v31, %s4641_s15  ;;  %v4110_v32 = vpop.f32.mrb[37].mxu0 }
 0xcb4   : > { %v2843_v33 = vpop.f32.mrb[38].mxu0 }
 0xcb5   : > { %v4111_v5 = vpop.f32.mrb[39].mxu0 }
 0xcb6   : > { %v4292_v5 = vld [vmem:[%s5092_s24 + $0x18] sm:$0xff]  }
 0xcb7   : > { %2851 = vrot.lane.b32.xlu1 %v2843_v33, %s4641_s15  ;;  %v4291_v33 = vld [vmem:[%s5092_s24 + $0x10] sm:$0xff]   ;;  %s5573_s24 = scalar_lea.vmem [#allocation11], %s5568_s3 }
 0xcba   : > { %v2969_v6 = vpop.f32.mrb[40].mxu0 }
 0xcbb   : > { %2978 = vrot.lane.b32.xlu0 %v2969_v6, %s4642_s4  ;;  %v4122_v36 = vpop.f32.mrb[41].mxu0 }
 0xcbc   : > { %v2972_v37 = vpop.f32.mrb[42].mxu0 }
 0xcbd   : > { %2980 = vrot.lane.b32.xlu1 %v2972_v37, %s4642_s4  ;;  %v4123_v38 = vpop.f32.mrb[43].mxu0 }
 0xcc2   : > { %v3100_v39 = vpop.f32.mrb[44].mxu0 }
 0xcc3   : > { %3109 = vrot.lane.b32.xlu0 %v3100_v39, %s4643_s17  ;;  %v4134_v40 = vpop.f32.mrb[45].mxu0 }
 0xcc4   : > { %v3103_v41 = vpop.f32.mrb[46].mxu0 }
 0xcc5   : > { %3111 = vrot.lane.b32.xlu1 %v3103_v41, %s4643_s17  ;;  %v4135_v42 = vpop.f32.mrb[47].mxu0 }
 0xd25   : > { %v2850_v43 = vpop.permute.xlu1 %2849 }
 0xd26   : > { %2855 = vst.msk [vmem:[#allocation3] sm:$0xff] %vm1988_vm9, %v2850_v43  ;;  %v3899_v43 = vld [vmem:[%s5572_s0] ss:$0 sm:$0xff] }
 0xd29   : > { %v2852_v44 = vpop.permute.xlu1 %2851 }
 0xd2a   : > { %2856 = vst.msk [vmem:[#allocation3 + $0x8] sm:$0xff] %vm1988_vm9, %v2852_v44 }
 0xd2d   : > { %v2979_v46 = vpop.permute.xlu0 %2978 }
 0xd2e   : > { %2984 = vst.msk [vmem:[#allocation3] sm:$0xff] %vm2118_vm10, %v2979_v46 }
 0xd2f   : > { %v2981_v49 = vpop.permute.xlu1 %2980 }
 0xd30   : > { %2985 = vst.msk [vmem:[#allocation3 + $0x8] sm:$0xff] %vm2118_vm10, %v2981_v49 }
 0xd35   : > { %v3110_v45 = vpop.permute.xlu0 %3109 }
 0xd36   : > { %3115 = vst.msk [vmem:[#allocation3] sm:$0xff] %vm2250_vm11, %v3110_v45 }
 0xd37   : > { %v3112_v50 = vpop.permute.xlu1 %3111 }
 0xd38   : > { %3116 = vst.msk [vmem:[#allocation3 + $0x8] sm:$0xff] %vm2250_vm11, %v3112_v50 }
 0xd3d   : > { %v3117_v51 = vld [vmem:[#allocation3] sm:$0xff] }
 0xd3f   : > { %v3118_v52 = vld [vmem:[#allocation3 + $0x8] sm:$0xff] }
 0xd40   : > { %v3119_v47 = vpack.c.bf16 %v3118_v52, %v3117_v51 }
 0xd42   : > { %4141 = vmatmul.mubr.msk.bf16.vlgmr.msra.gmra.mrb[44].mxu1 %vm1524_vm2, %v3119_v47 }
 0xd43   : > { %4160 = vmatprep.mubr.msk.bf16.mxu1 %vm4635_vm1, %v4634_v3  ;;  %4153 = vmatpush3.bf16.msra.mxu1 %v4289_v14 }
 0xd44   : > { %4154 = vmatprep.subr.bf16.mxu1 %v4634_v3 }
 0xd47   : > { %4155 = vmatpush3.bf16.msra.mxu1 %v4290_v15 }
 0xd48   : > { %4156 = vmatprep.subr.bf16.mxu1 %v4634_v3 }
 0xd4b   : > { %4157 = vmatpush3.bf16.msra.mxu1 %v4291_v33 }
 0xd4c   : > { %4158 = vmatprep.subr.bf16.mxu1 %v4634_v3 }
 0xd4f   : > { %4159 = vmatpush3.bf16.msra.mxu1 %v4292_v5 }
 0xe15   : > { %v3175_v55 = vpop.f32.mrb[44].mxu1 }
 0xe16   : > { %v3176_v56 = vadd.f32 %v3889_v54, %v3175_v55  ;;  %v4142_v57 = vpop.f32.mrb[45].mxu1 }
 0xe17   : > { %v3178_v58 = vpop.f32.mrb[46].mxu1 }
 0xe18   : > { %v3179_v59 = vadd.f32 %v3889_v54, %v3178_v58  ;;  %v4143_v60 = vpop.f32.mrb[47].mxu1  ;;  %v3184_v61 = vadd.f32 %v3176_v56, %v5273_v9 }
 0xe1a   : > { %v3186_v62 = vsel %vm1524_vm2, %v3184_v61, 0.0  ;;  %v3185_v63 = vadd.f32 %v3179_v59, %v5275_v27 }
 0xe1b   : > { %3187 = vadd.xlane.f32.xlu0 %v3186_v62 }
 0xe1c   : > { %v3189_v0 = vsel %vm1524_vm2, %v3185_v63, 0.0 }
 0xe1d   : > { %3190 = vadd.xlane.f32.xlu1 %v3189_v0 }
 0xea8   : > { %v3188_v1 = vpop.xlane.xlu0 %3187 }
 0xea9   : > { %v3192_v53 = vmul.f32 0.03125, %v3188_v1 }
 0xeaa   : > { %v3191_v2 = vpop.xlane.xlu1 %3190 }
 0xeab   : > { %v3194_v4 = vsub.f32 %v3184_v61, %v3192_v53  ;;  %v3193_v7 = vmul.f32 0.03125, %v3191_v2 }
 0xead   : > { %v3195_v8 = vsub.f32 %v3185_v63, %v3193_v7  ;;  %v3196_v10 = vmul.f32 %v3194_v4, %v3194_v4 }
 0xeaf   : > { %v3198_v9 = vsel %vm1524_vm2, %v3196_v10, 0.0  ;;  %v3197_v11 = vmul.f32 %v3195_v8, %v3195_v8 }
 0xeb0   : > { %3199 = vadd.xlane.f32.xlu0 %v3198_v9  ;;  %v3905_v9 = vld [vmem:[%s5573_s24] ss:$0 sm:$0xff] }
 0xeb1   : > { %v3201_v27 = vsel %vm1524_vm2, %v3197_v11, 0.0 }
 0xeb4   : > { %3202 = vadd.xlane.f32.xlu0 %v3201_v27 }
 0xf3d   : > { %v3200_v16 = vpop.xlane.xlu0 %3199 }
 0xf3e   : > { %v3204_v17 = vmul.f32 0.03125, %v3200_v16 }
 0xf40   : > { %v3206_v18 = vadd.f32 1e-05, %v3204_v17 }
 0xf41   : > { %v3203_v19 = vpop.xlane.xlu0 %3202 }
 0xf42   : > { %4361 = vrsqrt.f32 %v3206_v18  ;;  %v3205_v21 = vmul.f32 0.03125, %v3203_v19 }
 0xf44   : > { %v3207_v22 = vadd.f32 1e-05, %v3205_v21 }
 0xf46   : > { %4363 = vrsqrt.f32 %v3207_v22 }
 0xf4c   : > { %v4362_v48 = vpop.eup %4361 }
 0xf4d   : > { %v3210_v23 = vmul.f32 %v4362_v48, %v3194_v4 }
 0xf4f   : > { %v3218_v25 = vmul.f32 %v3893_v20, %v3210_v23 }
 0xf50   : > { %v4364_v24 = vpop.eup %4363 }
 0xf51   : > { %v3211_v26 = vmul.f32 %v4364_v24, %v3195_v8  ;;  %v3226_v30 = vadd.f32 %v3894_v28, %v3218_v25 }
 0xf53   : > { %v3219_v29 = vmul.f32 %v3893_v20, %v3211_v26 }
 0xf55   : > { %v3227_v31 = vadd.f32 %v3894_v28, %v3219_v29 }
 0xf57   : > { %v3244_v32 = vpack.c.bf16 %v3227_v31, %v3226_v30 }
 0xf59   : > { %4149 = vmatmul.mubr.msk.bf16.vlgmr.msra.gmra.mrb[48].mxu0 %vm1524_vm2, %v3244_v32 }
0x102c   : > { %v3300_v6 = vpop.f32.mrb[48].mxu0 }
0x102d   : > { %v3301_v35 = vadd.f32 %v3895_v34, %v3300_v6  ;;  %v4150_v36 = vpop.f32.mrb[49].mxu0 }
0x102e   : > { %v3303_v37 = vpop.f32.mrb[50].mxu0 }
0x102f   : > { %v3304_v38 = vadd.f32 %v3895_v34, %v3303_v37  ;;  %v4151_v39 = vpop.f32.mrb[51].mxu0  ;;  %v3307_v40 = vmax.f32 %v3301_v35, 0.0 }
0x1031   : > { %v3308_v41 = vmax.f32 %v3304_v38, 0.0 }
0x1033   : > { %v3309_v42 = vpack.c.bf16 %v3308_v41, %v3307_v40 }
0x1035   : > { %4161 = vmatmul.mubr.msk.bf16.vlgmr.msra.gmra.mrb[48].mxu1 %vm3340_vm13, %v3309_v42 }
0x1108   : > { %v3378_v44 = vpop.f32.mrb[48].mxu1 }
0x1109   : > { %v3379_v46 = vadd.f32 %v3899_v43, %v3378_v44  ;;  %v4162_v3 = vpop.f32.mrb[49].mxu1 }
0x110a   : > { %v3381_v49 = vpop.f32.mrb[50].mxu1 }
0x110b   : > { %v3382_v45 = vadd.f32 %v3899_v43, %v3381_v49  ;;  %v4163_v50 = vpop.f32.mrb[51].mxu1  ;;  %v3385_v51 = vadd.f32 %v3379_v46, %v3226_v30 }
0x110d   : > { %v3387_v52 = vsel %vm1524_vm2, %v3385_v51, 0.0  ;;  %v3386_v47 = vadd.f32 %v3382_v45, %v3227_v31 }
0x110e   : > { %3388 = vadd.xlane.f32.xlu0 %v3387_v52 }
0x110f   : > { %v3390_v54 = vsel %vm1524_vm2, %v3386_v47, 0.0 }
0x1110   : > { %3391 = vadd.xlane.f32.xlu1 %v3390_v54 }
0x119b   : > { %v3389_v55 = vpop.xlane.xlu0 %3388 }
0x119c   : > { %v3393_v56 = vmul.f32 0.03125, %v3389_v55 }
0x119d   : > { %v3392_v57 = vpop.xlane.xlu1 %3391 }
0x119e   : > { %v3395_v58 = vsub.f32 %v3385_v51, %v3393_v56  ;;  %v3394_v59 = vmul.f32 0.03125, %v3392_v57 }
0x11a0   : > { %v3396_v60 = vsub.f32 %v3386_v47, %v3394_v59  ;;  %v3397_v61 = vmul.f32 %v3395_v58, %v3395_v58 }
0x11a2   : > { %v3399_v62 = vsel %vm1524_vm2, %v3397_v61, 0.0  ;;  %v3398_v63 = vmul.f32 %v3396_v60, %v3396_v60 }
0x11a3   : > { %3400 = vadd.xlane.f32.xlu0 %v3399_v62 }
0x11a4   : > { %v3402_v0 = vsel %vm1524_vm2, %v3398_v63, 0.0 }
0x11a5   : > { %3403 = vadd.xlane.f32.xlu1 %v3402_v0 }
0x1230   : > { %v3401_v1 = vpop.xlane.xlu0 %3400 }
0x1231   : > { %v3405_v53 = vmul.f32 0.03125, %v3401_v1 }
0x1232   : > { %v3404_v2 = vpop.xlane.xlu1 %3403 }
0x1233   : > { %v3407_v4 = vadd.f32 1e-05, %v3405_v53  ;;  %v3406_v7 = vmul.f32 0.03125, %v3404_v2 }
0x1235   : > { %4365 = vrsqrt.f32 %v3407_v4  ;;  %v3408_v8 = vadd.f32 1e-05, %v3406_v7 }
0x1237   : > { %4367 = vrsqrt.f32 %v3408_v8 }
0x123f   : > { %v4366_v10 = vpop.eup %4365 }
0x1240   : > { %v3411_v11 = vmul.f32 %v4366_v10, %v3395_v58 }
0x1241   : > { %v4368_v27 = vpop.eup %4367 }
0x1242   : > { %v3419_v13 = vmul.f32 %v3905_v9, %v3411_v11  ;;  %v3412_v14 = vmul.f32 %v4368_v27, %v3396_v60  ;;  %3434 = sbr.rel (%p3907_p4) target bundleno = 4689 (0x1251), region = 176 }
0x1244   : > { %v3427_v15 = vadd.f32 %v3906_v12, %v3419_v13  ;;  %v3420_v16 = vmul.f32 %v3905_v9, %v3412_v14 }
0x1246   : > { %3429 = vst.msk [vmem:[#allocation2] sm:$0xff] %vm1524_vm2, %v3427_v15  ;;  %v3428_v17 = vadd.f32 %v3906_v12, %v3420_v16 }
0x1248   : > { %3430 = vst.msk [vmem:[#allocation2 + $0x8] sm:$0xff] %vm1524_vm2, %v3428_v17 }
0x124d   : > { %v3435_v18 = vld [vmem:[#allocation2] sm:$0xff] }
0x124e   : > { %3437 = vst.msk [vmem:[%s5576_s28] sm:$0xff] %vm1524_vm2, %v3435_v18 }
0x124f   : > { %v3436_v19 = vld [vmem:[#allocation2 + $0x8] sm:$0xff] }
0x1250   : > { %3438 = vst.msk [vmem:[%s5577_s7 + $0x8] sm:$0xff] %vm1524_vm2, %v3436_v19 }
0x1251 PF: > { %s5578_s28 = sld [smem:[#allocation52_spill]]  ;;  %s5579_s22 = sld [smem:[#allocation49_spill]] }
0x1252   : > { %s5580_s23 = sld [smem:[#allocation50_spill]]  ;;  %s5581_s26 = sld [smem:[#allocation53_spill]] }
0x1257   : > { %p82_p0 = scmp.ge.s32.totalorder %s5578_s28, 4  }
0x1259   :  { %84 = sbr.rel (!%p82_p0) target bundleno = 77 (0x4d), region = 340 }
0x1260   :  { %3450 = vsyncpa [#allocation5], 1 }
0x1261   :  { %3452 = vsyncpa [#allocation5 + $0x1], 1 }
0x1262   :  { %3453 = vsyncpa [#allocation7], 1 }
0x1263   :  { %3455 = vsyncpa [#allocation7 + $0x1], 1 }
0x1264   :  { %3456 = vsyncpa [#allocation10], 1 }
0x1265   :  { %3458 = vsyncpa [#allocation10 + $0x1], 1 }
0x1266   :  { %3459 = vsyncpa [#allocation13], 1 }
0x1267   :  { %3461 = vsyncpa [#allocation13 + $0x1], 1 }

</bundles_post_ra>
